<compile_context>
chip_gen: v7x
topology: tpu7x:2x2x1
jax: 0.10.0
libtpu: 0.0.40
codegen_flags: <defaults>
</compile_context>

<pallas_src>
import numpy as np
import jax
import jax.numpy as jnp
from jax.experimental import pallas as pl
from jax.experimental.pallas import tpu as pltpu

NLABEL = 5

# (Cout, Cin, kernel, pad) for layer1..layer4 -- static config (not traced).
CONV_CFG = ((16, 1, 5, 2), (32, 16, 5, 2), (32, 32, 7, 3), (32, 32, 3, 1))
C4, H4, W4 = 32, 2, 2              # layer4 output (channels, H, W) for a 32x32 input
FC_IN = C4 * H4 * W4               # 128 -- scaled-down analogue of 80000 (see note)
FC_CFG = ((100, FC_IN), (50, 100), (NLABEL, 50))
FC_PAD = 128                       # lane-dense width for the FC head


# ----------------------------- Pallas kernels -------------------------------

def conv_relu_pool_kernel(p_ref, w_ref, b_ref, o_ref):
    """Fused conv-as-GEMM + 2x2 max-pool + bias + ReLU.

    p: (4*M, K) bf16 im2col patches, quadrant-major (rows [q*M, (q+1)*M) are the
       patches whose conv outputs land at pool-window position q).
    w: (K, Cout) bf16.   b: (1, Cout) f32.   o: (M, Cout) bf16 pooled activation.
    """
    m = o_ref.shape[0]
    # Single MXU GEMM, f32 accumulation.
    acc = jnp.dot(p_ref[...], w_ref[...], preferred_element_type=jnp.float32)
    # Quadrant max on contiguous row blocks (pure f32 VPU epilogue).
    pooled = jnp.maximum(jnp.maximum(acc[0 * m:1 * m], acc[1 * m:2 * m]),
                         jnp.maximum(acc[2 * m:3 * m], acc[3 * m:4 * m]))
    # Bias + ReLU hoisted after the max (relu(max_q(a_q)+b) == max_q(relu(a_q+b))).
    pooled = jnp.maximum(pooled + b_ref[...], 0.0)
    o_ref[...] = pooled.astype(o_ref.dtype)


def mlp_kernel(x_ref, w1_ref, b1_ref, w2_ref, b2_ref, w3_ref, b3_ref, o_ref):
    """layer5 ReLU + fc1 -> (dropout=id) -> fc2 -> fc3 -> (dropout=id).

    All widths padded to 128 (lane-dense stores); logits sliced in the wrapper.
    """
    # layer5 ReLU (epilogue math in f32, cast back for the MXU).
    x = jnp.maximum(x_ref[...].astype(jnp.float32), 0.0).astype(jnp.bfloat16)
    h = jnp.dot(x, w1_ref[...], preferred_element_type=jnp.float32) + b1_ref[...]
    # TODO(synk): nn.Dropout(p=0.1) implemented as identity (eval/inference semantics).
    h = jnp.dot(h.astype(jnp.bfloat16), w2_ref[...],
                preferred_element_type=jnp.float32) + b2_ref[...]
    h = jnp.dot(h.astype(jnp.bfloat16), w3_ref[...],
                preferred_element_type=jnp.float32) + b3_ref[...]
    o_ref[...] = h


# ------------------------------ Pallas wrappers ------------------------------

def conv_relu_pool(p4m, w, b, m):
    """Single-step pallas_call: all operands live fully in VMEM (<~1 MiB total)."""
    cout = w.shape[1]
    return pl.pallas_call(
        conv_relu_pool_kernel,
        out_shape=jax.ShapeDtypeStruct((m, cout), jnp.bfloat16),
        in_specs=[pl.BlockSpec(memory_space=pltpu.MemorySpace.VMEM)] * 3,
        out_specs=pl.BlockSpec(memory_space=pltpu.MemorySpace.VMEM),
    )(p4m, w, b)


def mlp_head(feat, w1, b1, w2, b2, w3, b3):
    N = feat.shape[0]
    return pl.pallas_call(
        mlp_kernel,
        out_shape=jax.ShapeDtypeStruct((N, FC_PAD), jnp.float32),
        in_specs=[pl.BlockSpec(memory_space=pltpu.MemorySpace.VMEM)] * 7,
        out_specs=pl.BlockSpec(memory_space=pltpu.MemorySpace.VMEM),
    )(feat, w1, b1, w2, b2, w3, b3)


# ------------------------------- JAX glue (jit-fused) -------------------------

def extract_pooled_patches(x_nhwc, k, pad):
    """im2col, split by 2x2 pool quadrant and concatenated quadrant-major.

    Returns a (4*N*Ho*Wo, k*k*C) array: rows [q*M, (q+1)*M) are the patches
    whose conv outputs land at pool-window position q = 2*r + c, r,c in {0,1}.
    Column order is (ki, kj, cin), matching torch_conv_w_to_gemm.
    """
    N, H, W, C = x_nhwc.shape
    Ho, Wo = H // 2, W // 2
    xp = jnp.pad(x_nhwc, ((0, 0), (pad, pad), (pad, pad), (0, 0)))
    cols = [xp[:, i:i + H, j:j + W, :] for i in range(k) for j in range(k)]
    patches = jnp.stack(cols, axis=3)                         # (N, H, W, k*k, C)
    quads = [patches[:, r::2, c::2, :, :].reshape(N * Ho * Wo, k * k * C)
             for r in (0, 1) for c in (0, 1)]
    return jnp.concatenate(quads, axis=0), Ho, Wo             # (4*M, K)


def torch_conv_w_to_gemm(w_oihw):
    """(Cout,Cin,KH,KW) -> (KH*KW*Cin, Cout) matching im2col column order."""
    cout, cin, kh, kw = w_oihw.shape
    return jnp.transpose(w_oihw, (2, 3, 1, 0)).reshape(kh * kw * cin, cout)


def _pad2d(a, rows, cols):
    out = jnp.zeros((rows, cols), a.dtype)
    return out.at[:a.shape[0], :a.shape[1]].set(a)


def init_params(key):
    """torch-style uniform init, pre-converted to GEMM layouts / bf16 (done once)."""
    def u(k, shape, fan_in):
        bound = 1.0 / float(np.sqrt(fan_in))
        return jax.random.uniform(k, shape, jnp.float32, -bound, bound)

    keys = jax.random.split(key, 2 * (len(CONV_CFG) + len(FC_CFG)))

    conv_params = []
    for idx, (co, ci, k, _pad) in enumerate(CONV_CFG):
        fan_in = ci * k * k
        w = u(keys[2 * idx], (co, ci, k, k), fan_in)              # torch Conv2d layout
        b = u(keys[2 * idx + 1], (co,), fan_in)
        conv_params.append((torch_conv_w_to_gemm(w).astype(jnp.bfloat16),
                            b.reshape(1, co)))                    # bias stays f32

    off = 2 * len(CONV_CFG)
    fc_params = []
    for idx, (fo, fi) in enumerate(FC_CFG):
        w = u(keys[off + 2 * idx], (fo, fi), fi)                  # torch Linear (out, in)
        b = u(keys[off + 2 * idx + 1], (fo,), fi)
        w_gemm = w.T                                              # (in, out)
        if idx == 0:
            # torch flattens NCHW, i.e. fc1 rows ordered (C,H,W); our feature
            # matrix is a plain NHWC reshape, so permute rows to (H,W,C) once.
            w_gemm = (w_gemm.reshape(C4, H4, W4, fo)
                      .transpose(1, 2, 0, 3).reshape(fi, fo))
        w_pad = _pad2d(w_gemm, FC_PAD, FC_PAD).astype(jnp.bfloat16)
        b_pad = _pad2d(b.reshape(1, fo), 1, FC_PAD)               # f32
        fc_params.append((w_pad, b_pad))
    return tuple(conv_params), tuple(fc_params)


@jax.jit
def _cnn_forward_jit(x_nchw, params):
    conv_params, fc_params = params
    N = x_nchw.shape[0]
    x = jnp.transpose(x_nchw, (0, 2, 3, 1)).astype(jnp.bfloat16)  # NCHW -> NHWC, bf16

    for (w, b), (co, _ci, k, pad) in zip(conv_params, CONV_CFG):
        p4m, Ho, Wo = extract_pooled_patches(x, k, pad)           # conv_i + relu + pool
        y = conv_relu_pool(p4m, w, b, N * Ho * Wo)                # (M, Cout) bf16
        x = y.reshape(N, Ho, Wo, co)

    out4_map = x[0, :, :, 0].astype(jnp.float32)  # torch: out4 = out[0][0] after layer4

    # Flatten with NO transpose: fc1 rows were permuted to (H,W,C) order at init.
    feat = x.reshape(N, -1)                                       # (N, 128) bf16

    (w1, b1), (w2, b2), (w3, b3) = fc_params
    logits_pad = mlp_head(feat, w1, b1, w2, b2, w3, b3)           # (N, 128) f32
    return logits_pad[:, :NLABEL], out4_map


def cnn_forward(x_nchw, params):
    logits, out4_map = _cnn_forward_jit(x_nchw, params)
    pictures = [np.asarray(out4_map)]   # host conversion OUTSIDE the traced forward
    return logits, pictures


# ---------------------------------- main --------------------------------------

if __name__ == "__main__":
    key = jax.random.PRNGKey(0)
    k_x, k_p = jax.random.split(key)
    x = jax.random.normal(k_x, (2, 1, 32, 32), jnp.float32)       # NCHW, 1 input channel
    params = init_params(k_p)

    logits, pictures = cnn_forward(x, params)
    logits = jax.block_until_ready(logits)

    assert logits.shape == (2, NLABEL)
    assert pictures[0].shape == (2, 2)                            # layer4 map: 32/16 = 2
    assert np.all(np.isfinite(np.asarray(logits)))
    print("KERNEL_OK")
</pallas_src>

<mosaic_0001>
module attributes {stable_mosaic.version = 11 : i64} {
  func.func @conv_relu_pool_kernel(%arg0: memref<2048x25xbf16, #tpu.memory_space<vmem>>, %arg1: memref<25x16xbf16, #tpu.memory_space<vmem>>, %arg2: memref<1x16xf32, #tpu.memory_space<vmem>>, %arg3: memref<512x16xbf16, #tpu.memory_space<vmem>>) attributes {dimension_semantics = [], scalar_prefetch = 0 : i64, scratch_operands = 0 : i64, tpu.core_type = #tpu.core_type<tc>} {
    %c0 = arith.constant 0 : index
    %c0_0 = arith.constant 0 : index
    %0 = vector.load %arg0[%c0, %c0_0] : memref<2048x25xbf16, #tpu.memory_space<vmem>>, vector<2048x25xbf16>
    %c0_1 = arith.constant 0 : index
    %c0_2 = arith.constant 0 : index
    %1 = vector.load %arg1[%c0_1, %c0_2] : memref<25x16xbf16, #tpu.memory_space<vmem>>, vector<25x16xbf16>
    %cst = arith.constant dense<0.000000e+00> : vector<2048x16xf32>
    %2 = tpu.matmul %0, %1, %cst {dimension_numbers = #tpu.dot_dimension_numbers<[1], [0], [0], [1], [0, 0, 1, 1], [], []>} : vector<2048x25xbf16>, vector<25x16xbf16>, vector<2048x16xf32> -> vector<2048x16xf32>
    %3 = vector.extract_strided_slice %2 {offsets = [0, 0], sizes = [512, 16], strides = [1, 1]} : vector<2048x16xf32> to vector<512x16xf32>
    %4 = vector.extract_strided_slice %2 {offsets = [512, 0], sizes = [512, 16], strides = [1, 1]} : vector<2048x16xf32> to vector<512x16xf32>
    %5 = arith.maximumf %3, %4 : vector<512x16xf32>
    %6 = vector.extract_strided_slice %2 {offsets = [1024, 0], sizes = [512, 16], strides = [1, 1]} : vector<2048x16xf32> to vector<512x16xf32>
    %7 = vector.extract_strided_slice %2 {offsets = [1536, 0], sizes = [512, 16], strides = [1, 1]} : vector<2048x16xf32> to vector<512x16xf32>
    %8 = arith.maximumf %6, %7 : vector<512x16xf32>
    %9 = arith.maximumf %5, %8 : vector<512x16xf32>
    %c0_3 = arith.constant 0 : index
    %c0_4 = arith.constant 0 : index
    %10 = vector.load %arg2[%c0_3, %c0_4] : memref<1x16xf32, #tpu.memory_space<vmem>>, vector<1x16xf32>
    %11 = vector.broadcast %10 : vector<1x16xf32> to vector<512x16xf32>
    %12 = arith.addf %9, %11 : vector<512x16xf32>
    %cst_5 = arith.constant 0.000000e+00 : f32
    %13 = vector.broadcast %cst_5 : f32 to vector<512x16xf32>
    %14 = arith.maximumf %12, %13 : vector<512x16xf32>
    %15 = arith.truncf %14 : vector<512x16xf32> to vector<512x16xbf16>
    %c0_6 = arith.constant 0 : index
    %c0_7 = arith.constant 0 : index
    %16 = vector.load %arg3[%c0_6, %c0_7] : memref<512x16xbf16, #tpu.memory_space<vmem>>, vector<512x16xbf16>
    tpu.vector_store %arg3[%c0_6, %c0_7], %15 {strides = array<i32>} : memref<512x16xbf16, #tpu.memory_space<vmem>>, vector<512x16xbf16>,
    return
  }
}

module attributes {stable_mosaic.version = 11 : i64} {
  func.func @conv_relu_pool_kernel(%arg0: memref<512x400xbf16, #tpu.memory_space<vmem>>, %arg1: memref<400x32xbf16, #tpu.memory_space<vmem>>, %arg2: memref<1x32xf32, #tpu.memory_space<vmem>>, %arg3: memref<128x32xbf16, #tpu.memory_space<vmem>>) attributes {dimension_semantics = [], scalar_prefetch = 0 : i64, scratch_operands = 0 : i64, tpu.core_type = #tpu.core_type<tc>} {
    %c0 = arith.constant 0 : index
    %c0_0 = arith.constant 0 : index
    %0 = vector.load %arg0[%c0, %c0_0] : memref<512x400xbf16, #tpu.memory_space<vmem>>, vector<512x400xbf16>
    %c0_1 = arith.constant 0 : index
    %c0_2 = arith.constant 0 : index
    %1 = vector.load %arg1[%c0_1, %c0_2] : memref<400x32xbf16, #tpu.memory_space<vmem>>, vector<400x32xbf16>
    %cst = arith.constant dense<0.000000e+00> : vector<512x32xf32>
    %2 = tpu.matmul %0, %1, %cst {dimension_numbers = #tpu.dot_dimension_numbers<[1], [0], [0], [1], [0, 0, 1, 1], [], []>} : vector<512x400xbf16>, vector<400x32xbf16>, vector<512x32xf32> -> vector<512x32xf32>
    %3 = vector.extract_strided_slice %2 {offsets = [0, 0], sizes = [128, 32], strides = [1, 1]} : vector<512x32xf32> to vector<128x32xf32>
    %4 = vector.extract_strided_slice %2 {offsets = [128, 0], sizes = [128, 32], strides = [1, 1]} : vector<512x32xf32> to vector<128x32xf32>
    %5 = arith.maximumf %3, %4 : vector<128x32xf32>
    %6 = vector.extract_strided_slice %2 {offsets = [256, 0], sizes = [128, 32], strides = [1, 1]} : vector<512x32xf32> to vector<128x32xf32>
    %7 = vector.extract_strided_slice %2 {offsets = [384, 0], sizes = [128, 32], strides = [1, 1]} : vector<512x32xf32> to vector<128x32xf32>
    %8 = arith.maximumf %6, %7 : vector<128x32xf32>
    %9 = arith.maximumf %5, %8 : vector<128x32xf32>
    %c0_3 = arith.constant 0 : index
    %c0_4 = arith.constant 0 : index
    %10 = vector.load %arg2[%c0_3, %c0_4] : memref<1x32xf32, #tpu.memory_space<vmem>>, vector<1x32xf32>
    %11 = vector.broadcast %10 : vector<1x32xf32> to vector<128x32xf32>
    %12 = arith.addf %9, %11 : vector<128x32xf32>
    %cst_5 = arith.constant 0.000000e+00 : f32
    %13 = vector.broadcast %cst_5 : f32 to vector<128x32xf32>
    %14 = arith.maximumf %12, %13 : vector<128x32xf32>
    %15 = arith.truncf %14 : vector<128x32xf32> to vector<128x32xbf16>
    %c0_6 = arith.constant 0 : index
    %c0_7 = arith.constant 0 : index
    %16 = vector.load %arg3[%c0_6, %c0_7] : memref<128x32xbf16, #tpu.memory_space<vmem>>, vector<128x32xbf16>
    tpu.vector_store %arg3[%c0_6, %c0_7], %15 {strides = array<i32>} : memref<128x32xbf16, #tpu.memory_space<vmem>>, vector<128x32xbf16>,
    return
  }
}

module attributes {stable_mosaic.version = 11 : i64} {
  func.func @conv_relu_pool_kernel(%arg0: memref<128x1568xbf16, #tpu.memory_space<vmem>>, %arg1: memref<1568x32xbf16, #tpu.memory_space<vmem>>, %arg2: memref<1x32xf32, #tpu.memory_space<vmem>>, %arg3: memref<32x32xbf16, #tpu.memory_space<vmem>>) attributes {dimension_semantics = [], scalar_prefetch = 0 : i64, scratch_operands = 0 : i64, tpu.core_type = #tpu.core_type<tc>} {
    %c0 = arith.constant 0 : index
    %c0_0 = arith.constant 0 : index
    %0 = vector.load %arg0[%c0, %c0_0] : memref<128x1568xbf16, #tpu.memory_space<vmem>>, vector<128x1568xbf16>
    %c0_1 = arith.constant 0 : index
    %c0_2 = arith.constant 0 : index
    %1 = vector.load %arg1[%c0_1, %c0_2] : memref<1568x32xbf16, #tpu.memory_space<vmem>>, vector<1568x32xbf16>
    %cst = arith.constant dense<0.000000e+00> : vector<128x32xf32>
    %2 = tpu.matmul %0, %1, %cst {dimension_numbers = #tpu.dot_dimension_numbers<[1], [0], [0], [1], [0, 0, 1, 1], [], []>} : vector<128x1568xbf16>, vector<1568x32xbf16>, vector<128x32xf32> -> vector<128x32xf32>
    %3 = vector.extract_strided_slice %2 {offsets = [0, 0], sizes = [32, 32], strides = [1, 1]} : vector<128x32xf32> to vector<32x32xf32>
    %4 = vector.extract_strided_slice %2 {offsets = [32, 0], sizes = [32, 32], strides = [1, 1]} : vector<128x32xf32> to vector<32x32xf32>
    %5 = arith.maximumf %3, %4 : vector<32x32xf32>
    %6 = vector.extract_strided_slice %2 {offsets = [64, 0], sizes = [32, 32], strides = [1, 1]} : vector<128x32xf32> to vector<32x32xf32>
    %7 = vector.extract_strided_slice %2 {offsets = [96, 0], sizes = [32, 32], strides = [1, 1]} : vector<128x32xf32> to vector<32x32xf32>
    %8 = arith.maximumf %6, %7 : vector<32x32xf32>
    %9 = arith.maximumf %5, %8 : vector<32x32xf32>
    %c0_3 = arith.constant 0 : index
    %c0_4 = arith.constant 0 : index
    %10 = vector.load %arg2[%c0_3, %c0_4] : memref<1x32xf32, #tpu.memory_space<vmem>>, vector<1x32xf32>
    %11 = vector.broadcast %10 : vector<1x32xf32> to vector<32x32xf32>
    %12 = arith.addf %9, %11 : vector<32x32xf32>
    %cst_5 = arith.constant 0.000000e+00 : f32
    %13 = vector.broadcast %cst_5 : f32 to vector<32x32xf32>
    %14 = arith.maximumf %12, %13 : vector<32x32xf32>
    %15 = arith.truncf %14 : vector<32x32xf32> to vector<32x32xbf16>
    %c0_6 = arith.constant 0 : index
    %c0_7 = arith.constant 0 : index
    %16 = vector.load %arg3[%c0_6, %c0_7] : memref<32x32xbf16, #tpu.memory_space<vmem>>, vector<32x32xbf16>
    tpu.vector_store %arg3[%c0_6, %c0_7], %15 {strides = array<i32>} : memref<32x32xbf16, #tpu.memory_space<vmem>>, vector<32x32xbf16>,
    return
  }
}

module attributes {stable_mosaic.version = 11 : i64} {
  func.func @conv_relu_pool_kernel(%arg0: memref<32x288xbf16, #tpu.memory_space<vmem>>, %arg1: memref<288x32xbf16, #tpu.memory_space<vmem>>, %arg2: memref<1x32xf32, #tpu.memory_space<vmem>>, %arg3: memref<8x32xbf16, #tpu.memory_space<vmem>>) attributes {dimension_semantics = [], scalar_prefetch = 0 : i64, scratch_operands = 0 : i64, tpu.core_type = #tpu.core_type<tc>} {
    %c0 = arith.constant 0 : index
    %c0_0 = arith.constant 0 : index
    %0 = vector.load %arg0[%c0, %c0_0] : memref<32x288xbf16, #tpu.memory_space<vmem>>, vector<32x288xbf16>
    %c0_1 = arith.constant 0 : index
    %c0_2 = arith.constant 0 : index
    %1 = vector.load %arg1[%c0_1, %c0_2] : memref<288x32xbf16, #tpu.memory_space<vmem>>, vector<288x32xbf16>
    %cst = arith.constant dense<0.000000e+00> : vector<32x32xf32>
    %2 = tpu.matmul %0, %1, %cst {dimension_numbers = #tpu.dot_dimension_numbers<[1], [0], [0], [1], [0, 0, 1, 1], [], []>} : vector<32x288xbf16>, vector<288x32xbf16>, vector<32x32xf32> -> vector<32x32xf32>
    %3 = vector.extract_strided_slice %2 {offsets = [0, 0], sizes = [8, 32], strides = [1, 1]} : vector<32x32xf32> to vector<8x32xf32>
    %4 = vector.extract_strided_slice %2 {offsets = [8, 0], sizes = [8, 32], strides = [1, 1]} : vector<32x32xf32> to vector<8x32xf32>
    %5 = arith.maximumf %3, %4 : vector<8x32xf32>
    %6 = vector.extract_strided_slice %2 {offsets = [16, 0], sizes = [8, 32], strides = [1, 1]} : vector<32x32xf32> to vector<8x32xf32>
    %7 = vector.extract_strided_slice %2 {offsets = [24, 0], sizes = [8, 32], strides = [1, 1]} : vector<32x32xf32> to vector<8x32xf32>
    %8 = arith.maximumf %6, %7 : vector<8x32xf32>
    %9 = arith.maximumf %5, %8 : vector<8x32xf32>
    %c0_3 = arith.constant 0 : index
    %c0_4 = arith.constant 0 : index
    %10 = vector.load %arg2[%c0_3, %c0_4] : memref<1x32xf32, #tpu.memory_space<vmem>>, vector<1x32xf32>
    %11 = vector.broadcast %10 : vector<1x32xf32> to vector<8x32xf32>
    %12 = arith.addf %9, %11 : vector<8x32xf32>
    %cst_5 = arith.constant 0.000000e+00 : f32
    %13 = vector.broadcast %cst_5 : f32 to vector<8x32xf32>
    %14 = arith.maximumf %12, %13 : vector<8x32xf32>
    %15 = arith.truncf %14 : vector<8x32xf32> to vector<8x32xbf16>
    %c0_6 = arith.constant 0 : index
    %c0_7 = arith.constant 0 : index
    %16 = vector.load %arg3[%c0_6, %c0_7] : memref<8x32xbf16, #tpu.memory_space<vmem>>, vector<8x32xbf16>
    tpu.vector_store %arg3[%c0_6, %c0_7], %15 {strides = array<i32>} : memref<8x32xbf16, #tpu.memory_space<vmem>>, vector<8x32xbf16>,
    return
  }
}

module attributes {stable_mosaic.version = 11 : i64} {
  func.func @mlp_kernel(%arg0: memref<2x128xbf16, #tpu.memory_space<vmem>>, %arg1: memref<128x128xbf16, #tpu.memory_space<vmem>>, %arg2: memref<1x128xf32, #tpu.memory_space<vmem>>, %arg3: memref<128x128xbf16, #tpu.memory_space<vmem>>, %arg4: memref<1x128xf32, #tpu.memory_space<vmem>>, %arg5: memref<128x128xbf16, #tpu.memory_space<vmem>>, %arg6: memref<1x128xf32, #tpu.memory_space<vmem>>, %arg7: memref<2x128xf32, #tpu.memory_space<vmem>>) attributes {dimension_semantics = [], scalar_prefetch = 0 : i64, scratch_operands = 0 : i64, tpu.core_type = #tpu.core_type<tc>} {
    %c0 = arith.constant 0 : index
    %c0_0 = arith.constant 0 : index
    %0 = vector.load %arg0[%c0, %c0_0] : memref<2x128xbf16, #tpu.memory_space<vmem>>, vector<2x128xbf16>
    %1 = arith.extf %0 : vector<2x128xbf16> to vector<2x128xf32>
    %cst = arith.constant 0.000000e+00 : f32
    %2 = vector.broadcast %cst : f32 to vector<2x128xf32>
    %3 = arith.maximumf %1, %2 : vector<2x128xf32>
    %4 = arith.truncf %3 : vector<2x128xf32> to vector<2x128xbf16>
    %c0_1 = arith.constant 0 : index
    %c0_2 = arith.constant 0 : index
    %5 = vector.load %arg1[%c0_1, %c0_2] : memref<128x128xbf16, #tpu.memory_space<vmem>>, vector<128x128xbf16>
    %cst_3 = arith.constant dense<0.000000e+00> : vector<2x128xf32>
    %6 = tpu.matmul %4, %5, %cst_3 {dimension_numbers = #tpu.dot_dimension_numbers<[1], [0], [0], [1], [0, 0, 1, 1], [], []>} : vector<2x128xbf16>, vector<128x128xbf16>, vector<2x128xf32> -> vector<2x128xf32>
    %c0_4 = arith.constant 0 : index
    %c0_5 = arith.constant 0 : index
    %7 = vector.load %arg2[%c0_4, %c0_5] : memref<1x128xf32, #tpu.memory_space<vmem>>, vector<1x128xf32>
    %8 = vector.broadcast %7 : vector<1x128xf32> to vector<2x128xf32>
    %9 = arith.addf %6, %8 : vector<2x128xf32>
    %10 = arith.truncf %9 : vector<2x128xf32> to vector<2x128xbf16>
    %c0_6 = arith.constant 0 : index
    %c0_7 = arith.constant 0 : index
    %11 = vector.load %arg3[%c0_6, %c0_7] : memref<128x128xbf16, #tpu.memory_space<vmem>>, vector<128x128xbf16>
    %cst_8 = arith.constant dense<0.000000e+00> : vector<2x128xf32>
    %12 = tpu.matmul %10, %11, %cst_8 {dimension_numbers = #tpu.dot_dimension_numbers<[1], [0], [0], [1], [0, 0, 1, 1], [], []>} : vector<2x128xbf16>, vector<128x128xbf16>, vector<2x128xf32> -> vector<2x128xf32>
    %c0_9 = arith.constant 0 : index
    %c0_10 = arith.constant 0 : index
    %13 = vector.load %arg4[%c0_9, %c0_10] : memref<1x128xf32, #tpu.memory_space<vmem>>, vector<1x128xf32>
    %14 = vector.broadcast %13 : vector<1x128xf32> to vector<2x128xf32>
    %15 = arith.addf %12, %14 : vector<2x128xf32>
    %16 = arith.truncf %15 : vector<2x128xf32> to vector<2x128xbf16>
    %c0_11 = arith.constant 0 : index
    %c0_12 = arith.constant 0 : index
    %17 = vector.load %arg5[%c0_11, %c0_12] : memref<128x128xbf16, #tpu.memory_space<vmem>>, vector<128x128xbf16>
    %cst_13 = arith.constant dense<0.000000e+00> : vector<2x128xf32>
    %18 = tpu.matmul %16, %17, %cst_13 {dimension_numbers = #tpu.dot_dimension_numbers<[1], [0], [0], [1], [0, 0, 1, 1], [], []>} : vector<2x128xbf16>, vector<128x128xbf16>, vector<2x128xf32> -> vector<2x128xf32>
    %c0_14 = arith.constant 0 : index
    %c0_15 = arith.constant 0 : index
    %19 = vector.load %arg6[%c0_14, %c0_15] : memref<1x128xf32, #tpu.memory_space<vmem>>, vector<1x128xf32>
    %20 = vector.broadcast %19 : vector<1x128xf32> to vector<2x128xf32>
    %21 = arith.addf %18, %20 : vector<2x128xf32>
    %c0_16 = arith.constant 0 : index
    %c0_17 = arith.constant 0 : index
    %22 = vector.load %arg7[%c0_16, %c0_17] : memref<2x128xf32, #tpu.memory_space<vmem>>, vector<2x128xf32>
    tpu.vector_store %arg7[%c0_16, %c0_17], %21 {strides = array<i32>} : memref<2x128xf32, #tpu.memory_space<vmem>>, vector<2x128xf32>,
    return
  }
}

</mosaic_0001>

<bundles_post_ra>
// kernel: _cnn_forward_jit.5
= control target key start
LH: loop header
LB: loop body
LE: loop exit
PB: predicated region body
PF: predicated region fallthrough
CT: control target
= control target key end

     0   :  { %vm1311_vm0 = vcmask 1043456   ;;  %vm1312_vm1 = vcmask 1044480   ;;  %vm926_vm2 = vcmask 203776   ;;  %v3940_v1 = vmov 65535   ;;  %s5183_s1 = inlined_call_operand.vmem [shape: bf16[25,16], index: 1, kind: input, shape index: {}]   ;;  %s5184_s0 = inlined_call_operand.vmem [shape: bf16[2048,25], index: 0, kind: input, shape index: {}]   ;;  %s5185_s2 = inlined_call_operand.vmem [shape: f32[1,16], index: 2, kind: input, shape index: {}]   ;;  %s5186_s3 = inlined_call_operand.vmem [shape: bf16[512,16], index: 3, kind: output, shape index: {}]  }
   0x1   :  { %v3809_v0 = vld [vmem:[%s5183_s1] sm:$0xff]   ;;  %v1313_v2 = vsel %vm1311_vm0, 4294967295, %v3940_v1  ;;  %v3810_v3 = vld [vmem:[%s5183_s1 + $0x8] sm:$0x1f]   ;;  %v3815_v10 = vld [vmem:[%s5184_s0 + $0x10] sm:$0xff]   ;;  %vm2958_vm3 = vcmask 125952  }
   0x2   :  { %3544 = vmatprep.subr.bf16.mxu0 %v3809_v0  ;;  %3804 = vmatprep.subr.bf16.mxu1 %v3809_v0  ;;  %v1314_v4 = vsel %vm1312_vm1, %v1313_v2, 0  ;;  %v3811_v5 = vld [vmem:[%s5184_s0] sm:$0xff]   ;;  %v3813_v8 = vld [vmem:[%s5184_s0 + $0x8] sm:$0xff]   ;;  %v3816_v11 = vld [vmem:[%s5184_s0 + $0x210] sm:$0xff]  }
   0x3   :  { %3545 = vmatpush3.bf16.msra.mxu0 %v3809_v0  ;;  %3806 = vmatpush3.bf16.msra.mxu1 %v3809_v0  ;;  %v1316_v6 = vand.u32 %v3810_v3, %v1314_v4  ;;  %v3812_v7 = vld [vmem:[%s5184_s0 + $0x200] sm:$0xff]   ;;  %v3814_v9 = vld [vmem:[%s5184_s0 + $0x208] sm:$0xff]   ;;  %v3817_v12 = vld [vmem:[%s5184_s0 + $0x18] sm:$0xff]  }
   0x4   :  { %3548 = vmatprep.mubr.msk.bf16.mxu0 %vm926_vm2, %v3811_v5  ;;  %3676 = vmatprep.mubr.msk.bf16.mxu1 %vm926_vm2, %v3812_v7  ;;  %v3818_v13 = vld [vmem:[%s5184_s0 + $0x218] sm:$0xff]   ;;  %v3819_v14 = vld [vmem:[%s5184_s0 + $0x20] sm:$0xff]   ;;  %v3821_v16 = vld [vmem:[%s5184_s0 + $0x28] sm:$0xff]  }
   0x5   :  { %3546 = vmatprep.subr.bf16.mxu0 %v1316_v6  ;;  %3805 = vmatprep.subr.bf16.mxu1 %v1316_v6  ;;  %v3820_v15 = vld [vmem:[%s5184_s0 + $0x220] sm:$0xff]   ;;  %v3822_v17 = vld [vmem:[%s5184_s0 + $0x228] sm:$0xff]   ;;  %v3823_v18 = vld [vmem:[%s5184_s0 + $0x30] sm:$0xff]  }
   0x6   :  { %v3824_v19 = vld [vmem:[%s5184_s0 + $0x230] sm:$0xff]   ;;  %v3825_v20 = vld [vmem:[%s5184_s0 + $0x38] sm:$0xff]   ;;  %v3827_v22 = vld [vmem:[%s5184_s0 + $0x40] sm:$0xff]  }
   0x7   :  { %3547 = vmatpush3.bf16.msra.mxu0 %v1316_v6  ;;  %3807 = vmatpush3.bf16.msra.mxu1 %v1316_v6  ;;  %v3826_v21 = vld [vmem:[%s5184_s0 + $0x238] sm:$0xff]   ;;  %v3828_v23 = vld [vmem:[%s5184_s0 + $0x240] sm:$0xff]   ;;  %v3829_v24 = vld [vmem:[%s5184_s0 + $0x48] sm:$0xff]  }
   0x8   :  { %v3830_v25 = vld [vmem:[%s5184_s0 + $0x248] sm:$0xff]   ;;  %v3831_v26 = vld [vmem:[%s5184_s0 + $0x50] sm:$0xff]   ;;  %v3833_v28 = vld [vmem:[%s5184_s0 + $0x58] sm:$0xff]  }
   0x9   :  { %v3832_v27 = vld [vmem:[%s5184_s0 + $0x250] sm:$0xff]   ;;  %v3834_v29 = vld [vmem:[%s5184_s0 + $0x258] sm:$0xff]   ;;  %v3835_v30 = vld [vmem:[%s5184_s0 + $0x60] sm:$0xff]  }
   0xa   :  { %3549 = vmatmul.mubr.msk.bf16.vlgmr.msra.gmra.mrb[0].mxu0 %vm926_vm2, %v3813_v8  ;;  %3677 = vmatmul.mubr.msk.bf16.vlgmr.msra.gmra.mrb[0].mxu1 %vm926_vm2, %v3814_v9  ;;  %v3836_v31 = vld [vmem:[%s5184_s0 + $0x260] sm:$0xff]   ;;  %v3837_v32 = vld [vmem:[%s5184_s0 + $0x68] sm:$0xff]   ;;  %v3839_v34 = vld [vmem:[%s5184_s0 + $0x70] sm:$0xff]  }
   0xb   :  { %3552 = vmatprep.mubr.msk.bf16.mxu0 %vm926_vm2, %v3815_v10  ;;  %3680 = vmatprep.mubr.msk.bf16.mxu1 %vm926_vm2, %v3816_v11  ;;  %v3838_v33 = vld [vmem:[%s5184_s0 + $0x268] sm:$0xff]   ;;  %v3840_v35 = vld [vmem:[%s5184_s0 + $0x270] sm:$0xff]   ;;  %v3841_v36 = vld [vmem:[%s5184_s0 + $0x78] sm:$0xff]  }
   0xc   :  { %v3842_v37 = vld [vmem:[%s5184_s0 + $0x278] sm:$0xff]   ;;  %v3843_v38 = vld [vmem:[%s5184_s0 + $0x80] sm:$0xff]   ;;  %v3845_v40 = vld [vmem:[%s5184_s0 + $0x88] sm:$0xff]  }
   0xd   :  { %v3844_v39 = vld [vmem:[%s5184_s0 + $0x280] sm:$0xff]   ;;  %v3846_v41 = vld [vmem:[%s5184_s0 + $0x288] sm:$0xff]   ;;  %v3847_v42 = vld [vmem:[%s5184_s0 + $0x90] sm:$0xff]  }
   0xe   :  { %v3848_v43 = vld [vmem:[%s5184_s0 + $0x290] sm:$0xff]   ;;  %v3849_v44 = vld [vmem:[%s5184_s0 + $0x98] sm:$0xff]   ;;  %v3851_v46 = vld [vmem:[%s5184_s0 + $0xa0] sm:$0xff]  }
   0xf   :  { %v3850_v45 = vld [vmem:[%s5184_s0 + $0x298] sm:$0xff]   ;;  %v3852_v47 = vld [vmem:[%s5184_s0 + $0x2a0] sm:$0xff]   ;;  %v3853_v48 = vld [vmem:[%s5184_s0 + $0xa8] sm:$0xff]  }
  0x10   :  { %v3854_v49 = vld [vmem:[%s5184_s0 + $0x2a8] sm:$0xff]   ;;  %v3855_v50 = vld [vmem:[%s5184_s0 + $0xb0] sm:$0xff]   ;;  %v3857_v52 = vld [vmem:[%s5184_s0 + $0xb8] sm:$0xff]  }
  0x11   :  { %v3856_v51 = vld [vmem:[%s5184_s0 + $0x2b0] sm:$0xff]   ;;  %v3858_v53 = vld [vmem:[%s5184_s0 + $0x2b8] sm:$0xff]   ;;  %v3859_v54 = vld [vmem:[%s5184_s0 + $0xc0] sm:$0xff]  }
  0x12   :  { %3553 = vmatmul.mubr.msk.bf16.gmra.mrb[4].mxu0 %vm926_vm2, %v3817_v12  ;;  %3681 = vmatmul.mubr.msk.bf16.gmra.mrb[4].mxu1 %vm926_vm2, %v3818_v13  ;;  %v3860_v55 = vld [vmem:[%s5184_s0 + $0x2c0] sm:$0xff]   ;;  %v3861_v56 = vld [vmem:[%s5184_s0 + $0xc8] sm:$0xff]   ;;  %v3863_v58 = vld [vmem:[%s5184_s0 + $0xd0] sm:$0xff]  }
  0x13   :  { %3556 = vmatprep.mubr.msk.bf16.mxu0 %vm926_vm2, %v3819_v14  ;;  %3684 = vmatprep.mubr.msk.bf16.mxu1 %vm926_vm2, %v3820_v15  ;;  %v3862_v57 = vld [vmem:[%s5184_s0 + $0x2c8] sm:$0xff]   ;;  %v3864_v59 = vld [vmem:[%s5184_s0 + $0x2d0] sm:$0xff]   ;;  %v3865_v60 = vld [vmem:[%s5184_s0 + $0xd8] sm:$0xff]  }
  0x14   :  { %v3866_v61 = vld [vmem:[%s5184_s0 + $0x2d8] sm:$0xff]   ;;  %v3867_v62 = vld [vmem:[%s5184_s0 + $0xe0] sm:$0xff]   ;;  %v3869_v0 = vld [vmem:[%s5184_s0 + $0xe8] sm:$0xff]  }
  0x15   :  { %v3868_v63 = vld [vmem:[%s5184_s0 + $0x2e0] sm:$0xff]   ;;  %v3870_v1 = vld [vmem:[%s5184_s0 + $0x2e8] sm:$0xff]   ;;  %v3871_v2 = vld [vmem:[%s5184_s0 + $0xf0] sm:$0xff]  }
  0x16   :  { %v3872_v3 = vld [vmem:[%s5184_s0 + $0x2f0] sm:$0xff]   ;;  %v3873_v4 = vld [vmem:[%s5184_s0 + $0xf8] sm:$0xff]   ;;  %v3875_v6 = vld [vmem:[%s5184_s0 + $0x100] sm:$0xff]  }
  0x17   :  { %v3874_v5 = vld [vmem:[%s5184_s0 + $0x2f8] sm:$0xff]   ;;  %v3876_v7 = vld [vmem:[%s5184_s0 + $0x300] sm:$0xff]   ;;  %v3877_v8 = vld [vmem:[%s5184_s0 + $0x108] sm:$0xff]  }
  0x18   :  { %v3878_v9 = vld [vmem:[%s5184_s0 + $0x308] sm:$0xff]   ;;  %v3879_v10 = vld [vmem:[%s5184_s0 + $0x110] sm:$0xff]   ;;  %v3881_v12 = vld [vmem:[%s5184_s0 + $0x118] sm:$0xff]  }
  0x19   :  { %v3880_v11 = vld [vmem:[%s5184_s0 + $0x310] sm:$0xff]   ;;  %v3882_v13 = vld [vmem:[%s5184_s0 + $0x318] sm:$0xff]   ;;  %v3883_v14 = vld [vmem:[%s5184_s0 + $0x120] sm:$0xff]  }
  0x1a   :  { %3557 = vmatmul.mubr.msk.bf16.gmra.mrb[8].mxu0 %vm926_vm2, %v3821_v16  ;;  %3685 = vmatmul.mubr.msk.bf16.gmra.mrb[8].mxu1 %vm926_vm2, %v3822_v17  ;;  %v3884_v15 = vld [vmem:[%s5184_s0 + $0x320] sm:$0xff]   ;;  %v3885_v16 = vld [vmem:[%s5184_s0 + $0x128] sm:$0xff]  }
  0x1b   :  { %3560 = vmatprep.mubr.msk.bf16.mxu0 %vm926_vm2, %v3823_v18  ;;  %3688 = vmatprep.mubr.msk.bf16.mxu1 %vm926_vm2, %v3824_v19  ;;  %v3886_v17 = vld [vmem:[%s5184_s0 + $0x328] sm:$0xff]   ;;  %v3887_v18 = vld [vmem:[%s5184_s0 + $0x130] sm:$0xff]  }
  0x1c   :  { %v3888_v19 = vld [vmem:[%s5184_s0 + $0x330] sm:$0xff]  }
  0x22   :  { %3561 = vmatmul.mubr.msk.bf16.gmra.mrb[12].mxu0 %vm926_vm2, %v3825_v20  ;;  %3689 = vmatmul.mubr.msk.bf16.gmra.mrb[12].mxu1 %vm926_vm2, %v3826_v21  ;;  %v3889_v20 = vld [vmem:[%s5184_s0 + $0x138] sm:$0xff]  }
  0x23   :  { %3564 = vmatprep.mubr.msk.bf16.mxu0 %vm926_vm2, %v3827_v22  ;;  %3692 = vmatprep.mubr.msk.bf16.mxu1 %vm926_vm2, %v3828_v23  ;;  %v3890_v21 = vld [vmem:[%s5184_s0 + $0x338] sm:$0xff]   ;;  %v3891_v22 = vld [vmem:[%s5184_s0 + $0x140] sm:$0xff]  }
  0x24   :  { %v3892_v23 = vld [vmem:[%s5184_s0 + $0x340] sm:$0xff]  }
  0x2a   :  { %3565 = vmatmul.mubr.msk.bf16.gmra.mrb[16].mxu0 %vm926_vm2, %v3829_v24  ;;  %3693 = vmatmul.mubr.msk.bf16.gmra.mrb[16].mxu1 %vm926_vm2, %v3830_v25  ;;  %v3893_v24 = vld [vmem:[%s5184_s0 + $0x148] sm:$0xff]  }
  0x2b   :  { %3568 = vmatprep.mubr.msk.bf16.mxu0 %vm926_vm2, %v3831_v26  ;;  %3696 = vmatprep.mubr.msk.bf16.mxu1 %vm926_vm2, %v3832_v27  ;;  %v3894_v25 = vld [vmem:[%s5184_s0 + $0x348] sm:$0xff]   ;;  %v3895_v26 = vld [vmem:[%s5184_s0 + $0x150] sm:$0xff]  }
  0x2c   :  { %v3896_v27 = vld [vmem:[%s5184_s0 + $0x350] sm:$0xff]  }
  0x32   :  { %3569 = vmatmul.mubr.msk.bf16.gmra.mrb[20].mxu0 %vm926_vm2, %v3833_v28  ;;  %3697 = vmatmul.mubr.msk.bf16.gmra.mrb[20].mxu1 %vm926_vm2, %v3834_v29  ;;  %v3897_v28 = vld [vmem:[%s5184_s0 + $0x158] sm:$0xff]  }
  0x33   :  { %3572 = vmatprep.mubr.msk.bf16.mxu0 %vm926_vm2, %v3835_v30  ;;  %3700 = vmatprep.mubr.msk.bf16.mxu1 %vm926_vm2, %v3836_v31  ;;  %v3898_v29 = vld [vmem:[%s5184_s0 + $0x358] sm:$0xff]   ;;  %v3899_v30 = vld [vmem:[%s5184_s0 + $0x160] sm:$0xff]  }
  0x34   :  { %v3900_v31 = vld [vmem:[%s5184_s0 + $0x360] sm:$0xff]  }
  0x3a   :  { %3573 = vmatmul.mubr.msk.bf16.gmra.mrb[24].mxu0 %vm926_vm2, %v3837_v32  ;;  %3701 = vmatmul.mubr.msk.bf16.gmra.mrb[24].mxu1 %vm926_vm2, %v3838_v33  ;;  %v3901_v32 = vld [vmem:[%s5184_s0 + $0x168] sm:$0xff]  }
  0x3b   :  { %3576 = vmatprep.mubr.msk.bf16.mxu0 %vm926_vm2, %v3839_v34  ;;  %3704 = vmatprep.mubr.msk.bf16.mxu1 %vm926_vm2, %v3840_v35  ;;  %v3902_v33 = vld [vmem:[%s5184_s0 + $0x368] sm:$0xff]   ;;  %v3903_v34 = vld [vmem:[%s5184_s0 + $0x170] sm:$0xff]  }
  0x3c   :  { %v3904_v35 = vld [vmem:[%s5184_s0 + $0x370] sm:$0xff]  }
  0x42   :  { %3577 = vmatmul.mubr.msk.bf16.gmra.mrb[28].mxu0 %vm926_vm2, %v3841_v36  ;;  %3705 = vmatmul.mubr.msk.bf16.gmra.mrb[28].mxu1 %vm926_vm2, %v3842_v37  ;;  %v3905_v36 = vld [vmem:[%s5184_s0 + $0x178] sm:$0xff]  }
  0x43   :  { %3580 = vmatprep.mubr.msk.bf16.mxu0 %vm926_vm2, %v3843_v38  ;;  %3708 = vmatprep.mubr.msk.bf16.mxu1 %vm926_vm2, %v3844_v39  ;;  %v3906_v37 = vld [vmem:[%s5184_s0 + $0x378] sm:$0xff]   ;;  %v3907_v38 = vld [vmem:[%s5184_s0 + $0x180] sm:$0xff]  }
  0x44   :  { %v3908_v39 = vld [vmem:[%s5184_s0 + $0x380] sm:$0xff]  }
  0x4a   :  { %3581 = vmatmul.mubr.msk.bf16.gmra.mrb[32].mxu0 %vm926_vm2, %v3845_v40  ;;  %3709 = vmatmul.mubr.msk.bf16.gmra.mrb[32].mxu1 %vm926_vm2, %v3846_v41  ;;  %v3909_v40 = vld [vmem:[%s5184_s0 + $0x188] sm:$0xff]  }
  0x4b   :  { %3584 = vmatprep.mubr.msk.bf16.mxu0 %vm926_vm2, %v3847_v42  ;;  %3712 = vmatprep.mubr.msk.bf16.mxu1 %vm926_vm2, %v3848_v43  ;;  %v3910_v41 = vld [vmem:[%s5184_s0 + $0x388] sm:$0xff]   ;;  %v3911_v42 = vld [vmem:[%s5184_s0 + $0x190] sm:$0xff]  }
  0x4c   :  { %v3912_v43 = vld [vmem:[%s5184_s0 + $0x390] sm:$0xff]  }
  0x52   :  { %3585 = vmatmul.mubr.msk.bf16.gmra.mrb[36].mxu0 %vm926_vm2, %v3849_v44  ;;  %3713 = vmatmul.mubr.msk.bf16.gmra.mrb[36].mxu1 %vm926_vm2, %v3850_v45  ;;  %v3913_v44 = vld [vmem:[%s5184_s0 + $0x198] sm:$0xff]  }
  0x53   :  { %3588 = vmatprep.mubr.msk.bf16.mxu0 %vm926_vm2, %v3851_v46  ;;  %3716 = vmatprep.mubr.msk.bf16.mxu1 %vm926_vm2, %v3852_v47  ;;  %v3914_v45 = vld [vmem:[%s5184_s0 + $0x398] sm:$0xff]   ;;  %v3915_v46 = vld [vmem:[%s5184_s0 + $0x1a0] sm:$0xff]  }
  0x54   :  { %v3916_v47 = vld [vmem:[%s5184_s0 + $0x3a0] sm:$0xff]  }
  0x5a   :  { %3589 = vmatmul.mubr.msk.bf16.gmra.mrb[40].mxu0 %vm926_vm2, %v3853_v48  ;;  %3717 = vmatmul.mubr.msk.bf16.gmra.mrb[40].mxu1 %vm926_vm2, %v3854_v49  ;;  %v3917_v48 = vld [vmem:[%s5184_s0 + $0x1a8] sm:$0xff]  }
  0x5b   :  { %3592 = vmatprep.mubr.msk.bf16.mxu0 %vm926_vm2, %v3855_v50  ;;  %3720 = vmatprep.mubr.msk.bf16.mxu1 %vm926_vm2, %v3856_v51  ;;  %v3918_v49 = vld [vmem:[%s5184_s0 + $0x3a8] sm:$0xff]   ;;  %v3919_v50 = vld [vmem:[%s5184_s0 + $0x1b0] sm:$0xff]  }
  0x5c   :  { %v3920_v51 = vld [vmem:[%s5184_s0 + $0x3b0] sm:$0xff]  }
  0x62   :  { %3593 = vmatmul.mubr.msk.bf16.gmra.mrb[44].mxu0 %vm926_vm2, %v3857_v52  ;;  %3721 = vmatmul.mubr.msk.bf16.gmra.mrb[44].mxu1 %vm926_vm2, %v3858_v53 }
  0x63   :  { %3596 = vmatprep.mubr.msk.bf16.mxu0 %vm926_vm2, %v3859_v54  ;;  %3724 = vmatprep.mubr.msk.bf16.mxu1 %vm926_vm2, %v3860_v55 }
  0x6a   :  { %3597 = vmatmul.mubr.msk.bf16.gmra.mrb[48].mxu0 %vm926_vm2, %v3861_v56  ;;  %3725 = vmatmul.mubr.msk.bf16.gmra.mrb[48].mxu1 %vm926_vm2, %v3862_v57  ;;  %v3921_v56 = vld [vmem:[%s5184_s0 + $0x1b8] sm:$0xff]  }
  0x6b   :  { %3600 = vmatprep.mubr.msk.bf16.mxu0 %vm926_vm2, %v3863_v58  ;;  %3728 = vmatprep.mubr.msk.bf16.mxu1 %vm926_vm2, %v3864_v59  ;;  %v3922_v57 = vld [vmem:[%s5184_s0 + $0x3b8] sm:$0xff]  }
  0x72   :  { %3601 = vmatmul.mubr.msk.bf16.gmra.mrb[52].mxu0 %vm926_vm2, %v3865_v60  ;;  %3729 = vmatmul.mubr.msk.bf16.gmra.mrb[52].mxu1 %vm926_vm2, %v3866_v61  ;;  %v3923_v60 = vld [vmem:[%s5184_s0 + $0x1c0] sm:$0xff]  }
  0x73   :  { %3604 = vmatprep.mubr.msk.bf16.mxu0 %vm926_vm2, %v3867_v62  ;;  %3732 = vmatprep.mubr.msk.bf16.mxu1 %vm926_vm2, %v3868_v63  ;;  %v3924_v61 = vld [vmem:[%s5184_s0 + $0x3c0] sm:$0xff]  }
  0x7a   :  { %3605 = vmatmul.mubr.msk.bf16.gmra.mrb[56].mxu0 %vm926_vm2, %v3869_v0  ;;  %3733 = vmatmul.mubr.msk.bf16.gmra.mrb[56].mxu1 %vm926_vm2, %v3870_v1 }
  0x7b   :  { %3608 = vmatprep.mubr.msk.bf16.mxu0 %vm926_vm2, %v3871_v2  ;;  %3736 = vmatprep.mubr.msk.bf16.mxu1 %vm926_vm2, %v3872_v3 }
  0x82   :  { %3609 = vmatmul.mubr.msk.bf16.gmra.mrb[60].mxu0 %vm926_vm2, %v3873_v4  ;;  %3737 = vmatmul.mubr.msk.bf16.gmra.mrb[60].mxu1 %vm926_vm2, %v3874_v5  ;;  %v3925_v4 = vld [vmem:[%s5184_s0 + $0x1c8] sm:$0xff]  }
  0x83   :  { %3612 = vmatprep.mubr.msk.bf16.mxu0 %vm926_vm2, %v3875_v6  ;;  %3740 = vmatprep.mubr.msk.bf16.mxu1 %vm926_vm2, %v3876_v7  ;;  %v3926_v5 = vld [vmem:[%s5184_s0 + $0x3c8] sm:$0xff]  }
  0x8a   :  { %3613 = vmatmul.mubr.msk.bf16.gmra.mrb[64].mxu0 %vm926_vm2, %v3877_v8  ;;  %3741 = vmatmul.mubr.msk.bf16.gmra.mrb[64].mxu1 %vm926_vm2, %v3878_v9  ;;  %v3927_v8 = vld [vmem:[%s5184_s0 + $0x1d0] sm:$0xff]  }
  0x8b   :  { %3616 = vmatprep.mubr.msk.bf16.mxu0 %vm926_vm2, %v3879_v10  ;;  %3744 = vmatprep.mubr.msk.bf16.mxu1 %vm926_vm2, %v3880_v11  ;;  %v3928_v9 = vld [vmem:[%s5184_s0 + $0x3d0] sm:$0xff]  }
  0x92   :  { %3617 = vmatmul.mubr.msk.bf16.gmra.mrb[68].mxu0 %vm926_vm2, %v3881_v12  ;;  %3745 = vmatmul.mubr.msk.bf16.gmra.mrb[68].mxu1 %vm926_vm2, %v3882_v13 }
  0x93   :  { %3620 = vmatprep.mubr.msk.bf16.mxu0 %vm926_vm2, %v3883_v14  ;;  %3748 = vmatprep.mubr.msk.bf16.mxu1 %vm926_vm2, %v3884_v15 }
  0x9a   :  { %3621 = vmatmul.mubr.msk.bf16.gmra.mrb[72].mxu0 %vm926_vm2, %v3885_v16  ;;  %3749 = vmatmul.mubr.msk.bf16.gmra.mrb[72].mxu1 %vm926_vm2, %v3886_v17  ;;  %v3929_v16 = vld [vmem:[%s5184_s0 + $0x1d8] sm:$0xff]  }
  0x9b   :  { %3624 = vmatprep.mubr.msk.bf16.mxu0 %vm926_vm2, %v3887_v18  ;;  %3752 = vmatprep.mubr.msk.bf16.mxu1 %vm926_vm2, %v3888_v19  ;;  %v3930_v17 = vld [vmem:[%s5184_s0 + $0x3d8] sm:$0xff]  }
  0xa2   :  { %3625 = vmatmul.mubr.msk.bf16.gmra.mrb[76].mxu0 %vm926_vm2, %v3889_v20  ;;  %3753 = vmatmul.mubr.msk.bf16.gmra.mrb[76].mxu1 %vm926_vm2, %v3890_v21  ;;  %v3931_v20 = vld [vmem:[%s5184_s0 + $0x1e0] sm:$0xff]  }
  0xa3   :  { %3628 = vmatprep.mubr.msk.bf16.mxu0 %vm926_vm2, %v3891_v22  ;;  %3756 = vmatprep.mubr.msk.bf16.mxu1 %vm926_vm2, %v3892_v23  ;;  %v3932_v21 = vld [vmem:[%s5184_s0 + $0x3e0] sm:$0xff]  }
  0xaa   :  { %3629 = vmatmul.mubr.msk.bf16.gmra.mrb[80].mxu0 %vm926_vm2, %v3893_v24  ;;  %3757 = vmatmul.mubr.msk.bf16.gmra.mrb[80].mxu1 %vm926_vm2, %v3894_v25 }
  0xab   :  { %3632 = vmatprep.mubr.msk.bf16.mxu0 %vm926_vm2, %v3895_v26  ;;  %3760 = vmatprep.mubr.msk.bf16.mxu1 %vm926_vm2, %v3896_v27 }
  0xb2   :  { %3633 = vmatmul.mubr.msk.bf16.gmra.mrb[84].mxu0 %vm926_vm2, %v3897_v28  ;;  %3761 = vmatmul.mubr.msk.bf16.gmra.mrb[84].mxu1 %vm926_vm2, %v3898_v29  ;;  %v3933_v28 = vld [vmem:[%s5184_s0 + $0x1e8] sm:$0xff]  }
  0xb3   :  { %3636 = vmatprep.mubr.msk.bf16.mxu0 %vm926_vm2, %v3899_v30  ;;  %3764 = vmatprep.mubr.msk.bf16.mxu1 %vm926_vm2, %v3900_v31  ;;  %v3934_v29 = vld [vmem:[%s5184_s0 + $0x3e8] sm:$0xff]  }
  0xba   :  { %3637 = vmatmul.mubr.msk.bf16.gmra.mrb[88].mxu0 %vm926_vm2, %v3901_v32  ;;  %3765 = vmatmul.mubr.msk.bf16.gmra.mrb[88].mxu1 %vm926_vm2, %v3902_v33  ;;  %v3935_v32 = vld [vmem:[%s5184_s0 + $0x1f0] sm:$0xff]  }
  0xbb   :  { %3640 = vmatprep.mubr.msk.bf16.mxu0 %vm926_vm2, %v3903_v34  ;;  %3768 = vmatprep.mubr.msk.bf16.mxu1 %vm926_vm2, %v3904_v35  ;;  %v3936_v33 = vld [vmem:[%s5184_s0 + $0x3f0] sm:$0xff]  }
  0xc2   :  { %3641 = vmatmul.mubr.msk.bf16.gmra.mrb[92].mxu0 %vm926_vm2, %v3905_v36  ;;  %3769 = vmatmul.mubr.msk.bf16.gmra.mrb[92].mxu1 %vm926_vm2, %v3906_v37 }
  0xc3   :  { %3644 = vmatprep.mubr.msk.bf16.mxu0 %vm926_vm2, %v3907_v38  ;;  %3772 = vmatprep.mubr.msk.bf16.mxu1 %vm926_vm2, %v3908_v39 }
  0xca   :  { %3645 = vmatmul.mubr.msk.bf16.gmra.mrb[96].mxu0 %vm926_vm2, %v3909_v40  ;;  %3773 = vmatmul.mubr.msk.bf16.gmra.mrb[96].mxu1 %vm926_vm2, %v3910_v41  ;;  %v3937_v40 = vld [vmem:[%s5184_s0 + $0x1f8] sm:$0xff]  }
  0xcb   :  { %3648 = vmatprep.mubr.msk.bf16.mxu0 %vm926_vm2, %v3911_v42  ;;  %3776 = vmatprep.mubr.msk.bf16.mxu1 %vm926_vm2, %v3912_v43  ;;  %v3938_v41 = vld [vmem:[%s5184_s0 + $0x3f8] sm:$0xff]  }
  0xd2   :  { %3649 = vmatmul.mubr.msk.bf16.gmra.mrb[100].mxu0 %vm926_vm2, %v3913_v44  ;;  %3777 = vmatmul.mubr.msk.bf16.gmra.mrb[100].mxu1 %vm926_vm2, %v3914_v45 }
  0xd3   :  { %3652 = vmatprep.mubr.msk.bf16.mxu0 %vm926_vm2, %v3915_v46  ;;  %3780 = vmatprep.mubr.msk.bf16.mxu1 %vm926_vm2, %v3916_v47 }
  0xda   :  { %3653 = vmatmul.mubr.msk.bf16.gmra.mrb[104].mxu0 %vm926_vm2, %v3917_v48  ;;  %3781 = vmatmul.mubr.msk.bf16.gmra.mrb[104].mxu1 %vm926_vm2, %v3918_v49 }
  0xdb   :  { %3656 = vmatprep.mubr.msk.bf16.mxu0 %vm926_vm2, %v3919_v50  ;;  %3784 = vmatprep.mubr.msk.bf16.mxu1 %vm926_vm2, %v3920_v51 }
  0xdd   :  { %v4407_v52 = vpop.f32.mrb[0].mxu0  ;;  %v4409_v53 = vpop.f32.mrb[0].mxu1 }
  0xde   :  { %v4411_v54 = vpop.f32.mrb[1].mxu0  ;;  %v4413_v55 = vpop.f32.mrb[1].mxu1 }
  0xdf   :  { %v4421_v58 = vpop.f32.mrb[2].mxu0  ;;  %v4423_v59 = vpop.f32.mrb[2].mxu1 }
  0xe0   :  { %v4431_v62 = vpop.f32.mrb[3].mxu0  ;;  %v4433_v63 = vpop.f32.mrb[3].mxu1 }
  0xe2   :  { %3657 = vmatmul.mubr.msk.bf16.gmra.mrb[108].mxu0 %vm926_vm2, %v3921_v56  ;;  %3785 = vmatmul.mubr.msk.bf16.gmra.mrb[108].mxu1 %vm926_vm2, %v3922_v57 }
  0xe3   :  { %3660 = vmatprep.mubr.msk.bf16.mxu0 %vm926_vm2, %v3923_v60  ;;  %3788 = vmatprep.mubr.msk.bf16.mxu1 %vm926_vm2, %v3924_v61 }
  0xe5   :  { %v4439_v0 = vpop.f32.mrb[4].mxu0  ;;  %v4441_v1 = vpop.f32.mrb[4].mxu1 }
  0xe6   :  { %v4443_v2 = vpop.f32.mrb[5].mxu0  ;;  %v4445_v3 = vpop.f32.mrb[5].mxu1 }
  0xe7   :  { %v4453_v6 = vpop.f32.mrb[6].mxu0  ;;  %v4455_v7 = vpop.f32.mrb[6].mxu1 }
  0xe8   :  { %v4463_v10 = vpop.f32.mrb[7].mxu0  ;;  %v4465_v11 = vpop.f32.mrb[7].mxu1 }
  0xea   :  { %3661 = vmatmul.mubr.msk.bf16.gmra.mrb[112].mxu0 %vm926_vm2, %v3925_v4  ;;  %3789 = vmatmul.mubr.msk.bf16.gmra.mrb[112].mxu1 %vm926_vm2, %v3926_v5 }
  0xeb   :  { %3664 = vmatprep.mubr.msk.bf16.mxu0 %vm926_vm2, %v3927_v8  ;;  %3792 = vmatprep.mubr.msk.bf16.mxu1 %vm926_vm2, %v3928_v9 }
  0xed   :  { %v4471_v12 = vpop.f32.mrb[8].mxu0  ;;  %v4473_v13 = vpop.f32.mrb[8].mxu1 }
  0xee   :  { %v4475_v14 = vpop.f32.mrb[9].mxu0  ;;  %v4477_v15 = vpop.f32.mrb[9].mxu1 }
  0xef   :  { %v4485_v18 = vpop.f32.mrb[10].mxu0  ;;  %v4487_v19 = vpop.f32.mrb[10].mxu1 }
  0xf0   :  { %v4495_v22 = vpop.f32.mrb[11].mxu0  ;;  %v4497_v23 = vpop.f32.mrb[11].mxu1 }
  0xf2   :  { %3665 = vmatmul.mubr.msk.bf16.gmra.mrb[116].mxu0 %vm926_vm2, %v3929_v16  ;;  %3793 = vmatmul.mubr.msk.bf16.gmra.mrb[116].mxu1 %vm926_vm2, %v3930_v17 }
  0xf3   :  { %3668 = vmatprep.mubr.msk.bf16.mxu0 %vm926_vm2, %v3931_v20  ;;  %3796 = vmatprep.mubr.msk.bf16.mxu1 %vm926_vm2, %v3932_v21 }
  0xf5   :  { %v4503_v24 = vpop.f32.mrb[12].mxu0  ;;  %v4505_v25 = vpop.f32.mrb[12].mxu1 }
  0xf6   :  { %v4507_v26 = vpop.f32.mrb[13].mxu0  ;;  %v4509_v27 = vpop.f32.mrb[13].mxu1 }
  0xf7   :  { %v4517_v30 = vpop.f32.mrb[14].mxu0  ;;  %v4519_v31 = vpop.f32.mrb[14].mxu1 }
  0xf8   :  { %v4527_v34 = vpop.f32.mrb[15].mxu0  ;;  %v4529_v35 = vpop.f32.mrb[15].mxu1 }
  0xfa   :  { %3669 = vmatmul.mubr.msk.bf16.gmra.mrb[120].mxu0 %vm926_vm2, %v3933_v28  ;;  %3797 = vmatmul.mubr.msk.bf16.gmra.mrb[120].mxu1 %vm926_vm2, %v3934_v29 }
  0xfb   :  { %3672 = vmatprep.mubr.msk.bf16.mxu0 %vm926_vm2, %v3935_v32  ;;  %3800 = vmatprep.mubr.msk.bf16.mxu1 %vm926_vm2, %v3936_v33 }
  0xfd   :  { %v4535_v36 = vpop.f32.mrb[16].mxu0  ;;  %v4537_v37 = vpop.f32.mrb[16].mxu1 }
  0xfe   :  { %v4539_v38 = vpop.f32.mrb[17].mxu0  ;;  %v4541_v39 = vpop.f32.mrb[17].mxu1 }
  0xff   :  { %v4549_v42 = vpop.f32.mrb[18].mxu0  ;;  %v4551_v43 = vpop.f32.mrb[18].mxu1 }
 0x100   :  { %v4553_v44 = vpop.f32.mrb[19].mxu0  ;;  %v4555_v45 = vpop.f32.mrb[19].mxu1 }
 0x102   :  { %3673 = vmatmul.mubr.msk.bf16.gmra.mrb[124].mxu0 %vm926_vm2, %v3937_v40  ;;  %3801 = vmatmul.mubr.msk.bf16.gmra.mrb[124].mxu1 %vm926_vm2, %v3938_v41 }
 0x105   :  { %v4559_v46 = vpop.f32.mrb[20].mxu0  ;;  %v4561_v47 = vpop.f32.mrb[20].mxu1 }
 0x106   :  { %v4563_v48 = vpop.f32.mrb[21].mxu0  ;;  %v4565_v49 = vpop.f32.mrb[21].mxu1 }
 0x107   :  { %v4567_v50 = vpop.f32.mrb[22].mxu0  ;;  %v4569_v51 = vpop.f32.mrb[22].mxu1 }
 0x108   :  { %v4571_v56 = vpop.f32.mrb[23].mxu0  ;;  %v4573_v57 = vpop.f32.mrb[23].mxu1 }
 0x109   :  { %5187 = vst [vmem:[#allocation2_spill] sm:$0xff] %v4573_v57 }
 0x10d   :  { %v4575_v60 = vpop.f32.mrb[24].mxu0  ;;  %v4577_v61 = vpop.f32.mrb[24].mxu1 }
 0x10e   :  { %5188 = vst [vmem:[#allocation3_spill] sm:$0xff] %v4575_v60  ;;  %5189 = vst [vmem:[#allocation4_spill] sm:$0xff] %v4577_v61  ;;  %v4579_v4 = vpop.f32.mrb[25].mxu0  ;;  %v4581_v5 = vpop.f32.mrb[25].mxu1 }
 0x10f   :  { %5190 = vst [vmem:[#allocation5_spill] sm:$0xff] %v4579_v4  ;;  %5191 = vst [vmem:[#allocation6_spill] sm:$0xff] %v4581_v5  ;;  %v4583_v8 = vpop.f32.mrb[26].mxu0  ;;  %v4585_v9 = vpop.f32.mrb[26].mxu1 }
 0x110   :  { %5192 = vst [vmem:[#allocation7_spill] sm:$0xff] %v4583_v8  ;;  %5193 = vst [vmem:[#allocation8_spill] sm:$0xff] %v4585_v9  ;;  %v4587_v16 = vpop.f32.mrb[27].mxu0  ;;  %v4589_v17 = vpop.f32.mrb[27].mxu1 }
 0x111   :  { %5194 = vst [vmem:[#allocation9_spill] sm:$0xff] %v4587_v16  ;;  %5195 = vst [vmem:[#allocation10_spill] sm:$0xff] %v4589_v17 }
 0x115   :  { %v4591_v20 = vpop.f32.mrb[28].mxu0  ;;  %v4593_v21 = vpop.f32.mrb[28].mxu1 }
 0x116   :  { %5196 = vst [vmem:[#allocation11_spill] sm:$0xff] %v4591_v20  ;;  %5197 = vst [vmem:[#allocation12_spill] sm:$0xff] %v4593_v21  ;;  %v4595_v28 = vpop.f32.mrb[29].mxu0  ;;  %v4597_v29 = vpop.f32.mrb[29].mxu1 }
 0x117   :  { %5198 = vst [vmem:[#allocation13_spill] sm:$0xff] %v4595_v28  ;;  %5199 = vst [vmem:[#allocation14_spill] sm:$0xff] %v4597_v29  ;;  %v4599_v32 = vpop.f32.mrb[30].mxu0  ;;  %v4601_v33 = vpop.f32.mrb[30].mxu1 }
 0x118   :  { %5200 = vst [vmem:[#allocation15_spill] sm:$0xff] %v4599_v32  ;;  %5201 = vst [vmem:[#allocation16_spill] sm:$0xff] %v4601_v33  ;;  %v4603_v40 = vpop.f32.mrb[31].mxu0  ;;  %v4605_v41 = vpop.f32.mrb[31].mxu1 }
 0x119   :  { %5202 = vst [vmem:[#allocation17_spill] sm:$0xff] %v4603_v40  ;;  %5203 = vst [vmem:[#allocation18_spill] sm:$0xff] %v4605_v41 }
 0x11d   :  { %v4607_v9 = vpop.f32.mrb[32].mxu0  ;;  %v4609_v16 = vpop.f32.mrb[32].mxu1 }
 0x11e   :  { %5204 = vst [vmem:[#allocation19_spill] sm:$0xff] %v4607_v9  ;;  %5205 = vst [vmem:[#allocation20_spill] sm:$0xff] %v4609_v16  ;;  %v4611_v17 = vpop.f32.mrb[33].mxu0  ;;  %v4613_v20 = vpop.f32.mrb[33].mxu1 }
 0x11f   :  { %5206 = vst [vmem:[#allocation21_spill] sm:$0xff] %v4611_v17  ;;  %5207 = vst [vmem:[#allocation22_spill] sm:$0xff] %v4613_v20  ;;  %v4615_v21 = vpop.f32.mrb[34].mxu0  ;;  %v4617_v28 = vpop.f32.mrb[34].mxu1 }
 0x120   :  { %5208 = vst [vmem:[#allocation23_spill] sm:$0xff] %v4615_v21  ;;  %5209 = vst [vmem:[#allocation24_spill] sm:$0xff] %v4617_v28  ;;  %v4619_v29 = vpop.f32.mrb[35].mxu0  ;;  %v4621_v32 = vpop.f32.mrb[35].mxu1 }
 0x121   :  { %5210 = vst [vmem:[#allocation25_spill] sm:$0xff] %v4619_v29  ;;  %5211 = vst [vmem:[#allocation26_spill] sm:$0xff] %v4621_v32 }
 0x125   :  { %v4623_v33 = vpop.f32.mrb[36].mxu0  ;;  %v4625_v40 = vpop.f32.mrb[36].mxu1 }
 0x126   :  { %5212 = vst [vmem:[#allocation27_spill] sm:$0xff] %v4623_v33  ;;  %5213 = vst [vmem:[#allocation28_spill] sm:$0xff] %v4625_v40  ;;  %v4627_v41 = vpop.f32.mrb[37].mxu0  ;;  %v4629_v9 = vpop.f32.mrb[37].mxu1 }
 0x127   :  { %5214 = vst [vmem:[#allocation29_spill] sm:$0xff] %v4627_v41  ;;  %5215 = vst [vmem:[#allocation30_spill] sm:$0xff] %v4629_v9  ;;  %v4631_v16 = vpop.f32.mrb[38].mxu0  ;;  %v4633_v17 = vpop.f32.mrb[38].mxu1 }
 0x128   :  { %5216 = vst [vmem:[#allocation31_spill] sm:$0xff] %v4631_v16  ;;  %5217 = vst [vmem:[#allocation32_spill] sm:$0xff] %v4633_v17  ;;  %v4635_v20 = vpop.f32.mrb[39].mxu0  ;;  %v4637_v21 = vpop.f32.mrb[39].mxu1 }
 0x129   :  { %5218 = vst [vmem:[#allocation33_spill] sm:$0xff] %v4635_v20  ;;  %5219 = vst [vmem:[#allocation34_spill] sm:$0xff] %v4637_v21 }
 0x12d   :  { %v4639_v28 = vpop.f32.mrb[40].mxu0  ;;  %v4641_v29 = vpop.f32.mrb[40].mxu1 }
 0x12e   :  { %5220 = vst [vmem:[#allocation35_spill] sm:$0xff] %v4639_v28  ;;  %5221 = vst [vmem:[#allocation36_spill] sm:$0xff] %v4641_v29  ;;  %v4643_v32 = vpop.f32.mrb[41].mxu0  ;;  %v4645_v33 = vpop.f32.mrb[41].mxu1 }
 0x12f   :  { %5222 = vst [vmem:[#allocation37_spill] sm:$0xff] %v4643_v32  ;;  %5223 = vst [vmem:[#allocation38_spill] sm:$0xff] %v4645_v33  ;;  %v4647_v40 = vpop.f32.mrb[42].mxu0  ;;  %v4649_v41 = vpop.f32.mrb[42].mxu1 }
 0x130   :  { %5224 = vst [vmem:[#allocation39_spill] sm:$0xff] %v4647_v40  ;;  %5225 = vst [vmem:[#allocation40_spill] sm:$0xff] %v4649_v41  ;;  %v4651_v9 = vpop.f32.mrb[43].mxu0  ;;  %v4653_v16 = vpop.f32.mrb[43].mxu1 }
 0x131   :  { %5226 = vst [vmem:[#allocation41_spill] sm:$0xff] %v4651_v9  ;;  %5227 = vst [vmem:[#allocation42_spill] sm:$0xff] %v4653_v16 }
 0x135   :  { %v4655_v17 = vpop.f32.mrb[44].mxu0  ;;  %v4657_v20 = vpop.f32.mrb[44].mxu1 }
 0x136   :  { %5228 = vst [vmem:[#allocation43_spill] sm:$0xff] %v4655_v17  ;;  %5229 = vst [vmem:[#allocation44_spill] sm:$0xff] %v4657_v20  ;;  %v4659_v21 = vpop.f32.mrb[45].mxu0  ;;  %v4661_v28 = vpop.f32.mrb[45].mxu1 }
 0x137   :  { %5230 = vst [vmem:[#allocation45_spill] sm:$0xff] %v4659_v21  ;;  %5231 = vst [vmem:[#allocation46_spill] sm:$0xff] %v4661_v28  ;;  %v4663_v29 = vpop.f32.mrb[46].mxu0  ;;  %v4665_v32 = vpop.f32.mrb[46].mxu1 }
 0x138   :  { %5232 = vst [vmem:[#allocation47_spill] sm:$0xff] %v4663_v29  ;;  %5233 = vst [vmem:[#allocation48_spill] sm:$0xff] %v4665_v32  ;;  %v4667_v33 = vpop.f32.mrb[47].mxu0  ;;  %v4669_v40 = vpop.f32.mrb[47].mxu1 }
 0x139   :  { %5234 = vst [vmem:[#allocation49_spill] sm:$0xff] %v4667_v33  ;;  %5235 = vst [vmem:[#allocation50_spill] sm:$0xff] %v4669_v40 }
 0x13d   :  { %v4671_v41 = vpop.f32.mrb[48].mxu0  ;;  %v4673_v9 = vpop.f32.mrb[48].mxu1 }
 0x13e   :  { %5236 = vst [vmem:[#allocation51_spill] sm:$0xff] %v4671_v41  ;;  %5237 = vst [vmem:[#allocation52_spill] sm:$0xff] %v4673_v9  ;;  %v4675_v16 = vpop.f32.mrb[49].mxu0  ;;  %v4677_v17 = vpop.f32.mrb[49].mxu1 }
 0x13f   :  { %5238 = vst [vmem:[#allocation53_spill] sm:$0xff] %v4675_v16  ;;  %5239 = vst [vmem:[#allocation54_spill] sm:$0xff] %v4677_v17  ;;  %v4679_v20 = vpop.f32.mrb[50].mxu0  ;;  %v4681_v21 = vpop.f32.mrb[50].mxu1 }
 0x140   :  { %5240 = vst [vmem:[#allocation55_spill] sm:$0xff] %v4679_v20  ;;  %5241 = vst [vmem:[#allocation56_spill] sm:$0xff] %v4681_v21  ;;  %v4683_v28 = vpop.f32.mrb[51].mxu0  ;;  %v4685_v29 = vpop.f32.mrb[51].mxu1 }
 0x141   :  { %5242 = vst [vmem:[#allocation57_spill] sm:$0xff] %v4683_v28  ;;  %5243 = vst [vmem:[#allocation58_spill] sm:$0xff] %v4685_v29 }
 0x145   :  { %v4687_v32 = vpop.f32.mrb[52].mxu0  ;;  %v4689_v33 = vpop.f32.mrb[52].mxu1 }
 0x146   :  { %5244 = vst [vmem:[#allocation59_spill] sm:$0xff] %v4687_v32  ;;  %5245 = vst [vmem:[#allocation60_spill] sm:$0xff] %v4689_v33  ;;  %v4691_v40 = vpop.f32.mrb[53].mxu0  ;;  %v4693_v41 = vpop.f32.mrb[53].mxu1 }
 0x147   :  { %5246 = vst [vmem:[#allocation61_spill] sm:$0xff] %v4691_v40  ;;  %5247 = vst [vmem:[#allocation62_spill] sm:$0xff] %v4693_v41  ;;  %v4695_v9 = vpop.f32.mrb[54].mxu0  ;;  %v4697_v16 = vpop.f32.mrb[54].mxu1 }
 0x148   :  { %5248 = vst [vmem:[#allocation63_spill] sm:$0xff] %v4695_v9  ;;  %5249 = vst [vmem:[#allocation64_spill] sm:$0xff] %v4697_v16  ;;  %v4699_v17 = vpop.f32.mrb[55].mxu0  ;;  %v4701_v20 = vpop.f32.mrb[55].mxu1 }
 0x149   :  { %5250 = vst [vmem:[#allocation65_spill] sm:$0xff] %v4699_v17  ;;  %5251 = vst [vmem:[#allocation66_spill] sm:$0xff] %v4701_v20 }
 0x14d   :  { %v4703_v21 = vpop.f32.mrb[56].mxu0  ;;  %v4705_v28 = vpop.f32.mrb[56].mxu1 }
 0x14e   :  { %5252 = vst [vmem:[#allocation67_spill] sm:$0xff] %v4703_v21  ;;  %5253 = vst [vmem:[#allocation68_spill] sm:$0xff] %v4705_v28  ;;  %v4707_v29 = vpop.f32.mrb[57].mxu0  ;;  %v4709_v32 = vpop.f32.mrb[57].mxu1 }
 0x14f   :  { %5254 = vst [vmem:[#allocation69_spill] sm:$0xff] %v4707_v29  ;;  %5255 = vst [vmem:[#allocation70_spill] sm:$0xff] %v4709_v32  ;;  %v4711_v33 = vpop.f32.mrb[58].mxu0  ;;  %v4713_v40 = vpop.f32.mrb[58].mxu1 }
 0x150   :  { %5256 = vst [vmem:[#allocation71_spill] sm:$0xff] %v4711_v33  ;;  %5257 = vst [vmem:[#allocation72_spill] sm:$0xff] %v4713_v40  ;;  %v4715_v41 = vpop.f32.mrb[59].mxu0  ;;  %v4717_v9 = vpop.f32.mrb[59].mxu1 }
 0x151   :  { %5258 = vst [vmem:[#allocation73_spill] sm:$0xff] %v4715_v41  ;;  %5259 = vst [vmem:[#allocation74_spill] sm:$0xff] %v4717_v9 }
 0x155   :  { %v4719_v16 = vpop.f32.mrb[60].mxu0  ;;  %v4721_v17 = vpop.f32.mrb[60].mxu1 }
 0x156   :  { %5260 = vst [vmem:[#allocation75_spill] sm:$0xff] %v4719_v16  ;;  %5261 = vst [vmem:[#allocation76_spill] sm:$0xff] %v4721_v17  ;;  %v4723_v20 = vpop.f32.mrb[61].mxu0  ;;  %v4725_v21 = vpop.f32.mrb[61].mxu1 }
 0x157   :  { %5262 = vst [vmem:[#allocation77_spill] sm:$0xff] %v4723_v20  ;;  %5263 = vst [vmem:[#allocation78_spill] sm:$0xff] %v4725_v21  ;;  %v4727_v28 = vpop.f32.mrb[62].mxu0  ;;  %v4729_v29 = vpop.f32.mrb[62].mxu1  ;;  %v4740_v21 = vld [vmem:[%s5185_s2] ss:$0 sm:$0xff] }
 0x158   :  { %5264 = vst [vmem:[#allocation79_spill] sm:$0xff] %v4727_v28  ;;  %5265 = vst [vmem:[#allocation80_spill] sm:$0xff] %v4729_v29  ;;  %v4731_v32 = vpop.f32.mrb[63].mxu0  ;;  %v4733_v33 = vpop.f32.mrb[63].mxu1 }
 0x159   :  { %5266 = vst [vmem:[#allocation81_spill] sm:$0xff] %v4731_v32  ;;  %5267 = vst [vmem:[#allocation82_spill] sm:$0xff] %v4733_v33 }
 0x15d   :  { %v3614_v40 = vpop.f32.mrb[64].mxu0  ;;  %v3742_v41 = vpop.f32.mrb[64].mxu1 }
 0x15e   :  { %v2377_v9 = vmax.f32 %v4407_v52, %v3614_v40  ;;  %v2441_v16 = vmax.f32 %v4409_v53, %v3742_v41  ;;  %v1608_v8 = vpop.f32.mrb[65].mxu0  ;;  %v2120_v17 = vpop.f32.mrb[65].mxu1 }
 0x15f   :  { %v2375_v28 = vmax.f32 %v4411_v54, %v1608_v8  ;;  %v2439_v29 = vmax.f32 %v4413_v55, %v2120_v17  ;;  %v3615_v32 = vpop.f32.mrb[66].mxu0  ;;  %v3743_v20 = vpop.f32.mrb[66].mxu1 }
 0x160   :  { %v2505_v33 = vmax.f32 %v2377_v9, %v2441_v16  ;;  %v2378_v5 = vmax.f32 %v4421_v58, %v3615_v32  ;;  %v2442_v52 = vmax.f32 %v4423_v59, %v3743_v20  ;;  %v1611_v40 = vpop.f32.mrb[67].mxu0  ;;  %v2123_v53 = vpop.f32.mrb[67].mxu1 }
 0x161   :  { %v2503_v41 = vmax.f32 %v2375_v28, %v2439_v29  ;;  %v2376_v4 = vmax.f32 %v4431_v62, %v1611_v40  ;;  %v2440_v61 = vmax.f32 %v4433_v63, %v2123_v53 }
 0x162   :  { %v2576_v60 = vadd.f32 %v4740_v21, %v2505_v33  ;;  %v2506_v57 = vmax.f32 %v2378_v5, %v2442_v52 }
 0x163   :  { %v2574_v54 = vadd.f32 %v4740_v21, %v2503_v41  ;;  %v2504_v55 = vmax.f32 %v2376_v4, %v2440_v61 }
 0x164   :  { %v2640_v8 = vmax.f32 %v2576_v60, 0.0  ;;  %v2577_v9 = vadd.f32 %v4740_v21, %v2506_v57 }
 0x165   :  { %v2638_v58 = vmax.f32 %v2574_v54, 0.0  ;;  %v2575_v59 = vadd.f32 %v4740_v21, %v2504_v55  ;;  %v3618_v16 = vpop.f32.mrb[68].mxu0  ;;  %v3746_v17 = vpop.f32.mrb[68].mxu1 }
 0x166   :  { %v3352_v20 = vpack.c.bf16 %v2640_v8, %v2640_v8  ;;  %v2641_v28 = vmax.f32 %v2577_v9, 0.0  ;;  %v2381_v62 = vmax.f32 %v4439_v0, %v3618_v16  ;;  %v2445_v63 = vmax.f32 %v4441_v1, %v3746_v17  ;;  %v1624_v29 = vpop.f32.mrb[69].mxu0  ;;  %v2136_v5 = vpop.f32.mrb[69].mxu1 }
 0x167   :  { %v3350_v32 = vpack.c.bf16 %v2638_v58, %v2638_v58  ;;  %v2639_v33 = vmax.f32 %v2575_v59, 0.0  ;;  %v2379_v60 = vmax.f32 %v4443_v2, %v1624_v29  ;;  %v2443_v57 = vmax.f32 %v4445_v3, %v2136_v5  ;;  %v3619_v61 = vpop.f32.mrb[70].mxu0  ;;  %v3747_v4 = vpop.f32.mrb[70].mxu1 }
 0x168   :  { %2961 = vst.msk [vmem:[%s5186_s3 + $0x8] sm:$0xf] %vm2958_vm3, %v3352_v20  ;;  %v3353_v52 = vpack.c.bf16 %v2641_v28, %v2641_v28  ;;  %v2509_v40 = vmax.f32 %v2381_v62, %v2445_v63  ;;  %v2382_v0 = vmax.f32 %v4453_v6, %v3619_v61  ;;  %v2446_v1 = vmax.f32 %v4455_v7, %v3747_v4  ;;  %v1627_v53 = vpop.f32.mrb[71].mxu0  ;;  %v2139_v41 = vpop.f32.mrb[71].mxu1 }
 0x169   :  { %2959 = vst.msk [vmem:[%s5186_s3] sm:$0xf] %vm2958_vm3, %v3350_v32  ;;  %v3351_v2 = vpack.c.bf16 %v2639_v33, %v2639_v33  ;;  %v2507_v3 = vmax.f32 %v2379_v60, %v2443_v57  ;;  %v2380_v54 = vmax.f32 %v4463_v10, %v1627_v53  ;;  %v2444_v55 = vmax.f32 %v4465_v11, %v2139_v41 }
 0x16a   :  { %2962 = vst.msk [vmem:[%s5186_s3 + $0xc] sm:$0xf] %vm2958_vm3, %v3353_v52  ;;  %v2580_v6 = vadd.f32 %v4740_v21, %v2509_v40  ;;  %v2510_v7 = vmax.f32 %v2382_v0, %v2446_v1 }
 0x16b   :  { %2960 = vst.msk [vmem:[%s5186_s3 + $0x4] sm:$0xf] %vm2958_vm3, %v3351_v2  ;;  %v2578_v8 = vadd.f32 %v4740_v21, %v2507_v3  ;;  %v2508_v9 = vmax.f32 %v2380_v54, %v2444_v55 }
 0x16c   :  { %v2644_v58 = vmax.f32 %v2580_v6, 0.0  ;;  %v2581_v10 = vadd.f32 %v4740_v21, %v2510_v7 }
 0x16d   :  { %v2642_v11 = vmax.f32 %v2578_v8, 0.0  ;;  %v2579_v59 = vadd.f32 %v4740_v21, %v2508_v9  ;;  %v3622_v16 = vpop.f32.mrb[72].mxu0  ;;  %v3750_v17 = vpop.f32.mrb[72].mxu1 }
 0x16e   :  { %v3356_v20 = vpack.c.bf16 %v2644_v58, %v2644_v58  ;;  %v2645_v28 = vmax.f32 %v2581_v10, 0.0  ;;  %v2385_v62 = vmax.f32 %v4471_v12, %v3622_v16  ;;  %v2449_v63 = vmax.f32 %v4473_v13, %v3750_v17  ;;  %v1640_v29 = vpop.f32.mrb[73].mxu0  ;;  %v2152_v5 = vpop.f32.mrb[73].mxu1 }
 0x16f   :  { %v3354_v32 = vpack.c.bf16 %v2642_v11, %v2642_v11  ;;  %v2643_v33 = vmax.f32 %v2579_v59, 0.0  ;;  %v2383_v60 = vmax.f32 %v4475_v14, %v1640_v29  ;;  %v2447_v57 = vmax.f32 %v4477_v15, %v2152_v5  ;;  %v3623_v61 = vpop.f32.mrb[74].mxu0  ;;  %v3751_v4 = vpop.f32.mrb[74].mxu1 }
 0x170   :  { %2965 = vst.msk [vmem:[%s5186_s3 + $0x18] sm:$0xf] %vm2958_vm3, %v3356_v20  ;;  %v3357_v52 = vpack.c.bf16 %v2645_v28, %v2645_v28  ;;  %v2513_v40 = vmax.f32 %v2385_v62, %v2449_v63  ;;  %v2386_v12 = vmax.f32 %v4485_v18, %v3623_v61  ;;  %v2450_v13 = vmax.f32 %v4487_v19, %v3751_v4  ;;  %v1643_v0 = vpop.f32.mrb[75].mxu0  ;;  %v2155_v1 = vpop.f32.mrb[75].mxu1 }
 0x171   :  { %2963 = vst.msk [vmem:[%s5186_s3 + $0x10] sm:$0xf] %vm2958_vm3, %v3354_v32  ;;  %v3355_v14 = vpack.c.bf16 %v2643_v33, %v2643_v33  ;;  %v2511_v15 = vmax.f32 %v2383_v60, %v2447_v57  ;;  %v2384_v53 = vmax.f32 %v4495_v22, %v1643_v0  ;;  %v2448_v41 = vmax.f32 %v4497_v23, %v2155_v1 }
 0x172   :  { %2966 = vst.msk [vmem:[%s5186_s3 + $0x1c] sm:$0xf] %vm2958_vm3, %v3357_v52  ;;  %v2584_v18 = vadd.f32 %v4740_v21, %v2513_v40  ;;  %v2514_v19 = vmax.f32 %v2386_v12, %v2450_v13 }
 0x173   :  { %2964 = vst.msk [vmem:[%s5186_s3 + $0x14] sm:$0xf] %vm2958_vm3, %v3355_v14  ;;  %v2582_v2 = vadd.f32 %v4740_v21, %v2511_v15  ;;  %v2512_v3 = vmax.f32 %v2384_v53, %v2448_v41 }
 0x174   :  { %v2648_v54 = vmax.f32 %v2584_v18, 0.0  ;;  %v2585_v22 = vadd.f32 %v4740_v21, %v2514_v19 }
 0x175   :  { %v2646_v23 = vmax.f32 %v2582_v2, 0.0  ;;  %v2583_v55 = vadd.f32 %v4740_v21, %v2512_v3  ;;  %v3626_v6 = vpop.f32.mrb[76].mxu0  ;;  %v3754_v7 = vpop.f32.mrb[76].mxu1 }
 0x176   :  { %v3360_v8 = vpack.c.bf16 %v2648_v54, %v2648_v54  ;;  %v2649_v9 = vmax.f32 %v2585_v22, 0.0  ;;  %v2389_v58 = vmax.f32 %v4503_v24, %v3626_v6  ;;  %v2453_v10 = vmax.f32 %v4505_v25, %v3754_v7  ;;  %v1656_v11 = vpop.f32.mrb[77].mxu0  ;;  %v2168_v59 = vpop.f32.mrb[77].mxu1 }
 0x177   :  { %v3358_v16 = vpack.c.bf16 %v2646_v23, %v2646_v23  ;;  %v2647_v17 = vmax.f32 %v2583_v55, 0.0  ;;  %v2387_v20 = vmax.f32 %v4507_v26, %v1656_v11  ;;  %v2451_v28 = vmax.f32 %v4509_v27, %v2168_v59  ;;  %v3627_v62 = vpop.f32.mrb[78].mxu0  ;;  %v3755_v63 = vpop.f32.mrb[78].mxu1 }
 0x178   :  { %2969 = vst.msk [vmem:[%s5186_s3 + $0x28] sm:$0xf] %vm2958_vm3, %v3360_v8  ;;  %v3361_v29 = vpack.c.bf16 %v2649_v9, %v2649_v9  ;;  %v2517_v5 = vmax.f32 %v2389_v58, %v2453_v10  ;;  %v2390_v24 = vmax.f32 %v4517_v30, %v3627_v62  ;;  %v2454_v25 = vmax.f32 %v4519_v31, %v3755_v63  ;;  %v1659_v32 = vpop.f32.mrb[79].mxu0  ;;  %v2171_v33 = vpop.f32.mrb[79].mxu1 }
 0x179   :  { %2967 = vst.msk [vmem:[%s5186_s3 + $0x20] sm:$0xf] %vm2958_vm3, %v3358_v16  ;;  %v3359_v26 = vpack.c.bf16 %v2647_v17, %v2647_v17  ;;  %v2515_v27 = vmax.f32 %v2387_v20, %v2451_v28  ;;  %v2388_v60 = vmax.f32 %v4527_v34, %v1659_v32  ;;  %v2452_v57 = vmax.f32 %v4529_v35, %v2171_v33 }
 0x17a   :  { %2970 = vst.msk [vmem:[%s5186_s3 + $0x2c] sm:$0xf] %vm2958_vm3, %v3361_v29  ;;  %v2588_v30 = vadd.f32 %v4740_v21, %v2517_v5  ;;  %v2518_v31 = vmax.f32 %v2390_v24, %v2454_v25 }
 0x17b   :  { %2968 = vst.msk [vmem:[%s5186_s3 + $0x24] sm:$0xf] %vm2958_vm3, %v3359_v26  ;;  %v2586_v61 = vadd.f32 %v4740_v21, %v2515_v27  ;;  %v2516_v4 = vmax.f32 %v2388_v60, %v2452_v57 }
 0x17c   :  { %v2652_v52 = vmax.f32 %v2588_v30, 0.0  ;;  %v2589_v34 = vadd.f32 %v4740_v21, %v2518_v31 }
 0x17d   :  { %v2650_v35 = vmax.f32 %v2586_v61, 0.0  ;;  %v2587_v40 = vadd.f32 %v4740_v21, %v2516_v4  ;;  %v3630_v12 = vpop.f32.mrb[80].mxu0  ;;  %v3758_v13 = vpop.f32.mrb[80].mxu1  ;;  %v5268_v4 = vld [vmem:[#allocation2_spill] sm:$0xff] }
 0x17e   :  { %v3364_v0 = vpack.c.bf16 %v2652_v52, %v2652_v52  ;;  %v2653_v1 = vmax.f32 %v2589_v34, 0.0  ;;  %v2393_v14 = vmax.f32 %v4535_v36, %v3630_v12  ;;  %v2457_v15 = vmax.f32 %v4537_v37, %v3758_v13  ;;  %v1672_v53 = vpop.f32.mrb[81].mxu0  ;;  %v2184_v41 = vpop.f32.mrb[81].mxu1 }
 0x17f   :  { %v3362_v18 = vpack.c.bf16 %v2650_v35, %v2650_v35  ;;  %v2651_v19 = vmax.f32 %v2587_v40, 0.0  ;;  %v2391_v2 = vmax.f32 %v4539_v38, %v1672_v53  ;;  %v2455_v3 = vmax.f32 %v4541_v39, %v2184_v41  ;;  %v3631_v54 = vpop.f32.mrb[82].mxu0  ;;  %v3759_v22 = vpop.f32.mrb[82].mxu1  ;;  %v5269_v53 = vld [vmem:[#allocation3_spill] sm:$0xff] }
 0x180   :  { %2973 = vst.msk [vmem:[%s5186_s3 + $0x38] sm:$0xf] %vm2958_vm3, %v3364_v0  ;;  %v3365_v23 = vpack.c.bf16 %v2653_v1, %v2653_v1  ;;  %v2521_v55 = vmax.f32 %v2393_v14, %v2457_v15  ;;  %v2394_v36 = vmax.f32 %v4549_v42, %v3631_v54  ;;  %v2458_v37 = vmax.f32 %v4551_v43, %v3759_v22  ;;  %v1675_v6 = vpop.f32.mrb[83].mxu0  ;;  %v2187_v7 = vpop.f32.mrb[83].mxu1 }
 0x181   :  { %2971 = vst.msk [vmem:[%s5186_s3 + $0x30] sm:$0xf] %vm2958_vm3, %v3362_v18  ;;  %v3363_v38 = vpack.c.bf16 %v2651_v19, %v2651_v19  ;;  %v2519_v39 = vmax.f32 %v2391_v2, %v2455_v3  ;;  %v2392_v8 = vmax.f32 %v4553_v44, %v1675_v6  ;;  %v2456_v9 = vmax.f32 %v4555_v45, %v2187_v7  ;;  %v5270_v18 = vld [vmem:[#allocation4_spill] sm:$0xff] }
 0x182   :  { %2974 = vst.msk [vmem:[%s5186_s3 + $0x3c] sm:$0xf] %vm2958_vm3, %v3365_v23  ;;  %v2592_v42 = vadd.f32 %v4740_v21, %v2521_v55  ;;  %v2522_v43 = vmax.f32 %v2394_v36, %v2458_v37  ;;  %v5271_v23 = vld [vmem:[#allocation5_spill] sm:$0xff]  ;;  %v5272_v36 = vld [vmem:[#allocation6_spill] sm:$0xff] }
 0x183   :  { %2972 = vst.msk [vmem:[%s5186_s3 + $0x34] sm:$0xf] %vm2958_vm3, %v3363_v38  ;;  %v2590_v58 = vadd.f32 %v4740_v21, %v2519_v39  ;;  %v2520_v10 = vmax.f32 %v2392_v8, %v2456_v9  ;;  %v5273_v8 = vld [vmem:[#allocation7_spill] sm:$0xff] }
 0x184   :  { %v2656_v11 = vmax.f32 %v2592_v42, 0.0  ;;  %v2593_v44 = vadd.f32 %v4740_v21, %v2522_v43  ;;  %v5274_v42 = vld [vmem:[#allocation8_spill] sm:$0xff] }
 0x185   :  { %v2654_v45 = vmax.f32 %v2590_v58, 0.0  ;;  %v2591_v59 = vadd.f32 %v4740_v21, %v2520_v10  ;;  %v3634_v16 = vpop.f32.mrb[84].mxu0  ;;  %v3762_v17 = vpop.f32.mrb[84].mxu1 }
 0x186   :  { %v3368_v20 = vpack.c.bf16 %v2656_v11, %v2656_v11  ;;  %v2657_v28 = vmax.f32 %v2593_v44, 0.0  ;;  %v2397_v62 = vmax.f32 %v4559_v46, %v3634_v16  ;;  %v2461_v63 = vmax.f32 %v4561_v47, %v3762_v17  ;;  %v1688_v29 = vpop.f32.mrb[85].mxu0  ;;  %v2200_v5 = vpop.f32.mrb[85].mxu1  ;;  %v5276_v16 = vld [vmem:[#allocation10_spill] sm:$0xff] }
 0x187   :  { %v3366_v24 = vpack.c.bf16 %v2654_v45, %v2654_v45  ;;  %v2655_v25 = vmax.f32 %v2591_v59, 0.0  ;;  %v2395_v32 = vmax.f32 %v4563_v48, %v1688_v29  ;;  %v2459_v33 = vmax.f32 %v4565_v49, %v2200_v5  ;;  %v3635_v26 = vpop.f32.mrb[86].mxu0  ;;  %v3763_v27 = vpop.f32.mrb[86].mxu1  ;;  %v5275_v45 = vld [vmem:[#allocation9_spill] sm:$0xff] }
 0x188   :  { %2977 = vst.msk [vmem:[%s5186_s3 + $0x48] sm:$0xf] %vm2958_vm3, %v3368_v20  ;;  %v3369_v60 = vpack.c.bf16 %v2657_v28, %v2657_v28  ;;  %v2525_v57 = vmax.f32 %v2397_v62, %v2461_v63  ;;  %v2398_v46 = vmax.f32 %v4567_v50, %v3635_v26  ;;  %v2462_v47 = vmax.f32 %v4569_v51, %v3763_v27  ;;  %v1691_v30 = vpop.f32.mrb[87].mxu0  ;;  %v2203_v31 = vpop.f32.mrb[87].mxu1 }
 0x189   :  { %2975 = vst.msk [vmem:[%s5186_s3 + $0x40] sm:$0xf] %vm2958_vm3, %v3366_v24  ;;  %v3367_v48 = vpack.c.bf16 %v2655_v25, %v2655_v25  ;;  %v2523_v49 = vmax.f32 %v2395_v32, %v2459_v33  ;;  %v2396_v61 = vmax.f32 %v4571_v56, %v1691_v30  ;;  %v2460_v52 = vmax.f32 %v5268_v4, %v2203_v31 }
 0x18a   :  { %2978 = vst.msk [vmem:[%s5186_s3 + $0x4c] sm:$0xf] %vm2958_vm3, %v3369_v60  ;;  %v2596_v50 = vadd.f32 %v4740_v21, %v2525_v57  ;;  %v2526_v51 = vmax.f32 %v2398_v46, %v2462_v47  ;;  %v5277_v60 = vld [vmem:[#allocation11_spill] sm:$0xff]  ;;  %v5278_v46 = vld [vmem:[#allocation12_spill] sm:$0xff] }
 0x18b   :  { %2976 = vst.msk [vmem:[%s5186_s3 + $0x44] sm:$0xf] %vm2958_vm3, %v3367_v48  ;;  %v2594_v34 = vadd.f32 %v4740_v21, %v2523_v49  ;;  %v2524_v35 = vmax.f32 %v2396_v61, %v2460_v52  ;;  %v5279_v61 = vld [vmem:[#allocation13_spill] sm:$0xff]  ;;  %v5280_v52 = vld [vmem:[#allocation14_spill] sm:$0xff] }
 0x18c   :  { %v2660_v40 = vmax.f32 %v2596_v50, 0.0  ;;  %v2597_v56 = vadd.f32 %v4740_v21, %v2526_v51 }
 0x18d   :  { %v2658_v12 = vmax.f32 %v2594_v34, 0.0  ;;  %v2595_v13 = vadd.f32 %v4740_v21, %v2524_v35  ;;  %v3638_v0 = vpop.f32.mrb[88].mxu0  ;;  %v3766_v1 = vpop.f32.mrb[88].mxu1 }
 0x18e   :  { %v3372_v14 = vpack.c.bf16 %v2660_v40, %v2660_v40  ;;  %v2661_v15 = vmax.f32 %v2597_v56, 0.0  ;;  %v2401_v41 = vmax.f32 %v5269_v53, %v3638_v0  ;;  %v2465_v19 = vmax.f32 %v5270_v18, %v3766_v1  ;;  %v1704_v2 = vpop.f32.mrb[89].mxu0  ;;  %v2216_v3 = vpop.f32.mrb[89].mxu1  ;;  %v5281_v56 = vld [vmem:[#allocation15_spill] sm:$0xff] }
 0x18f   :  { %v3370_v54 = vpack.c.bf16 %v2658_v12, %v2658_v12  ;;  %v2659_v22 = vmax.f32 %v2595_v13, 0.0  ;;  %v2399_v55 = vmax.f32 %v5271_v23, %v1704_v2  ;;  %v2463_v37 = vmax.f32 %v5272_v36, %v2216_v3  ;;  %v3639_v6 = vpop.f32.mrb[90].mxu0  ;;  %v3767_v7 = vpop.f32.mrb[90].mxu1  ;;  %v5282_v13 = vld [vmem:[#allocation16_spill] sm:$0xff] }
 0x190   :  { %2981 = vst.msk [vmem:[%s5186_s3 + $0x58] sm:$0xf] %vm2958_vm3, %v3372_v14  ;;  %v3373_v38 = vpack.c.bf16 %v2661_v15, %v2661_v15  ;;  %v2529_v39 = vmax.f32 %v2401_v41, %v2465_v19  ;;  %v2402_v9 = vmax.f32 %v5273_v8, %v3639_v6  ;;  %v2466_v43 = vmax.f32 %v5274_v42, %v3767_v7  ;;  %v1707_v58 = vpop.f32.mrb[91].mxu0  ;;  %v2219_v10 = vpop.f32.mrb[91].mxu1  ;;  %v5283_v41 = vld [vmem:[#allocation17_spill] sm:$0xff]  ;;  %v5284_v19 = vld [vmem:[#allocation18_spill] sm:$0xff] }
 0x191   :  { %2979 = vst.msk [vmem:[%s5186_s3 + $0x50] sm:$0xf] %vm2958_vm3, %v3370_v54  ;;  %v3371_v11 = vpack.c.bf16 %v2659_v22, %v2659_v22  ;;  %v2527_v44 = vmax.f32 %v2399_v55, %v2463_v37  ;;  %v2400_v59 = vmax.f32 %v5275_v45, %v1707_v58  ;;  %v2464_v17 = vmax.f32 %v5276_v16, %v2219_v10 }
 0x192   :  { %2982 = vst.msk [vmem:[%s5186_s3 + $0x5c] sm:$0xf] %vm2958_vm3, %v3373_v38  ;;  %v2600_v20 = vadd.f32 %v4740_v21, %v2529_v39  ;;  %v2530_v28 = vmax.f32 %v2402_v9, %v2466_v43  ;;  %v5285_v9 = vld [vmem:[#allocation19_spill] sm:$0xff]  ;;  %v5286_v43 = vld [vmem:[#allocation20_spill] sm:$0xff] }
 0x193   :  { %2980 = vst.msk [vmem:[%s5186_s3 + $0x54] sm:$0xf] %vm2958_vm3, %v3371_v11  ;;  %v2598_v62 = vadd.f32 %v4740_v21, %v2527_v44  ;;  %v2528_v63 = vmax.f32 %v2400_v59, %v2464_v17  ;;  %v5287_v59 = vld [vmem:[#allocation21_spill] sm:$0xff]  ;;  %v5288_v17 = vld [vmem:[#allocation22_spill] sm:$0xff] }
 0x194   :  { %v2664_v29 = vmax.f32 %v2600_v20, 0.0  ;;  %v2601_v5 = vadd.f32 %v4740_v21, %v2530_v28 }
 0x195   :  { %v2662_v24 = vmax.f32 %v2598_v62, 0.0  ;;  %v2599_v25 = vadd.f32 %v4740_v21, %v2528_v63  ;;  %v3642_v32 = vpop.f32.mrb[92].mxu0  ;;  %v3770_v33 = vpop.f32.mrb[92].mxu1 }
 0x196   :  { %v3376_v26 = vpack.c.bf16 %v2664_v29, %v2664_v29  ;;  %v2665_v27 = vmax.f32 %v2601_v5, 0.0  ;;  %v2405_v57 = vmax.f32 %v5277_v60, %v3642_v32  ;;  %v2469_v47 = vmax.f32 %v5278_v46, %v3770_v33  ;;  %v1720_v30 = vpop.f32.mrb[93].mxu0  ;;  %v2232_v31 = vpop.f32.mrb[93].mxu1  ;;  %v5289_v5 = vld [vmem:[#allocation23_spill] sm:$0xff] }
 0x197   :  { %v3374_v48 = vpack.c.bf16 %v2662_v24, %v2662_v24  ;;  %v2663_v49 = vmax.f32 %v2599_v25, 0.0  ;;  %v2403_v4 = vmax.f32 %v5279_v61, %v1720_v30  ;;  %v2467_v50 = vmax.f32 %v5280_v52, %v2232_v31  ;;  %v3643_v51 = vpop.f32.mrb[94].mxu0  ;;  %v3771_v34 = vpop.f32.mrb[94].mxu1  ;;  %v5290_v25 = vld [vmem:[#allocation24_spill] sm:$0xff] }
 0x198   :  { %2985 = vst.msk [vmem:[%s5186_s3 + $0x68] sm:$0xf] %vm2958_vm3, %v3376_v26  ;;  %v3377_v35 = vpack.c.bf16 %v2665_v27, %v2665_v27  ;;  %v2533_v40 = vmax.f32 %v2405_v57, %v2469_v47  ;;  %v2406_v12 = vmax.f32 %v5281_v56, %v3643_v51  ;;  %v2470_v0 = vmax.f32 %v5282_v13, %v3771_v34  ;;  %v1723_v1 = vpop.f32.mrb[95].mxu0  ;;  %v2235_v14 = vpop.f32.mrb[95].mxu1  ;;  %v5291_v57 = vld [vmem:[#allocation25_spill] sm:$0xff]  ;;  %v5292_v47 = vld [vmem:[#allocation26_spill] sm:$0xff] }
 0x199   :  { %2983 = vst.msk [vmem:[%s5186_s3 + $0x60] sm:$0xf] %vm2958_vm3, %v3374_v48  ;;  %v3375_v15 = vpack.c.bf16 %v2663_v49, %v2663_v49  ;;  %v2531_v53 = vmax.f32 %v2403_v4, %v2467_v50  ;;  %v2404_v18 = vmax.f32 %v5283_v41, %v1723_v1  ;;  %v2468_v2 = vmax.f32 %v5284_v19, %v2235_v14 }
 0x19a   :  { %2986 = vst.msk [vmem:[%s5186_s3 + $0x6c] sm:$0xf] %vm2958_vm3, %v3377_v35  ;;  %v2604_v3 = vadd.f32 %v4740_v21, %v2533_v40  ;;  %v2534_v54 = vmax.f32 %v2406_v12, %v2470_v0  ;;  %v5293_v12 = vld [vmem:[#allocation27_spill] sm:$0xff]  ;;  %v5294_v0 = vld [vmem:[#allocation28_spill] sm:$0xff] }
 0x19b   :  { %2984 = vst.msk [vmem:[%s5186_s3 + $0x64] sm:$0xf] %vm2958_vm3, %v3375_v15  ;;  %v2602_v22 = vadd.f32 %v4740_v21, %v2531_v53  ;;  %v2532_v23 = vmax.f32 %v2404_v18, %v2468_v2  ;;  %v5295_v18 = vld [vmem:[#allocation29_spill] sm:$0xff]  ;;  %v5296_v2 = vld [vmem:[#allocation30_spill] sm:$0xff] }
 0x19c   :  { %v2668_v55 = vmax.f32 %v2604_v3, 0.0  ;;  %v2605_v36 = vadd.f32 %v4740_v21, %v2534_v54 }
 0x19d   :  { %v2666_v37 = vmax.f32 %v2602_v22, 0.0  ;;  %v2603_v6 = vadd.f32 %v4740_v21, %v2532_v23  ;;  %v3646_v7 = vpop.f32.mrb[96].mxu0  ;;  %v3774_v38 = vpop.f32.mrb[96].mxu1 }
 0x19e   :  { %v3380_v39 = vpack.c.bf16 %v2668_v55, %v2668_v55  ;;  %v2669_v8 = vmax.f32 %v2605_v36, 0.0  ;;  %v2409_v42 = vmax.f32 %v5285_v9, %v3646_v7  ;;  %v2473_v58 = vmax.f32 %v5286_v43, %v3774_v38  ;;  %v1736_v10 = vpop.f32.mrb[97].mxu0  ;;  %v2248_v11 = vpop.f32.mrb[97].mxu1  ;;  %v5297_v36 = vld [vmem:[#allocation31_spill] sm:$0xff] }
 0x19f   :  { %v3378_v44 = vpack.c.bf16 %v2666_v37, %v2666_v37  ;;  %v2667_v45 = vmax.f32 %v2603_v6, 0.0  ;;  %v2407_v16 = vmax.f32 %v5287_v59, %v1736_v10  ;;  %v2471_v20 = vmax.f32 %v5288_v17, %v2248_v11  ;;  %v3647_v28 = vpop.f32.mrb[98].mxu0  ;;  %v3775_v62 = vpop.f32.mrb[98].mxu1  ;;  %v5298_v6 = vld [vmem:[#allocation32_spill] sm:$0xff] }
 0x1a0   :  { %2989 = vst.msk [vmem:[%s5186_s3 + $0x78] sm:$0xf] %vm2958_vm3, %v3380_v39  ;;  %v3381_v63 = vpack.c.bf16 %v2669_v8, %v2669_v8  ;;  %v2537_v29 = vmax.f32 %v2409_v42, %v2473_v58  ;;  %v2410_v24 = vmax.f32 %v5289_v5, %v3647_v28  ;;  %v2474_v32 = vmax.f32 %v5290_v25, %v3775_v62  ;;  %v1739_v33 = vpop.f32.mrb[99].mxu0  ;;  %v2251_v26 = vpop.f32.mrb[99].mxu1  ;;  %v5299_v42 = vld [vmem:[#allocation33_spill] sm:$0xff]  ;;  %v5300_v58 = vld [vmem:[#allocation34_spill] sm:$0xff] }
 0x1a1   :  { %2987 = vst.msk [vmem:[%s5186_s3 + $0x70] sm:$0xf] %vm2958_vm3, %v3378_v44  ;;  %v3379_v27 = vpack.c.bf16 %v2667_v45, %v2667_v45  ;;  %v2535_v60 = vmax.f32 %v2407_v16, %v2471_v20  ;;  %v2408_v46 = vmax.f32 %v5291_v57, %v1739_v33  ;;  %v2472_v30 = vmax.f32 %v5292_v47, %v2251_v26 }
 0x1a2   :  { %2990 = vst.msk [vmem:[%s5186_s3 + $0x7c] sm:$0xf] %vm2958_vm3, %v3381_v63  ;;  %v2608_v31 = vadd.f32 %v4740_v21, %v2537_v29  ;;  %v2538_v48 = vmax.f32 %v2410_v24, %v2474_v32  ;;  %v5301_v24 = vld [vmem:[#allocation35_spill] sm:$0xff]  ;;  %v5302_v32 = vld [vmem:[#allocation36_spill] sm:$0xff] }
 0x1a3   :  { %2988 = vst.msk [vmem:[%s5186_s3 + $0x74] sm:$0xf] %vm2958_vm3, %v3379_v27  ;;  %v2606_v49 = vadd.f32 %v4740_v21, %v2535_v60  ;;  %v2536_v61 = vmax.f32 %v2408_v46, %v2472_v30  ;;  %v5303_v46 = vld [vmem:[#allocation37_spill] sm:$0xff]  ;;  %v5304_v30 = vld [vmem:[#allocation38_spill] sm:$0xff] }
 0x1a4   :  { %v2672_v4 = vmax.f32 %v2608_v31, 0.0  ;;  %v2609_v52 = vadd.f32 %v4740_v21, %v2538_v48 }
 0x1a5   :  { %v2670_v50 = vmax.f32 %v2606_v49, 0.0  ;;  %v2607_v51 = vadd.f32 %v4740_v21, %v2536_v61  ;;  %v3650_v34 = vpop.f32.mrb[100].mxu0  ;;  %v3778_v35 = vpop.f32.mrb[100].mxu1 }
 0x1a6   :  { %v3384_v40 = vpack.c.bf16 %v2672_v4, %v2672_v4  ;;  %v2673_v56 = vmax.f32 %v2609_v52, 0.0  ;;  %v2413_v13 = vmax.f32 %v5293_v12, %v3650_v34  ;;  %v2477_v1 = vmax.f32 %v5294_v0, %v3778_v35  ;;  %v1752_v14 = vpop.f32.mrb[101].mxu0  ;;  %v2264_v15 = vpop.f32.mrb[101].mxu1  ;;  %v5305_v52 = vld [vmem:[#allocation39_spill] sm:$0xff] }
 0x1a7   :  { %v3382_v53 = vpack.c.bf16 %v2670_v50, %v2670_v50  ;;  %v2671_v41 = vmax.f32 %v2607_v51, 0.0  ;;  %v2411_v19 = vmax.f32 %v5295_v18, %v1752_v14  ;;  %v2475_v3 = vmax.f32 %v5296_v2, %v2264_v15  ;;  %v3651_v54 = vpop.f32.mrb[102].mxu0  ;;  %v3779_v22 = vpop.f32.mrb[102].mxu1  ;;  %v5306_v51 = vld [vmem:[#allocation40_spill] sm:$0xff] }
 0x1a8   :  { %2993 = vst.msk [vmem:[%s5186_s3 + $0x88] sm:$0xf] %vm2958_vm3, %v3384_v40  ;;  %v3385_v23 = vpack.c.bf16 %v2673_v56, %v2673_v56  ;;  %v2541_v55 = vmax.f32 %v2413_v13, %v2477_v1  ;;  %v2414_v37 = vmax.f32 %v5297_v36, %v3651_v54  ;;  %v2478_v7 = vmax.f32 %v5298_v6, %v3779_v22  ;;  %v1755_v38 = vpop.f32.mrb[103].mxu0  ;;  %v2267_v39 = vpop.f32.mrb[103].mxu1  ;;  %v5307_v13 = vld [vmem:[#allocation41_spill] sm:$0xff]  ;;  %v5308_v1 = vld [vmem:[#allocation42_spill] sm:$0xff] }
 0x1a9   :  { %2991 = vst.msk [vmem:[%s5186_s3 + $0x80] sm:$0xf] %vm2958_vm3, %v3382_v53  ;;  %v3383_v8 = vpack.c.bf16 %v2671_v41, %v2671_v41  ;;  %v2539_v9 = vmax.f32 %v2411_v19, %v2475_v3  ;;  %v2412_v43 = vmax.f32 %v5299_v42, %v1755_v38  ;;  %v2476_v10 = vmax.f32 %v5300_v58, %v2267_v39 }
 0x1aa   :  { %2994 = vst.msk [vmem:[%s5186_s3 + $0x8c] sm:$0xf] %vm2958_vm3, %v3385_v23  ;;  %v2612_v11 = vadd.f32 %v4740_v21, %v2541_v55  ;;  %v2542_v44 = vmax.f32 %v2414_v37, %v2478_v7  ;;  %v5309_v37 = vld [vmem:[#allocation43_spill] sm:$0xff]  ;;  %v5310_v7 = vld [vmem:[#allocation44_spill] sm:$0xff] }
 0x1ab   :  { %2992 = vst.msk [vmem:[%s5186_s3 + $0x84] sm:$0xf] %vm2958_vm3, %v3383_v8  ;;  %v2610_v45 = vadd.f32 %v4740_v21, %v2539_v9  ;;  %v2540_v59 = vmax.f32 %v2412_v43, %v2476_v10  ;;  %v5311_v43 = vld [vmem:[#allocation45_spill] sm:$0xff]  ;;  %v5312_v10 = vld [vmem:[#allocation46_spill] sm:$0xff] }
 0x1ac   :  { %v2676_v16 = vmax.f32 %v2612_v11, 0.0  ;;  %v2613_v17 = vadd.f32 %v4740_v21, %v2542_v44 }
 0x1ad   :  { %v2674_v20 = vmax.f32 %v2610_v45, 0.0  ;;  %v2611_v28 = vadd.f32 %v4740_v21, %v2540_v59  ;;  %v3654_v62 = vpop.f32.mrb[104].mxu0  ;;  %v3782_v63 = vpop.f32.mrb[104].mxu1 }
 0x1ae   :  { %v3388_v29 = vpack.c.bf16 %v2676_v16, %v2676_v16  ;;  %v2677_v5 = vmax.f32 %v2613_v17, 0.0  ;;  %v2417_v25 = vmax.f32 %v5301_v24, %v3654_v62  ;;  %v2481_v33 = vmax.f32 %v5302_v32, %v3782_v63  ;;  %v1768_v26 = vpop.f32.mrb[105].mxu0  ;;  %v2280_v27 = vpop.f32.mrb[105].mxu1  ;;  %v5313_v17 = vld [vmem:[#allocation47_spill] sm:$0xff] }
 0x1af   :  { %v3386_v60 = vpack.c.bf16 %v2674_v20, %v2674_v20  ;;  %v2675_v57 = vmax.f32 %v2611_v28, 0.0  ;;  %v2415_v47 = vmax.f32 %v5303_v46, %v1768_v26  ;;  %v2479_v31 = vmax.f32 %v5304_v30, %v2280_v27  ;;  %v3655_v48 = vpop.f32.mrb[106].mxu0  ;;  %v3783_v49 = vpop.f32.mrb[106].mxu1  ;;  %v5314_v28 = vld [vmem:[#allocation48_spill] sm:$0xff] }
 0x1b0   :  { %2997 = vst.msk [vmem:[%s5186_s3 + $0x98] sm:$0xf] %vm2958_vm3, %v3388_v29  ;;  %v3389_v61 = vpack.c.bf16 %v2677_v5, %v2677_v5  ;;  %v2545_v4 = vmax.f32 %v2417_v25, %v2481_v33  ;;  %v2418_v50 = vmax.f32 %v5305_v52, %v3655_v48  ;;  %v2482_v34 = vmax.f32 %v5306_v51, %v3783_v49  ;;  %v1771_v35 = vpop.f32.mrb[107].mxu0  ;;  %v2283_v40 = vpop.f32.mrb[107].mxu1  ;;  %v5315_v25 = vld [vmem:[#allocation49_spill] sm:$0xff]  ;;  %v5316_v33 = vld [vmem:[#allocation50_spill] sm:$0xff] }
 0x1b1   :  { %2995 = vst.msk [vmem:[%s5186_s3 + $0x90] sm:$0xf] %vm2958_vm3, %v3386_v60  ;;  %v3387_v56 = vpack.c.bf16 %v2675_v57, %v2675_v57  ;;  %v2543_v12 = vmax.f32 %v2415_v47, %v2479_v31  ;;  %v2416_v0 = vmax.f32 %v5307_v13, %v1771_v35  ;;  %v2480_v14 = vmax.f32 %v5308_v1, %v2283_v40 }
 0x1b2   :  { %2998 = vst.msk [vmem:[%s5186_s3 + $0x9c] sm:$0xf] %vm2958_vm3, %v3389_v61  ;;  %v2616_v15 = vadd.f32 %v4740_v21, %v2545_v4  ;;  %v2546_v53 = vmax.f32 %v2418_v50, %v2482_v34  ;;  %v5317_v50 = vld [vmem:[#allocation51_spill] sm:$0xff]  ;;  %v5318_v34 = vld [vmem:[#allocation52_spill] sm:$0xff] }
 0x1b3   :  { %2996 = vst.msk [vmem:[%s5186_s3 + $0x94] sm:$0xf] %vm2958_vm3, %v3387_v56  ;;  %v2614_v41 = vadd.f32 %v4740_v21, %v2543_v12  ;;  %v2544_v18 = vmax.f32 %v2416_v0, %v2480_v14  ;;  %v5319_v0 = vld [vmem:[#allocation53_spill] sm:$0xff]  ;;  %v5320_v14 = vld [vmem:[#allocation54_spill] sm:$0xff] }
 0x1b4   :  { %v2680_v19 = vmax.f32 %v2616_v15, 0.0  ;;  %v2617_v2 = vadd.f32 %v4740_v21, %v2546_v53 }
 0x1b5   :  { %v2678_v3 = vmax.f32 %v2614_v41, 0.0  ;;  %v2615_v54 = vadd.f32 %v4740_v21, %v2544_v18  ;;  %v3658_v22 = vpop.f32.mrb[108].mxu0  ;;  %v3786_v23 = vpop.f32.mrb[108].mxu1 }
 0x1b6   :  { %v3392_v55 = vpack.c.bf16 %v2680_v19, %v2680_v19  ;;  %v2681_v36 = vmax.f32 %v2617_v2, 0.0  ;;  %v2421_v6 = vmax.f32 %v5309_v37, %v3658_v22  ;;  %v2485_v38 = vmax.f32 %v5310_v7, %v3786_v23  ;;  %v1784_v39 = vpop.f32.mrb[109].mxu0  ;;  %v2296_v8 = vpop.f32.mrb[109].mxu1  ;;  %v5321_v2 = vld [vmem:[#allocation55_spill] sm:$0xff] }
 0x1b7   :  { %v3390_v9 = vpack.c.bf16 %v2678_v3, %v2678_v3  ;;  %v2679_v42 = vmax.f32 %v2615_v54, 0.0  ;;  %v2419_v58 = vmax.f32 %v5311_v43, %v1784_v39  ;;  %v2483_v11 = vmax.f32 %v5312_v10, %v2296_v8  ;;  %v3659_v44 = vpop.f32.mrb[110].mxu0  ;;  %v3787_v45 = vpop.f32.mrb[110].mxu1  ;;  %v5322_v54 = vld [vmem:[#allocation56_spill] sm:$0xff] }
 0x1b8   :  { %3001 = vst.msk [vmem:[%s5186_s3 + $0xa8] sm:$0xf] %vm2958_vm3, %v3392_v55  ;;  %v3393_v59 = vpack.c.bf16 %v2681_v36, %v2681_v36  ;;  %v2549_v16 = vmax.f32 %v2421_v6, %v2485_v38  ;;  %v2422_v20 = vmax.f32 %v5313_v17, %v3659_v44  ;;  %v2486_v62 = vmax.f32 %v5314_v28, %v3787_v45  ;;  %v1787_v63 = vpop.f32.mrb[111].mxu0  ;;  %v2299_v29 = vpop.f32.mrb[111].mxu1  ;;  %v5323_v6 = vld [vmem:[#allocation57_spill] sm:$0xff]  ;;  %v5324_v38 = vld [vmem:[#allocation58_spill] sm:$0xff] }
 0x1b9   :  { %2999 = vst.msk [vmem:[%s5186_s3 + $0xa0] sm:$0xf] %vm2958_vm3, %v3390_v9  ;;  %v3391_v5 = vpack.c.bf16 %v2679_v42, %v2679_v42  ;;  %v2547_v24 = vmax.f32 %v2419_v58, %v2483_v11  ;;  %v2420_v32 = vmax.f32 %v5315_v25, %v1787_v63  ;;  %v2484_v26 = vmax.f32 %v5316_v33, %v2299_v29 }
 0x1ba   :  { %3002 = vst.msk [vmem:[%s5186_s3 + $0xac] sm:$0xf] %vm2958_vm3, %v3393_v59  ;;  %v2620_v27 = vadd.f32 %v4740_v21, %v2549_v16  ;;  %v2550_v60 = vmax.f32 %v2422_v20, %v2486_v62  ;;  %v5325_v20 = vld [vmem:[#allocation59_spill] sm:$0xff]  ;;  %v5326_v62 = vld [vmem:[#allocation60_spill] sm:$0xff] }
 0x1bb   :  { %3000 = vst.msk [vmem:[%s5186_s3 + $0xa4] sm:$0xf] %vm2958_vm3, %v3391_v5  ;;  %v2618_v57 = vadd.f32 %v4740_v21, %v2547_v24  ;;  %v2548_v46 = vmax.f32 %v2420_v32, %v2484_v26  ;;  %v5327_v32 = vld [vmem:[#allocation61_spill] sm:$0xff]  ;;  %v5328_v26 = vld [vmem:[#allocation62_spill] sm:$0xff] }
 0x1bc   :  { %v2684_v47 = vmax.f32 %v2620_v27, 0.0  ;;  %v2621_v30 = vadd.f32 %v4740_v21, %v2550_v60 }
 0x1bd   :  { %v2682_v31 = vmax.f32 %v2618_v57, 0.0  ;;  %v2619_v48 = vadd.f32 %v4740_v21, %v2548_v46  ;;  %v3662_v49 = vpop.f32.mrb[112].mxu0  ;;  %v3790_v61 = vpop.f32.mrb[112].mxu1 }
 0x1be   :  { %v3396_v4 = vpack.c.bf16 %v2684_v47, %v2684_v47  ;;  %v2685_v52 = vmax.f32 %v2621_v30, 0.0  ;;  %v2425_v51 = vmax.f32 %v5317_v50, %v3662_v49  ;;  %v2489_v35 = vmax.f32 %v5318_v34, %v3790_v61  ;;  %v1800_v40 = vpop.f32.mrb[113].mxu0  ;;  %v2312_v56 = vpop.f32.mrb[113].mxu1  ;;  %v5329_v30 = vld [vmem:[#allocation63_spill] sm:$0xff] }
 0x1bf   :  { %v3394_v12 = vpack.c.bf16 %v2682_v31, %v2682_v31  ;;  %v2683_v13 = vmax.f32 %v2619_v48, 0.0  ;;  %v2423_v1 = vmax.f32 %v5319_v0, %v1800_v40  ;;  %v2487_v15 = vmax.f32 %v5320_v14, %v2312_v56  ;;  %v3663_v53 = vpop.f32.mrb[114].mxu0  ;;  %v3791_v41 = vpop.f32.mrb[114].mxu1  ;;  %v5330_v48 = vld [vmem:[#allocation64_spill] sm:$0xff] }
 0x1c0   :  { %3005 = vst.msk [vmem:[%s5186_s3 + $0xb8] sm:$0xf] %vm2958_vm3, %v3396_v4  ;;  %v3397_v18 = vpack.c.bf16 %v2685_v52, %v2685_v52  ;;  %v2553_v19 = vmax.f32 %v2425_v51, %v2489_v35  ;;  %v2426_v3 = vmax.f32 %v5321_v2, %v3663_v53  ;;  %v2490_v22 = vmax.f32 %v5322_v54, %v3791_v41  ;;  %v1803_v23 = vpop.f32.mrb[115].mxu0  ;;  %v2315_v55 = vpop.f32.mrb[115].mxu1  ;;  %v5331_v51 = vld [vmem:[#allocation65_spill] sm:$0xff]  ;;  %v5332_v35 = vld [vmem:[#allocation66_spill] sm:$0xff] }
 0x1c1   :  { %3003 = vst.msk [vmem:[%s5186_s3 + $0xb0] sm:$0xf] %vm2958_vm3, %v3394_v12  ;;  %v3395_v36 = vpack.c.bf16 %v2683_v13, %v2683_v13  ;;  %v2551_v37 = vmax.f32 %v2423_v1, %v2487_v15  ;;  %v2424_v7 = vmax.f32 %v5323_v6, %v1803_v23  ;;  %v2488_v39 = vmax.f32 %v5324_v38, %v2315_v55 }
 0x1c2   :  { %3006 = vst.msk [vmem:[%s5186_s3 + $0xbc] sm:$0xf] %vm2958_vm3, %v3397_v18  ;;  %v2624_v8 = vadd.f32 %v4740_v21, %v2553_v19  ;;  %v2554_v9 = vmax.f32 %v2426_v3, %v2490_v22  ;;  %v5333_v3 = vld [vmem:[#allocation67_spill] sm:$0xff]  ;;  %v5334_v22 = vld [vmem:[#allocation68_spill] sm:$0xff] }
 0x1c3   :  { %3004 = vst.msk [vmem:[%s5186_s3 + $0xb4] sm:$0xf] %vm2958_vm3, %v3395_v36  ;;  %v2622_v42 = vadd.f32 %v4740_v21, %v2551_v37  ;;  %v2552_v43 = vmax.f32 %v2424_v7, %v2488_v39  ;;  %v5335_v7 = vld [vmem:[#allocation69_spill] sm:$0xff]  ;;  %v5336_v39 = vld [vmem:[#allocation70_spill] sm:$0xff] }
 0x1c4   :  { %v2688_v58 = vmax.f32 %v2624_v8, 0.0  ;;  %v2625_v10 = vadd.f32 %v4740_v21, %v2554_v9 }
 0x1c5   :  { %v2686_v11 = vmax.f32 %v2622_v42, 0.0  ;;  %v2623_v44 = vadd.f32 %v4740_v21, %v2552_v43  ;;  %v3666_v45 = vpop.f32.mrb[116].mxu0  ;;  %v3794_v59 = vpop.f32.mrb[116].mxu1 }
 0x1c6   :  { %v3400_v16 = vpack.c.bf16 %v2688_v58, %v2688_v58  ;;  %v2689_v17 = vmax.f32 %v2625_v10, 0.0  ;;  %v2429_v28 = vmax.f32 %v5325_v20, %v3666_v45  ;;  %v2493_v63 = vmax.f32 %v5326_v62, %v3794_v59  ;;  %v1816_v29 = vpop.f32.mrb[117].mxu0  ;;  %v2328_v5 = vpop.f32.mrb[117].mxu1  ;;  %v5337_v58 = vld [vmem:[#allocation71_spill] sm:$0xff]  ;;  %v5339_v20 = vld [vmem:[#allocation73_spill] sm:$0xff]  ;;  %v5340_v62 = vld [vmem:[#allocation74_spill] sm:$0xff] }
 0x1c7   :  { %v3398_v24 = vpack.c.bf16 %v2686_v11, %v2686_v11  ;;  %v2687_v25 = vmax.f32 %v2623_v44, 0.0  ;;  %v2427_v33 = vmax.f32 %v5327_v32, %v1816_v29  ;;  %v2491_v27 = vmax.f32 %v5328_v26, %v2328_v5  ;;  %v3667_v60 = vpop.f32.mrb[118].mxu0  ;;  %v3795_v57 = vpop.f32.mrb[118].mxu1  ;;  %v5338_v11 = vld [vmem:[#allocation72_spill] sm:$0xff]  ;;  %v3939_v29 = vld [vmem:[%s5185_s2] ss:$0 sm:$0xff] }
 0x1c8   :  { %3009 = vst.msk [vmem:[%s5186_s3 + $0xc8] sm:$0xf] %vm2958_vm3, %v3400_v16  ;;  %v3401_v46 = vpack.c.bf16 %v2689_v17, %v2689_v17  ;;  %v2557_v47 = vmax.f32 %v2429_v28, %v2493_v63  ;;  %v2430_v31 = vmax.f32 %v5329_v30, %v3667_v60  ;;  %v2494_v49 = vmax.f32 %v5330_v48, %v3795_v57  ;;  %v1819_v61 = vpop.f32.mrb[119].mxu0  ;;  %v2331_v4 = vpop.f32.mrb[119].mxu1 }
 0x1c9   :  { %3007 = vst.msk [vmem:[%s5186_s3 + $0xc0] sm:$0xf] %vm2958_vm3, %v3398_v24  ;;  %v3399_v52 = vpack.c.bf16 %v2687_v25, %v2687_v25  ;;  %v2555_v50 = vmax.f32 %v2427_v33, %v2491_v27  ;;  %v2428_v34 = vmax.f32 %v5331_v51, %v1819_v61  ;;  %v2492_v40 = vmax.f32 %v5332_v35, %v2331_v4 }
 0x1ca   :  { %3010 = vst.msk [vmem:[%s5186_s3 + $0xcc] sm:$0xf] %vm2958_vm3, %v3401_v46  ;;  %v2628_v56 = vadd.f32 %v4740_v21, %v2557_v47  ;;  %v2558_v12 = vmax.f32 %v2430_v31, %v2494_v49  ;;  %v5341_v31 = vld [vmem:[#allocation75_spill] sm:$0xff]  ;;  %v5342_v49 = vld [vmem:[#allocation76_spill] sm:$0xff] }
 0x1cb   :  { %3008 = vst.msk [vmem:[%s5186_s3 + $0xc4] sm:$0xf] %vm2958_vm3, %v3399_v52  ;;  %v2626_v13 = vadd.f32 %v4740_v21, %v2555_v50  ;;  %v2556_v0 = vmax.f32 %v2428_v34, %v2492_v40  ;;  %v5343_v34 = vld [vmem:[#allocation77_spill] sm:$0xff]  ;;  %v5344_v40 = vld [vmem:[#allocation78_spill] sm:$0xff] }
 0x1cc   :  { %v2692_v1 = vmax.f32 %v2628_v56, 0.0  ;;  %v2629_v14 = vadd.f32 %v4740_v21, %v2558_v12 }
 0x1cd   :  { %v2690_v15 = vmax.f32 %v2626_v13, 0.0  ;;  %v2627_v53 = vadd.f32 %v4740_v21, %v2556_v0  ;;  %v3670_v41 = vpop.f32.mrb[120].mxu0  ;;  %v3798_v18 = vpop.f32.mrb[120].mxu1 }
 0x1ce   :  { %v3404_v19 = vpack.c.bf16 %v2692_v1, %v2692_v1  ;;  %v2693_v2 = vmax.f32 %v2629_v14, 0.0  ;;  %v2433_v54 = vmax.f32 %v5333_v3, %v3670_v41  ;;  %v2497_v23 = vmax.f32 %v5334_v22, %v3798_v18  ;;  %v1832_v55 = vpop.f32.mrb[121].mxu0  ;;  %v2344_v36 = vpop.f32.mrb[121].mxu1  ;;  %v5345_v14 = vld [vmem:[#allocation79_spill] sm:$0xff] }
 0x1cf   :  { %v3402_v37 = vpack.c.bf16 %v2690_v15, %v2690_v15  ;;  %v2691_v6 = vmax.f32 %v2627_v53, 0.0  ;;  %v2431_v38 = vmax.f32 %v5335_v7, %v1832_v55  ;;  %v2495_v8 = vmax.f32 %v5336_v39, %v2344_v36  ;;  %v3671_v9 = vpop.f32.mrb[122].mxu0  ;;  %v3799_v42 = vpop.f32.mrb[122].mxu1  ;;  %v5346_v53 = vld [vmem:[#allocation80_spill] sm:$0xff] }
 0x1d0   :  { %3013 = vst.msk [vmem:[%s5186_s3 + $0xd8] sm:$0xf] %vm2958_vm3, %v3404_v19  ;;  %v3405_v21 = vpack.c.bf16 %v2693_v2, %v2693_v2  ;;  %v2561_v43 = vmax.f32 %v2433_v54, %v2497_v23  ;;  %v2434_v10 = vmax.f32 %v5337_v58, %v3671_v9  ;;  %v2498_v44 = vmax.f32 %v5338_v11, %v3799_v42  ;;  %v1835_v45 = vpop.f32.mrb[123].mxu0  ;;  %v2347_v59 = vpop.f32.mrb[123].mxu1  ;;  %v5347_v54 = vld [vmem:[#allocation81_spill] sm:$0xff]  ;;  %v5348_v23 = vld [vmem:[#allocation82_spill] sm:$0xff] }
 0x1d1   :  { %3011 = vst.msk [vmem:[%s5186_s3 + $0xd0] sm:$0xf] %vm2958_vm3, %v3402_v37  ;;  %v3403_v16 = vpack.c.bf16 %v2691_v6, %v2691_v6  ;;  %v2559_v17 = vmax.f32 %v2431_v38, %v2495_v8  ;;  %v2432_v28 = vmax.f32 %v5339_v20, %v1835_v45  ;;  %v2496_v63 = vmax.f32 %v5340_v62, %v2347_v59 }
 0x1d2   :  { %3014 = vst.msk [vmem:[%s5186_s3 + $0xdc] sm:$0xf] %vm2958_vm3, %v3405_v21  ;;  %v2632_v5 = vadd.f32 %v3939_v29, %v2561_v43  ;;  %v2562_v24 = vmax.f32 %v2434_v10, %v2498_v44 }
 0x1d3   :  { %3012 = vst.msk [vmem:[%s5186_s3 + $0xd4] sm:$0xf] %vm2958_vm3, %v3403_v16  ;;  %v2630_v25 = vadd.f32 %v3939_v29, %v2559_v17  ;;  %v2560_v32 = vmax.f32 %v2432_v28, %v2496_v63 }
 0x1d4   :  { %v2696_v33 = vmax.f32 %v2632_v5, 0.0  ;;  %v2633_v26 = vadd.f32 %v3939_v29, %v2562_v24 }
 0x1d5   :  { %v2694_v27 = vmax.f32 %v2630_v25, 0.0  ;;  %v2631_v60 = vadd.f32 %v3939_v29, %v2560_v32  ;;  %v3674_v57 = vpop.f32.mrb[124].mxu0  ;;  %v3802_v46 = vpop.f32.mrb[124].mxu1 }
 0x1d6   :  { %v3408_v47 = vpack.c.bf16 %v2696_v33, %v2696_v33  ;;  %v2697_v30 = vmax.f32 %v2633_v26, 0.0  ;;  %v2437_v48 = vmax.f32 %v5341_v31, %v3674_v57  ;;  %v2501_v61 = vmax.f32 %v5342_v49, %v3802_v46  ;;  %v1848_v4 = vpop.f32.mrb[125].mxu0  ;;  %v2360_v52 = vpop.f32.mrb[125].mxu1 }
 0x1d7   :  { %v3406_v50 = vpack.c.bf16 %v2694_v27, %v2694_v27  ;;  %v2695_v51 = vmax.f32 %v2631_v60, 0.0  ;;  %v2435_v35 = vmax.f32 %v5343_v34, %v1848_v4  ;;  %v2499_v56 = vmax.f32 %v5344_v40, %v2360_v52  ;;  %v3675_v12 = vpop.f32.mrb[126].mxu0  ;;  %v3803_v13 = vpop.f32.mrb[126].mxu1 }
 0x1d8   :  { %3017 = vst.msk [vmem:[%s5186_s3 + $0xe8] sm:$0xf] %vm2958_vm3, %v3408_v47  ;;  %v3409_v0 = vpack.c.bf16 %v2697_v30, %v2697_v30  ;;  %v2565_v1 = vmax.f32 %v2437_v48, %v2501_v61  ;;  %v2438_v15 = vmax.f32 %v5345_v14, %v3675_v12  ;;  %v2502_v41 = vmax.f32 %v5346_v53, %v3803_v13  ;;  %v1851_v18 = vpop.f32.mrb[127].mxu0  ;;  %v2363_v19 = vpop.f32.mrb[127].mxu1 }
 0x1d9   :  { %3015 = vst.msk [vmem:[%s5186_s3 + $0xe0] sm:$0xf] %vm2958_vm3, %v3406_v50  ;;  %v3407_v2 = vpack.c.bf16 %v2695_v51, %v2695_v51  ;;  %v2563_v3 = vmax.f32 %v2435_v35, %v2499_v56  ;;  %v2436_v22 = vmax.f32 %v5347_v54, %v1851_v18  ;;  %v2500_v55 = vmax.f32 %v5348_v23, %v2363_v19 }
 0x1da   :  { %3018 = vst.msk [vmem:[%s5186_s3 + $0xec] sm:$0xf] %vm2958_vm3, %v3409_v0  ;;  %v2636_v36 = vadd.f32 %v3939_v29, %v2565_v1  ;;  %v2566_v37 = vmax.f32 %v2438_v15, %v2502_v41 }
 0x1db   :  { %3016 = vst.msk [vmem:[%s5186_s3 + $0xe4] sm:$0xf] %vm2958_vm3, %v3407_v2  ;;  %v2634_v6 = vadd.f32 %v3939_v29, %v2563_v3  ;;  %v2564_v7 = vmax.f32 %v2436_v22, %v2500_v55 }
 0x1dc   :  { %v2700_v38 = vmax.f32 %v2636_v36, 0.0  ;;  %v2637_v39 = vadd.f32 %v3939_v29, %v2566_v37 }
 0x1dd   :  { %v2698_v8 = vmax.f32 %v2634_v6, 0.0  ;;  %v2635_v9 = vadd.f32 %v3939_v29, %v2564_v7 }
 0x1de   :  { %v3412_v42 = vpack.c.bf16 %v2700_v38, %v2700_v38  ;;  %v2701_v21 = vmax.f32 %v2637_v39, 0.0 }
 0x1df   :  { %v3410_v43 = vpack.c.bf16 %v2698_v8, %v2698_v8  ;;  %v2699_v58 = vmax.f32 %v2635_v9, 0.0 }
 0x1e0   :  { %3021 = vst.msk [vmem:[%s5186_s3 + $0xf8] sm:$0xf] %vm2958_vm3, %v3412_v42  ;;  %v3413_v10 = vpack.c.bf16 %v2701_v21, %v2701_v21 }
 0x1e1   :  { %3019 = vst.msk [vmem:[%s5186_s3 + $0xf0] sm:$0xf] %vm2958_vm3, %v3410_v43  ;;  %v3411_v11 = vpack.c.bf16 %v2699_v58, %v2699_v58 }
 0x1e2   :  { %3022 = vst.msk [vmem:[%s5186_s3 + $0xfc] sm:$0xf] %vm2958_vm3, %v3413_v10 }
 0x1e3   :  { %3020 = vst.msk [vmem:[%s5186_s3 + $0xf4] sm:$0xf] %vm2958_vm3, %v3411_v11 }

// kernel: _cnn_forward_jit.6
= control target key start
LH: loop header
LB: loop body
LE: loop exit
PB: predicated region body
PF: predicated region fallthrough
CT: control target
= control target key end

     0   :  { %v2298_v0 = vmov 0   ;;  %vm951_vm0 = vcmask 130048   ;;  %vm1777_vm1 = vcmask 257024   ;;  %s3112_s1 = inlined_call_operand.vmem [shape: bf16[400,32], index: 1, kind: input, shape index: {}]   ;;  %s3113_s0 = inlined_call_operand.vmem [shape: bf16[512,400], index: 0, kind: input, shape index: {}]   ;;  %s3114_s2 = inlined_call_operand.vmem [shape: f32[1,32], index: 2, kind: input, shape index: {}]   ;;  %s3115_s3 = inlined_call_operand.vmem [shape: bf16[128,32], index: 3, kind: output, shape index: {}]  }
   0x1   :  { %1048 = vmatprep.subr.bf16.mxu1 %v2298_v0  ;;  %v2081_v1 = vld [vmem:[%s3112_s1] sm:$0xff]   ;;  %1337 = vmatprep.subr.bf16.mxu0 %v2298_v0  ;;  %v2082_v2 = vld [vmem:[%s3112_s1 + $0x8] sm:$0xff]   ;;  %v2083_v3 = vld [vmem:[%s3112_s1 + $0x10] sm:$0xff]  }
   0x2   :  { %1049 = vmatpush1.bf16.msra.mxu1 %v2081_v1  ;;  %v2088_v4 = vld [vmem:[%s3112_s1 + $0x80] sm:$0xff]   ;;  %v2090_v5 = vld [vmem:[%s3112_s1 + $0x88] sm:$0xff]   ;;  %v2084_v6 = vld [vmem:[%s3112_s1 + $0x18] sm:$0xff]  }
   0x3   :  { %1050 = vmatprep.subr.bf16.mxu1 %v2298_v0  ;;  %1338 = vmatpush1.bf16.msra.mxu0 %v2088_v4  ;;  %v2092_v7 = vld [vmem:[%s3112_s1 + $0x90] sm:$0xff]   ;;  %v2085_v8 = vld [vmem:[%s3112_s1 + $0x20] sm:$0xff]   ;;  %v2094_v9 = vld [vmem:[%s3112_s1 + $0x98] sm:$0xff]  }
   0x4   :  { %1339 = vmatprep.subr.bf16.mxu0 %v2298_v0  ;;  %v2086_v10 = vld [vmem:[%s3112_s1 + $0x28] sm:$0xff]   ;;  %v2096_v11 = vld [vmem:[%s3112_s1 + $0xa0] sm:$0xff]   ;;  %v2087_v12 = vld [vmem:[%s3112_s1 + $0x30] sm:$0xff]  }
   0x5   :  { %v2098_v13 = vld [vmem:[%s3112_s1 + $0xa8] sm:$0xff]   ;;  %v2089_v15 = vld [vmem:[%s3112_s1 + $0x38] sm:$0xff]   ;;  %v2111_v16 = vld [vmem:[%s3113_s0 + $0x4] ss:$16 sps:$4 sm:$0xff]  }
   0x6   :  { %1051 = vmatpush1.bf16.msra.mxu1 %v2082_v2  ;;  %v2107_v14 = vld [vmem:[%s3113_s0 + $0xc] ss:$16 sps:$4 sm:$0xff]   ;;  %v2100_v17 = vld [vmem:[%s3112_s1 + $0xb0] sm:$0xff]   ;;  %1080 = vmatprep.mubr.bf16.mxu1 %v2111_v16  ;;  %v2091_v18 = vld [vmem:[%s3112_s1 + $0x40] sm:$0xff]  }
   0x7   :  { %1052 = vmatprep.subr.bf16.mxu1 %v2298_v0  ;;  %1340 = vmatpush1.bf16.msra.mxu0 %v2090_v5  ;;  %v2102_v19 = vld [vmem:[%s3112_s1 + $0xb8] sm:$0xff]   ;;  %v2093_v20 = vld [vmem:[%s3112_s1 + $0x48] sm:$0xff]   ;;  %v2104_v21 = vld [vmem:[%s3112_s1 + $0xc0] sm:$0xff]  }
   0x8   :  { %1341 = vmatprep.subr.bf16.mxu0 %v2298_v0  ;;  %1951 = vmatprep.mubr.msk.bf16.mxu0 %vm951_vm0, %v2107_v14  ;;  %v2095_v22 = vld [vmem:[%s3112_s1 + $0x50] sm:$0xff]   ;;  %v2105_v23 = vld [vmem:[%s3113_s0 + $0x8] ss:$16 sps:$4 sm:$0xff]   ;;  %v2112_v24 = vld [vmem:[%s3113_s0 + $0x2c] ss:$16 sps:$4 sm:$0xff]  }
   0x9   :  { %v2097_v25 = vld [vmem:[%s3112_s1 + $0x58] sm:$0xff]   ;;  %v2099_v26 = vld [vmem:[%s3112_s1 + $0x60] sm:$0xff]   ;;  %v2101_v29 = vld [vmem:[%s3112_s1 + $0x68] sm:$0xff]  }
   0xa   :  { %1053 = vmatpush1.bf16.msra.mxu1 %v2083_v3  ;;  %v2114_v27 = vld [vmem:[%s3113_s0 + $0x28] ss:$16 sps:$4 sm:$0xff]   ;;  %v2118_v28 = vld [vmem:[%s3113_s0 + $0x4c] ss:$16 sps:$4 sm:$0xff]   ;;  %v2103_v30 = vld [vmem:[%s3112_s1 + $0x70] sm:$0xff]  }
   0xb   :  { %1054 = vmatprep.subr.bf16.mxu1 %v2298_v0  ;;  %1342 = vmatpush1.bf16.msra.mxu0 %v2092_v7  ;;  %v2120_v31 = vld [vmem:[%s3113_s0 + $0x48] ss:$16 sps:$4 sm:$0xff]   ;;  %v2124_v32 = vld [vmem:[%s3113_s0 + $0x6c] ss:$16 sps:$4 sm:$0xff]   ;;  %v2109_v34 = vld [vmem:[%s3113_s0] ss:$16 sps:$4 sm:$0xff]  }
   0xc   :  { %1343 = vmatprep.subr.bf16.mxu0 %v2298_v0  ;;  %v2108_v33 = vld [vmem:[%s3112_s1 + $0x78] sm:$0xff]   ;;  %v2115_v35 = vld [vmem:[%s3113_s0 + $0x24] ss:$16 sps:$4 sm:$0xff]   ;;  %v2117_v38 = vld [vmem:[%s3113_s0 + $0x20] ss:$16 sps:$4 sm:$0xff]  }
   0xd   :  { %v2126_v36 = vld [vmem:[%s3113_s0 + $0x68] ss:$16 sps:$4 sm:$0xff]   ;;  %v2130_v37 = vld [vmem:[%s3113_s0 + $0x8c] ss:$16 sps:$4 sm:$0xff]   ;;  %v2121_v39 = vld [vmem:[%s3113_s0 + $0x44] ss:$16 sps:$4 sm:$0xff]  }
   0xe   :  { %1055 = vmatpush1.bf16.msra.mxu1 %v2084_v6  ;;  %v2132_v40 = vld [vmem:[%s3113_s0 + $0x88] ss:$16 sps:$4 sm:$0xff]   ;;  %v2136_v41 = vld [vmem:[%s3113_s0 + $0xac] ss:$16 sps:$4 sm:$0xff]   ;;  %v2123_v42 = vld [vmem:[%s3113_s0 + $0x40] ss:$16 sps:$4 sm:$0xff]  }
   0xf   :  { %1056 = vmatprep.subr.bf16.mxu1 %v2298_v0  ;;  %1344 = vmatpush1.bf16.msra.mxu0 %v2094_v9  ;;  %v2127_v43 = vld [vmem:[%s3113_s0 + $0x64] ss:$16 sps:$4 sm:$0xff]   ;;  %v2138_v44 = vld [vmem:[%s3113_s0 + $0xa8] ss:$16 sps:$4 sm:$0xff]   ;;  %v2142_v45 = vld [vmem:[%s3113_s0 + $0xcc] ss:$16 sps:$4 sm:$0xff]  }
  0x10   :  { %1345 = vmatprep.subr.bf16.mxu0 %v2298_v0  ;;  %v2129_v46 = vld [vmem:[%s3113_s0 + $0x60] ss:$16 sps:$4 sm:$0xff]   ;;  %v2133_v47 = vld [vmem:[%s3113_s0 + $0x84] ss:$16 sps:$4 sm:$0xff]   ;;  %v2144_v48 = vld [vmem:[%s3113_s0 + $0xc8] ss:$16 sps:$4 sm:$0xff]  }
  0x11   :  { %v2148_v49 = vld [vmem:[%s3113_s0 + $0xec] ss:$16 sps:$4 sm:$0xff]   ;;  %v2135_v50 = vld [vmem:[%s3113_s0 + $0x80] ss:$16 sps:$4 sm:$0xff]   ;;  %v2139_v51 = vld [vmem:[%s3113_s0 + $0xa4] ss:$16 sps:$4 sm:$0xff]  }
  0x12   :  { %1057 = vmatpush1.bf16.msra.mxu1 %v2085_v8  ;;  %v2150_v52 = vld [vmem:[%s3113_s0 + $0xe8] ss:$16 sps:$4 sm:$0xff]   ;;  %v2154_v53 = vld [vmem:[%s3113_s0 + $0x10c] ss:$16 sps:$4 sm:$0xff]   ;;  %v2141_v54 = vld [vmem:[%s3113_s0 + $0xa0] ss:$16 sps:$4 sm:$0xff]  }
  0x13   :  { %1058 = vmatprep.subr.bf16.mxu1 %v2298_v0  ;;  %1346 = vmatpush1.bf16.msra.mxu0 %v2096_v11  ;;  %v2145_v55 = vld [vmem:[%s3113_s0 + $0xc4] ss:$16 sps:$4 sm:$0xff]   ;;  %v2156_v56 = vld [vmem:[%s3113_s0 + $0x108] ss:$16 sps:$4 sm:$0xff]   ;;  %v2160_v57 = vld [vmem:[%s3113_s0 + $0x12c] ss:$16 sps:$4 sm:$0xff]  }
  0x14   :  { %1347 = vmatprep.subr.bf16.mxu0 %v2298_v0  ;;  %v2147_v58 = vld [vmem:[%s3113_s0 + $0xc0] ss:$16 sps:$4 sm:$0xff]   ;;  %v2151_v59 = vld [vmem:[%s3113_s0 + $0xe4] ss:$16 sps:$4 sm:$0xff]   ;;  %v2162_v60 = vld [vmem:[%s3113_s0 + $0x128] ss:$16 sps:$4 sm:$0xff]  }
  0x15   :  { %v2166_v61 = vld [vmem:[%s3113_s0 + $0x14c] ss:$16 sps:$4 sm:$0xff]   ;;  %v2153_v62 = vld [vmem:[%s3113_s0 + $0xe0] ss:$16 sps:$4 sm:$0xff]   ;;  %v2157_v63 = vld [vmem:[%s3113_s0 + $0x104] ss:$16 sps:$4 sm:$0xff]  }
  0x16   :  { %1059 = vmatpush1.bf16.msra.mxu1 %v2086_v10  ;;  %v2172_v1 = vld [vmem:[%s3113_s0 + $0x16c] ss:$16 sps:$4 sm:$0xff]   ;;  %v2159_v2 = vld [vmem:[%s3113_s0 + $0x100] ss:$16 sps:$4 sm:$0xff]   ;;  %v2163_v3 = vld [vmem:[%s3113_s0 + $0x124] ss:$16 sps:$4 sm:$0xff]  }
  0x17   :  { %1060 = vmatprep.subr.bf16.mxu1 %v2298_v0  ;;  %1348 = vmatpush1.bf16.msra.mxu0 %v2098_v13  ;;  %v2174_v4 = vld [vmem:[%s3113_s0 + $0x168] ss:$16 sps:$4 sm:$0xff]   ;;  %v2178_v5 = vld [vmem:[%s3113_s0 + $0x18c] ss:$16 sps:$4 sm:$0xff]   ;;  %v2165_v6 = vld [vmem:[%s3113_s0 + $0x120] ss:$16 sps:$4 sm:$0xff]  }
  0x18   :  { %1349 = vmatprep.subr.bf16.mxu0 %v2298_v0  ;;  %v2169_v7 = vld [vmem:[%s3113_s0 + $0x144] ss:$16 sps:$4 sm:$0xff]   ;;  %v2180_v8 = vld [vmem:[%s3113_s0 + $0x188] ss:$16 sps:$4 sm:$0xff]   ;;  %v2184_v9 = vld [vmem:[%s3113_s0 + $0x1ac] ss:$16 sps:$4 sm:$0xff]  }
  0x19   :  { %v2171_v10 = vld [vmem:[%s3113_s0 + $0x140] ss:$16 sps:$4 sm:$0xff]   ;;  %v2175_v11 = vld [vmem:[%s3113_s0 + $0x164] ss:$16 sps:$4 sm:$0xff]   ;;  %v2190_v13 = vld [vmem:[%s3113_s0 + $0x1cc] ss:$16 sps:$4 sm:$0xff]  }
  0x1a   :  { %1061 = vmatpush1.bf16.msra.mxu1 %v2087_v12  ;;  %v2186_v12 = vld [vmem:[%s3113_s0 + $0x1a8] ss:$16 sps:$4 sm:$0xff]   ;;  %v2177_v14 = vld [vmem:[%s3113_s0 + $0x160] ss:$16 sps:$4 sm:$0xff]  }
  0x1b   :  { %1062 = vmatprep.subr.bf16.mxu1 %v2298_v0  ;;  %1350 = vmatpush1.bf16.msra.mxu0 %v2100_v17  ;;  %v2192_v16 = vld [vmem:[%s3113_s0 + $0x1c8] ss:$16 sps:$4 sm:$0xff]   ;;  %v2196_v17 = vld [vmem:[%s3113_s0 + $0x1ec] ss:$16 sps:$4 sm:$0xff]  }
  0x1c   :  { %1351 = vmatprep.subr.bf16.mxu0 %v2298_v0 }
  0x1e   :  { %1063 = vmatpush1.bf16.msra.mxu1 %v2089_v15  ;;  %v2181_v15 = vld [vmem:[%s3113_s0 + $0x184] ss:$16 sps:$4 sm:$0xff]  }
  0x1f   :  { %1064 = vmatprep.subr.bf16.mxu1 %v2298_v0  ;;  %1352 = vmatpush1.bf16.msra.mxu0 %v2102_v19  ;;  %v2187_v19 = vld [vmem:[%s3113_s0 + $0x1a4] ss:$16 sps:$4 sm:$0xff]  }
  0x20   :  { %1353 = vmatprep.subr.bf16.mxu0 %v2298_v0 }
  0x22   :  { %1065 = vmatpush1.bf16.msra.mxu1 %v2091_v18  ;;  %v2183_v18 = vld [vmem:[%s3113_s0 + $0x180] ss:$16 sps:$4 sm:$0xff]  }
  0x23   :  { %1066 = vmatprep.subr.bf16.mxu1 %v2298_v0  ;;  %1354 = vmatpush1.bf16.msra.mxu0 %v2104_v21  ;;  %v2202_v21 = vld [vmem:[%s3113_s0 + $0x20c] ss:$16 sps:$4 sm:$0xff]  }
  0x26   :  { %1067 = vmatpush1.bf16.msra.mxu1 %v2093_v20  ;;  %1370 = vmatmul.mubr.bf16.vlgmr.msra.gmra.mrb[0].mxu0 %v2105_v23  ;;  %v2198_v20 = vld [vmem:[%s3113_s0 + $0x1e8] ss:$16 sps:$4 sm:$0xff]   ;;  %v2193_v23 = vld [vmem:[%s3113_s0 + $0x1c4] ss:$16 sps:$4 sm:$0xff]  }
  0x27   :  { %1068 = vmatprep.subr.bf16.mxu1 %v2298_v0  ;;  %1952 = vmatprep.mubr.msk.bf16.mxu0 %vm951_vm0, %v2112_v24  ;;  %v2204_v24 = vld [vmem:[%s3113_s0 + $0x208] ss:$16 sps:$4 sm:$0xff]  }
  0x2a   :  { %1069 = vmatpush1.bf16.msra.mxu1 %v2095_v22  ;;  %v2189_v22 = vld [vmem:[%s3113_s0 + $0x1a0] ss:$16 sps:$4 sm:$0xff]  }
  0x2b   :  { %1070 = vmatprep.subr.bf16.mxu1 %v2298_v0 }
  0x2e   :  { %1071 = vmatpush1.bf16.msra.mxu1 %v2097_v25  ;;  %1378 = vmatmul.mubr.bf16.gmra.mrb[4].mxu0 %v2114_v27  ;;  %v2208_v25 = vld [vmem:[%s3113_s0 + $0x22c] ss:$16 sps:$4 sm:$0xff]   ;;  %v2199_v27 = vld [vmem:[%s3113_s0 + $0x1e4] ss:$16 sps:$4 sm:$0xff]  }
  0x2f   :  { %1072 = vmatprep.subr.bf16.mxu1 %v2298_v0  ;;  %1953 = vmatprep.mubr.msk.bf16.mxu0 %vm951_vm0, %v2118_v28  ;;  %v2210_v28 = vld [vmem:[%s3113_s0 + $0x228] ss:$16 sps:$4 sm:$0xff]  }
  0x32   :  { %1073 = vmatpush1.bf16.msra.mxu1 %v2099_v26  ;;  %v2195_v26 = vld [vmem:[%s3113_s0 + $0x1c0] ss:$16 sps:$4 sm:$0xff]  }
  0x33   :  { %1074 = vmatprep.subr.bf16.mxu1 %v2298_v0 }
  0x36   :  { %1075 = vmatpush1.bf16.msra.mxu1 %v2101_v29  ;;  %1386 = vmatmul.mubr.bf16.gmra.mrb[8].mxu0 %v2120_v31  ;;  %v2214_v29 = vld [vmem:[%s3113_s0 + $0x24c] ss:$16 sps:$4 sm:$0xff]   ;;  %v2205_v31 = vld [vmem:[%s3113_s0 + $0x204] ss:$16 sps:$4 sm:$0xff]  }
  0x37   :  { %1076 = vmatprep.subr.bf16.mxu1 %v2298_v0  ;;  %1954 = vmatprep.mubr.msk.bf16.mxu0 %vm951_vm0, %v2124_v32  ;;  %v2216_v32 = vld [vmem:[%s3113_s0 + $0x248] ss:$16 sps:$4 sm:$0xff]  }
  0x3a   :  { %1077 = vmatpush1.bf16.msra.mxu1 %v2103_v30  ;;  %v2201_v30 = vld [vmem:[%s3113_s0 + $0x1e0] ss:$16 sps:$4 sm:$0xff]  }
  0x3b   :  { %1078 = vmatprep.subr.bf16.mxu1 %v2298_v0  ;;  %v2168_v0 = vld [vmem:[%s3113_s0 + $0x148] ss:$16 sps:$4 sm:$0xff]  }
  0x3e   :  { %1079 = vmatpush1.bf16.msra.mxu1 %v2108_v33  ;;  %1394 = vmatmul.mubr.bf16.gmra.mrb[12].mxu0 %v2126_v36  ;;  %v2220_v33 = vld [vmem:[%s3113_s0 + $0x26c] ss:$16 sps:$4 sm:$0xff]   ;;  %v2222_v36 = vld [vmem:[%s3113_s0 + $0x268] ss:$16 sps:$4 sm:$0xff]  }
  0x3f   :  { %1955 = vmatprep.mubr.msk.bf16.mxu0 %vm951_vm0, %v2130_v37  ;;  %v2226_v37 = vld [vmem:[%s3113_s0 + $0x28c] ss:$16 sps:$4 sm:$0xff]  }
  0x41   :  { %1081 = vmatmul.mubr.bf16.vlgmr.msra.gmra.mrb[0].mxu1 %v2109_v34  ;;  %v2207_v34 = vld [vmem:[%s3113_s0 + $0x200] ss:$16 sps:$4 sm:$0xff]  }
  0x42   :  { %1088 = vmatprep.mubr.bf16.mxu1 %v2115_v35  ;;  %v2211_v35 = vld [vmem:[%s3113_s0 + $0x224] ss:$16 sps:$4 sm:$0xff]  }
  0x46   :  { %1402 = vmatmul.mubr.bf16.gmra.mrb[16].mxu0 %v2132_v40  ;;  %v2228_v40 = vld [vmem:[%s3113_s0 + $0x288] ss:$16 sps:$4 sm:$0xff]  }
  0x47   :  { %1956 = vmatprep.mubr.msk.bf16.mxu0 %vm951_vm0, %v2136_v41  ;;  %v2232_v41 = vld [vmem:[%s3113_s0 + $0x2ac] ss:$16 sps:$4 sm:$0xff]  }
  0x49   :  { %1089 = vmatmul.mubr.bf16.gmra.mrb[4].mxu1 %v2117_v38  ;;  %v2213_v38 = vld [vmem:[%s3113_s0 + $0x220] ss:$16 sps:$4 sm:$0xff]  }
  0x4a   :  { %1096 = vmatprep.mubr.bf16.mxu1 %v2121_v39  ;;  %v2217_v39 = vld [vmem:[%s3113_s0 + $0x244] ss:$16 sps:$4 sm:$0xff]  }
  0x4e   :  { %1410 = vmatmul.mubr.bf16.gmra.mrb[20].mxu0 %v2138_v44  ;;  %v2234_v44 = vld [vmem:[%s3113_s0 + $0x2a8] ss:$16 sps:$4 sm:$0xff]  }
  0x4f   :  { %1957 = vmatprep.mubr.msk.bf16.mxu0 %vm951_vm0, %v2142_v45  ;;  %v2238_v45 = vld [vmem:[%s3113_s0 + $0x2cc] ss:$16 sps:$4 sm:$0xff]  }
  0x51   :  { %1097 = vmatmul.mubr.bf16.gmra.mrb[8].mxu1 %v2123_v42  ;;  %v2219_v42 = vld [vmem:[%s3113_s0 + $0x240] ss:$16 sps:$4 sm:$0xff]  }
  0x52   :  { %1104 = vmatprep.mubr.bf16.mxu1 %v2127_v43  ;;  %v2223_v43 = vld [vmem:[%s3113_s0 + $0x264] ss:$16 sps:$4 sm:$0xff]  }
  0x56   :  { %1418 = vmatmul.mubr.bf16.gmra.mrb[24].mxu0 %v2144_v48  ;;  %v2240_v48 = vld [vmem:[%s3113_s0 + $0x2c8] ss:$16 sps:$4 sm:$0xff]  }
  0x57   :  { %1958 = vmatprep.mubr.msk.bf16.mxu0 %vm951_vm0, %v2148_v49  ;;  %v2244_v49 = vld [vmem:[%s3113_s0 + $0x2ec] ss:$16 sps:$4 sm:$0xff]  }
  0x59   :  { %1105 = vmatmul.mubr.bf16.gmra.mrb[12].mxu1 %v2129_v46  ;;  %v2225_v46 = vld [vmem:[%s3113_s0 + $0x260] ss:$16 sps:$4 sm:$0xff]  }
  0x5a   :  { %1112 = vmatprep.mubr.bf16.mxu1 %v2133_v47  ;;  %v2229_v47 = vld [vmem:[%s3113_s0 + $0x284] ss:$16 sps:$4 sm:$0xff]  }
  0x5e   :  { %1426 = vmatmul.mubr.bf16.gmra.mrb[28].mxu0 %v2150_v52  ;;  %v2246_v52 = vld [vmem:[%s3113_s0 + $0x2e8] ss:$16 sps:$4 sm:$0xff]  }
  0x5f   :  { %1959 = vmatprep.mubr.msk.bf16.mxu0 %vm951_vm0, %v2154_v53  ;;  %v2250_v53 = vld [vmem:[%s3113_s0 + $0x30c] ss:$16 sps:$4 sm:$0xff]  }
  0x61   :  { %1113 = vmatmul.mubr.bf16.gmra.mrb[16].mxu1 %v2135_v50  ;;  %v2231_v50 = vld [vmem:[%s3113_s0 + $0x280] ss:$16 sps:$4 sm:$0xff]  }
  0x62   :  { %1120 = vmatprep.mubr.bf16.mxu1 %v2139_v51  ;;  %v2235_v51 = vld [vmem:[%s3113_s0 + $0x2a4] ss:$16 sps:$4 sm:$0xff]  }
  0x66   :  { %1434 = vmatmul.mubr.bf16.gmra.mrb[32].mxu0 %v2156_v56  ;;  %v2252_v56 = vld [vmem:[%s3113_s0 + $0x308] ss:$16 sps:$4 sm:$0xff]  }
  0x67   :  { %1960 = vmatprep.mubr.msk.bf16.mxu0 %vm951_vm0, %v2160_v57  ;;  %v2256_v57 = vld [vmem:[%s3113_s0 + $0x32c] ss:$16 sps:$4 sm:$0xff]  }
  0x69   :  { %1121 = vmatmul.mubr.bf16.gmra.mrb[20].mxu1 %v2141_v54  ;;  %v2237_v54 = vld [vmem:[%s3113_s0 + $0x2a0] ss:$16 sps:$4 sm:$0xff]  }
  0x6a   :  { %1128 = vmatprep.mubr.bf16.mxu1 %v2145_v55  ;;  %v2241_v55 = vld [vmem:[%s3113_s0 + $0x2c4] ss:$16 sps:$4 sm:$0xff]  }
  0x6e   :  { %1442 = vmatmul.mubr.bf16.gmra.mrb[36].mxu0 %v2162_v60  ;;  %v2258_v60 = vld [vmem:[%s3113_s0 + $0x328] ss:$16 sps:$4 sm:$0xff]  }
  0x6f   :  { %1961 = vmatprep.mubr.msk.bf16.mxu0 %vm951_vm0, %v2166_v61  ;;  %v2262_v61 = vld [vmem:[%s3113_s0 + $0x34c] ss:$16 sps:$4 sm:$0xff]  }
  0x71   :  { %1129 = vmatmul.mubr.bf16.gmra.mrb[24].mxu1 %v2147_v58  ;;  %v2243_v58 = vld [vmem:[%s3113_s0 + $0x2c0] ss:$16 sps:$4 sm:$0xff]  }
  0x72   :  { %1136 = vmatprep.mubr.bf16.mxu1 %v2151_v59  ;;  %v2247_v59 = vld [vmem:[%s3113_s0 + $0x2e4] ss:$16 sps:$4 sm:$0xff]  }
  0x76   :  { %1450 = vmatmul.mubr.bf16.gmra.mrb[40].mxu0 %v2168_v0  ;;  %v2264_v0 = vld [vmem:[%s3113_s0 + $0x348] ss:$16 sps:$4 sm:$0xff]  }
  0x77   :  { %1962 = vmatprep.mubr.msk.bf16.mxu0 %vm951_vm0, %v2172_v1  ;;  %v2268_v1 = vld [vmem:[%s3113_s0 + $0x36c] ss:$16 sps:$4 sm:$0xff]  }
  0x79   :  { %1137 = vmatmul.mubr.bf16.gmra.mrb[28].mxu1 %v2153_v62  ;;  %v2249_v62 = vld [vmem:[%s3113_s0 + $0x2e0] ss:$16 sps:$4 sm:$0xff]  }
  0x7a   :  { %1144 = vmatprep.mubr.bf16.mxu1 %v2157_v63  ;;  %v2253_v63 = vld [vmem:[%s3113_s0 + $0x304] ss:$16 sps:$4 sm:$0xff]  }
  0x7e   :  { %1458 = vmatmul.mubr.bf16.gmra.mrb[44].mxu0 %v2174_v4 }
  0x7f   :  { %1963 = vmatprep.mubr.msk.bf16.mxu0 %vm951_vm0, %v2178_v5 }
  0x81   :  { %1145 = vmatmul.mubr.bf16.gmra.mrb[32].mxu1 %v2159_v2  ;;  %v2255_v2 = vld [vmem:[%s3113_s0 + $0x300] ss:$16 sps:$4 sm:$0xff]  }
  0x82   :  { %1152 = vmatprep.mubr.bf16.mxu1 %v2163_v3  ;;  %v2259_v3 = vld [vmem:[%s3113_s0 + $0x324] ss:$16 sps:$4 sm:$0xff]  }
  0x86   :  { %1466 = vmatmul.mubr.bf16.gmra.mrb[48].mxu0 %v2180_v8  ;;  %v2274_v8 = vld [vmem:[%s3113_s0 + $0x38c] ss:$16 sps:$4 sm:$0xff]  }
  0x87   :  { %1964 = vmatprep.mubr.msk.bf16.mxu0 %vm951_vm0, %v2184_v9 }
  0x89   :  { %1153 = vmatmul.mubr.bf16.gmra.mrb[36].mxu1 %v2165_v6  ;;  %v2270_v6 = vld [vmem:[%s3113_s0 + $0x368] ss:$16 sps:$4 sm:$0xff]  }
  0x8a   :  { %1160 = vmatprep.mubr.bf16.mxu1 %v2169_v7 }
  0x8e   :  { %1474 = vmatmul.mubr.bf16.gmra.mrb[52].mxu0 %v2186_v12 }
  0x8f   :  { %1965 = vmatprep.mubr.msk.bf16.mxu0 %vm951_vm0, %v2190_v13 }
  0x91   :  { %1161 = vmatmul.mubr.bf16.gmra.mrb[40].mxu1 %v2171_v10  ;;  %v2261_v10 = vld [vmem:[%s3113_s0 + $0x320] ss:$16 sps:$4 sm:$0xff]  }
  0x92   :  { %1168 = vmatprep.mubr.bf16.mxu1 %v2175_v11  ;;  %v2265_v11 = vld [vmem:[%s3113_s0 + $0x344] ss:$16 sps:$4 sm:$0xff]  }
  0x96   :  { %1482 = vmatmul.mubr.bf16.gmra.mrb[56].mxu0 %v2192_v16  ;;  %v2280_v16 = vld [vmem:[%s3113_s0 + $0x3ac] ss:$16 sps:$4 sm:$0xff]  }
  0x97   :  { %1966 = vmatprep.mubr.msk.bf16.mxu0 %vm951_vm0, %v2196_v17 }
  0x99   :  { %1169 = vmatmul.mubr.bf16.gmra.mrb[44].mxu1 %v2177_v14  ;;  %v2276_v14 = vld [vmem:[%s3113_s0 + $0x388] ss:$16 sps:$4 sm:$0xff]  }
  0x9a   :  { %1176 = vmatprep.mubr.bf16.mxu1 %v2181_v15 }
  0x9e   :  { %1490 = vmatmul.mubr.bf16.gmra.mrb[60].mxu0 %v2198_v20 }
  0x9f   :  { %1967 = vmatprep.mubr.msk.bf16.mxu0 %vm951_vm0, %v2202_v21 }
  0xa1   :  { %1177 = vmatmul.mubr.bf16.gmra.mrb[48].mxu1 %v2183_v18  ;;  %v2267_v18 = vld [vmem:[%s3113_s0 + $0x340] ss:$16 sps:$4 sm:$0xff]  }
  0xa2   :  { %1184 = vmatprep.mubr.bf16.mxu1 %v2187_v19  ;;  %v2271_v19 = vld [vmem:[%s3113_s0 + $0x364] ss:$16 sps:$4 sm:$0xff]  }
  0xa6   :  { %1498 = vmatmul.mubr.bf16.gmra.mrb[64].mxu0 %v2204_v24  ;;  %v2286_v24 = vld [vmem:[%s3113_s0 + $0x3cc] ss:$16 sps:$4 sm:$0xff]  }
  0xa7   :  { %1968 = vmatprep.mubr.msk.bf16.mxu0 %vm951_vm0, %v2208_v25 }
  0xa9   :  { %1185 = vmatmul.mubr.bf16.gmra.mrb[52].mxu1 %v2189_v22  ;;  %v2282_v22 = vld [vmem:[%s3113_s0 + $0x3a8] ss:$16 sps:$4 sm:$0xff]  }
  0xaa   :  { %1192 = vmatprep.mubr.bf16.mxu1 %v2193_v23 }
  0xae   :  { %1506 = vmatmul.mubr.bf16.gmra.mrb[68].mxu0 %v2210_v28 }
  0xaf   :  { %1969 = vmatprep.mubr.msk.bf16.mxu0 %vm951_vm0, %v2214_v29  ;;  %v2273_v29 = vld [vmem:[%s3113_s0 + $0x360] ss:$16 sps:$4 sm:$0xff]  }
  0xb1   :  { %1193 = vmatmul.mubr.bf16.gmra.mrb[56].mxu1 %v2195_v26 }
  0xb2   :  { %1200 = vmatprep.mubr.bf16.mxu1 %v2199_v27 }
  0xb6   :  { %1514 = vmatmul.mubr.bf16.gmra.mrb[72].mxu0 %v2216_v32 }
  0xb7   :  { %1970 = vmatprep.mubr.msk.bf16.mxu0 %vm951_vm0, %v2220_v33 }
  0xb9   :  { %1201 = vmatmul.mubr.bf16.gmra.mrb[60].mxu1 %v2201_v30 }
  0xba   :  { %1208 = vmatprep.mubr.bf16.mxu1 %v2205_v31  ;;  %v2277_v31 = vld [vmem:[%s3113_s0 + $0x384] ss:$16 sps:$4 sm:$0xff]  }
  0xbe   :  { %1522 = vmatmul.mubr.bf16.gmra.mrb[76].mxu0 %v2222_v36  ;;  %v2288_v36 = vld [vmem:[%s3113_s0 + $0x3c8] ss:$16 sps:$4 sm:$0xff]  }
  0xbf   :  { %1971 = vmatprep.mubr.msk.bf16.mxu0 %vm951_vm0, %v2226_v37 }
  0xc1   :  { %1209 = vmatmul.mubr.bf16.gmra.mrb[64].mxu1 %v2207_v34 }
  0xc2   :  { %1216 = vmatprep.mubr.bf16.mxu1 %v2211_v35 }
  0xc6   :  { %1530 = vmatmul.mubr.bf16.gmra.mrb[80].mxu0 %v2228_v40 }
  0xc7   :  { %1972 = vmatprep.mubr.msk.bf16.mxu0 %vm951_vm0, %v2232_v41 }
  0xc9   :  { %1217 = vmatmul.mubr.bf16.gmra.mrb[68].mxu1 %v2213_v38  ;;  %v2292_v38 = vld [vmem:[%s3113_s0 + $0x3ec] ss:$16 sps:$4 sm:$0xff]  }
  0xca   :  { %1224 = vmatprep.mubr.bf16.mxu1 %v2217_v39 }
  0xce   :  { %1538 = vmatmul.mubr.bf16.gmra.mrb[84].mxu0 %v2234_v44 }
  0xcf   :  { %1973 = vmatprep.mubr.msk.bf16.mxu0 %vm951_vm0, %v2238_v45  ;;  %v2283_v45 = vld [vmem:[%s3113_s0 + $0x3a4] ss:$16 sps:$4 sm:$0xff]  }
  0xd1   :  { %1225 = vmatmul.mubr.bf16.gmra.mrb[72].mxu1 %v2219_v42 }
  0xd2   :  { %1232 = vmatprep.mubr.bf16.mxu1 %v2223_v43  ;;  %v2279_v43 = vld [vmem:[%s3113_s0 + $0x380] ss:$16 sps:$4 sm:$0xff]  }
  0xd6   :  { %1546 = vmatmul.mubr.bf16.gmra.mrb[88].mxu0 %v2240_v48 }
  0xd7   :  { %1974 = vmatprep.mubr.msk.bf16.mxu0 %vm951_vm0, %v2244_v49 }
  0xd9   :  { %1233 = vmatmul.mubr.bf16.gmra.mrb[76].mxu1 %v2225_v46 }
  0xda   :  { %1240 = vmatprep.mubr.bf16.mxu1 %v2229_v47 }
  0xde   :  { %1554 = vmatmul.mubr.bf16.gmra.mrb[92].mxu0 %v2246_v52 }
  0xdf   :  { %1975 = vmatprep.mubr.msk.bf16.mxu0 %vm951_vm0, %v2250_v53 }
  0xe1   :  { %1241 = vmatmul.mubr.bf16.gmra.mrb[80].mxu1 %v2231_v50  ;;  %v2294_v50 = vld [vmem:[%s3113_s0 + $0x3e8] ss:$16 sps:$4 sm:$0xff]  }
  0xe2   :  { %1248 = vmatprep.mubr.bf16.mxu1 %v2235_v51 }
  0xe6   :  { %1562 = vmatmul.mubr.bf16.gmra.mrb[96].mxu0 %v2252_v56  ;;  %v2285_v56 = vld [vmem:[%s3113_s0 + $0x3a0] ss:$16 sps:$4 sm:$0xff]  }
  0xe7   :  { %1976 = vmatprep.mubr.msk.bf16.mxu0 %vm951_vm0, %v2256_v57 }
  0xe9   :  { %1249 = vmatmul.mubr.bf16.gmra.mrb[84].mxu1 %v2237_v54 }
  0xea   :  { %1256 = vmatprep.mubr.bf16.mxu1 %v2241_v55 }
  0xee   :  { %1570 = vmatmul.mubr.bf16.gmra.mrb[100].mxu0 %v2258_v60 }
  0xef   :  { %1977 = vmatprep.mubr.msk.bf16.mxu0 %vm951_vm0, %v2262_v61 }
  0xf1   :  { %1257 = vmatmul.mubr.bf16.gmra.mrb[88].mxu1 %v2243_v58  ;;  %v2289_v58 = vld [vmem:[%s3113_s0 + $0x3c4] ss:$16 sps:$4 sm:$0xff]  }
  0xf2   :  { %1264 = vmatprep.mubr.bf16.mxu1 %v2247_v59 }
  0xf6   :  { %1578 = vmatmul.mubr.bf16.gmra.mrb[104].mxu0 %v2264_v0 }
  0xf7   :  { %1978 = vmatprep.mubr.msk.bf16.mxu0 %vm951_vm0, %v2268_v1 }
  0xf9   :  { %1265 = vmatmul.mubr.bf16.gmra.mrb[92].mxu1 %v2249_v62  ;;  %v1371_v4 = vpop.f32.mrb[0].mxu0 }
  0xfa   :  { %1272 = vmatprep.mubr.bf16.mxu1 %v2253_v63  ;;  %v1373_v5 = vpop.f32.mrb[1].mxu0 }
  0xfb   :  { %v1374_v7 = vpop.f32.mrb[2].mxu0 }
  0xfc   :  { %v1376_v9 = vpop.f32.mrb[3].mxu0 }
  0xfe   :  { %1586 = vmatmul.mubr.bf16.gmra.mrb[108].mxu0 %v2270_v6  ;;  %v2295_v6 = vld [vmem:[%s3113_s0 + $0x3e4] ss:$16 sps:$4 sm:$0xff]  }
  0xff   :  { %1979 = vmatprep.mubr.msk.bf16.mxu0 %vm951_vm0, %v2274_v8 }
 0x101   :  { %1273 = vmatmul.mubr.bf16.gmra.mrb[96].mxu1 %v2255_v2  ;;  %v1379_v12 = vpop.f32.mrb[4].mxu0 }
 0x102   :  { %1280 = vmatprep.mubr.bf16.mxu1 %v2259_v3  ;;  %v1381_v13 = vpop.f32.mrb[5].mxu0 }
 0x103   :  { %v1382_v15 = vpop.f32.mrb[6].mxu0 }
 0x104   :  { %v1384_v17 = vpop.f32.mrb[7].mxu0 }
 0x106   :  { %1594 = vmatmul.mubr.bf16.gmra.mrb[112].mxu0 %v2276_v14 }
 0x107   :  { %1980 = vmatprep.mubr.msk.bf16.mxu0 %vm951_vm0, %v2280_v16  ;;  %v2297_v16 = vld [vmem:[%s3113_s0 + $0x3e0] ss:$16 sps:$4 sm:$0xff]  }
 0x109   :  { %1281 = vmatmul.mubr.bf16.gmra.mrb[100].mxu1 %v2261_v10  ;;  %v1387_v20 = vpop.f32.mrb[8].mxu0 }
 0x10a   :  { %1288 = vmatprep.mubr.bf16.mxu1 %v2265_v11  ;;  %v1389_v21 = vpop.f32.mrb[9].mxu0 }
 0x10b   :  { %v1390_v23 = vpop.f32.mrb[10].mxu0 }
 0x10c   :  { %v1392_v25 = vpop.f32.mrb[11].mxu0 }
 0x10e   :  { %1602 = vmatmul.mubr.bf16.gmra.mrb[116].mxu0 %v2282_v22 }
 0x10f   :  { %1981 = vmatprep.mubr.msk.bf16.mxu0 %vm951_vm0, %v2286_v24 }
 0x111   :  { %1289 = vmatmul.mubr.bf16.gmra.mrb[104].mxu1 %v2267_v18  ;;  %v1395_v34 = vpop.f32.mrb[12].mxu0 }
 0x112   :  { %1296 = vmatprep.mubr.bf16.mxu1 %v2271_v19  ;;  %v1397_v35 = vpop.f32.mrb[13].mxu0 }
 0x113   :  { %v1398_v37 = vpop.f32.mrb[14].mxu0 }
 0x114   :  { %v1082_v26 = vpop.f32.mrb[0].mxu1  ;;  %v1400_v39 = vpop.f32.mrb[15].mxu0 }
 0x115   :  { %v2797_v27 = vadd.f32 %v1371_v4, %v1082_v26  ;;  %v1084_v28 = vpop.f32.mrb[1].mxu1  ;;  %v2291_v4 = vld [vmem:[%s3113_s0 + $0x3c0] ss:$16 sps:$4 sm:$0xff]  }
 0x116   :  { %v1085_v30 = vpop.f32.mrb[2].mxu1  ;;  %1610 = vmatmul.mubr.bf16.gmra.mrb[120].mxu0 %v2288_v36 }
 0x117   :  { %v2806_v32 = vadd.f32 %v1374_v7, %v1085_v30  ;;  %v1087_v33 = vpop.f32.mrb[3].mxu1  ;;  %1982 = vmatprep.mubr.msk.bf16.mxu0 %vm951_vm0, %v2292_v38 }
 0x119   :  { %1297 = vmatmul.mubr.bf16.gmra.mrb[108].mxu1 %v2273_v29  ;;  %v1403_v48 = vpop.f32.mrb[16].mxu0 }
 0x11a   :  { %1304 = vmatprep.mubr.bf16.mxu1 %v2277_v31  ;;  %v1405_v49 = vpop.f32.mrb[17].mxu0 }
 0x11b   :  { %v1406_v51 = vpop.f32.mrb[18].mxu0 }
 0x11c   :  { %v1090_v40 = vpop.f32.mrb[4].mxu1  ;;  %v1408_v52 = vpop.f32.mrb[19].mxu0 }
 0x11d   :  { %v2814_v41 = vadd.f32 %v1379_v12, %v1090_v40  ;;  %v1092_v42 = vpop.f32.mrb[5].mxu1 }
 0x11e   :  { %v1093_v44 = vpop.f32.mrb[6].mxu1  ;;  %1618 = vmatmul.mubr.bf16.gmra.mrb[124].mxu0 %v2294_v50 }
 0x11f   :  { %v2823_v46 = vadd.f32 %v1382_v15, %v1093_v44  ;;  %v1095_v47 = vpop.f32.mrb[7].mxu1 }
 0x121   :  { %1305 = vmatmul.mubr.bf16.gmra.mrb[112].mxu1 %v2279_v43  ;;  %v1411_v61 = vpop.f32.mrb[20].mxu0 }
 0x122   :  { %1312 = vmatprep.mubr.bf16.mxu1 %v2283_v45  ;;  %v1413_v62 = vpop.f32.mrb[21].mxu0 }
 0x123   :  { %v1414_v63 = vpop.f32.mrb[22].mxu0 }
 0x124   :  { %v1098_v53 = vpop.f32.mrb[8].mxu1  ;;  %v1416_v0 = vpop.f32.mrb[23].mxu0 }
 0x125   :  { %v2828_v54 = vadd.f32 %v1387_v20, %v1098_v53  ;;  %v1100_v55 = vpop.f32.mrb[9].mxu1 }
 0x126   :  { %v1101_v57 = vpop.f32.mrb[10].mxu1 }
 0x127   :  { %v2836_v59 = vadd.f32 %v1390_v23, %v1101_v57  ;;  %v1103_v60 = vpop.f32.mrb[11].mxu1 }
 0x129   :  { %1313 = vmatmul.mubr.bf16.gmra.mrb[116].mxu1 %v2285_v56  ;;  %v1419_v9 = vpop.f32.mrb[24].mxu0 }
 0x12a   :  { %1320 = vmatprep.mubr.bf16.mxu1 %v2289_v58  ;;  %v1421_v10 = vpop.f32.mrb[25].mxu0 }
 0x12b   :  { %v1422_v11 = vpop.f32.mrb[26].mxu0 }
 0x12c   :  { %v1106_v1 = vpop.f32.mrb[12].mxu1  ;;  %v1424_v12 = vpop.f32.mrb[27].mxu0 }
 0x12d   :  { %v2838_v2 = vadd.f32 %v1395_v34, %v1106_v1  ;;  %v1108_v3 = vpop.f32.mrb[13].mxu1 }
 0x12e   :  { %v1109_v5 = vpop.f32.mrb[14].mxu1 }
 0x12f   :  { %v2846_v7 = vadd.f32 %v1398_v37, %v1109_v5  ;;  %v1111_v8 = vpop.f32.mrb[15].mxu1 }
 0x131   :  { %1321 = vmatmul.mubr.bf16.gmra.mrb[120].mxu1 %v2291_v4  ;;  %v1427_v20 = vpop.f32.mrb[28].mxu0 }
 0x132   :  { %1328 = vmatprep.mubr.bf16.mxu1 %v2295_v6  ;;  %v1429_v21 = vpop.f32.mrb[29].mxu0 }
 0x133   :  { %v1430_v22 = vpop.f32.mrb[30].mxu0 }
 0x134   :  { %v1114_v13 = vpop.f32.mrb[16].mxu1  ;;  %v1432_v23 = vpop.f32.mrb[31].mxu0 }
 0x135   :  { %v2848_v14 = vadd.f32 %v1403_v48, %v1114_v13  ;;  %v1116_v15 = vpop.f32.mrb[17].mxu1 }
 0x136   :  { %v1117_v17 = vpop.f32.mrb[18].mxu1 }
 0x137   :  { %v2853_v18 = vadd.f32 %v1406_v51, %v1117_v17  ;;  %v1119_v19 = vpop.f32.mrb[19].mxu1 }
 0x139   :  { %1329 = vmatmul.mubr.bf16.gmra.mrb[124].mxu1 %v2297_v16  ;;  %v1435_v31 = vpop.f32.mrb[32].mxu0 }
 0x13a   :  { %v1437_v33 = vpop.f32.mrb[33].mxu0 }
 0x13b   :  { %v1438_v34 = vpop.f32.mrb[34].mxu0 }
 0x13c   :  { %v1122_v24 = vpop.f32.mrb[20].mxu1  ;;  %v1440_v35 = vpop.f32.mrb[35].mxu0 }
 0x13d   :  { %v2855_v25 = vadd.f32 %v1411_v61, %v1122_v24  ;;  %v1124_v26 = vpop.f32.mrb[21].mxu1 }
 0x13e   :  { %v1125_v28 = vpop.f32.mrb[22].mxu1 }
 0x13f   :  { %v2857_v29 = vadd.f32 %v1414_v63, %v1125_v28  ;;  %v1127_v30 = vpop.f32.mrb[23].mxu1 }
 0x141   :  { %v1443_v43 = vpop.f32.mrb[36].mxu0 }
 0x142   :  { %v1445_v44 = vpop.f32.mrb[37].mxu0 }
 0x143   :  { %v1446_v45 = vpop.f32.mrb[38].mxu0 }
 0x144   :  { %v1130_v36 = vpop.f32.mrb[24].mxu1  ;;  %v1448_v47 = vpop.f32.mrb[39].mxu0 }
 0x145   :  { %v2859_v37 = vadd.f32 %v1419_v9, %v1130_v36  ;;  %v1132_v38 = vpop.f32.mrb[25].mxu1 }
 0x146   :  { %v1133_v39 = vpop.f32.mrb[26].mxu1 }
 0x147   :  { %v2861_v40 = vadd.f32 %v1422_v11, %v1133_v39  ;;  %v1135_v42 = vpop.f32.mrb[27].mxu1 }
 0x149   :  { %3122 = vst [vmem:[#allocation2_spill] sm:$0xff] %v2861_v40  ;;  %v1451_v55 = vpop.f32.mrb[40].mxu0 }
 0x14a   :  { %v1453_v56 = vpop.f32.mrb[41].mxu0 }
 0x14b   :  { %v1454_v57 = vpop.f32.mrb[42].mxu0 }
 0x14c   :  { %v1138_v48 = vpop.f32.mrb[28].mxu1  ;;  %v1456_v58 = vpop.f32.mrb[43].mxu0 }
 0x14d   :  { %v2863_v49 = vadd.f32 %v1427_v20, %v1138_v48  ;;  %v1140_v50 = vpop.f32.mrb[29].mxu1 }
 0x14e   :  { %v1141_v51 = vpop.f32.mrb[30].mxu1 }
 0x14f   :  { %3123 = vst [vmem:[#allocation3_spill] sm:$0xff] %v2863_v49  ;;  %v2865_v52 = vadd.f32 %v1430_v22, %v1141_v51  ;;  %v1143_v53 = vpop.f32.mrb[31].mxu1 }
 0x151   :  { %3124 = vst [vmem:[#allocation4_spill] sm:$0xff] %v2865_v52  ;;  %v1459_v4 = vpop.f32.mrb[44].mxu0 }
 0x152   :  { %v1461_v5 = vpop.f32.mrb[45].mxu0 }
 0x153   :  { %v1462_v8 = vpop.f32.mrb[46].mxu0 }
 0x154   :  { %v1146_v60 = vpop.f32.mrb[32].mxu1  ;;  %v1464_v9 = vpop.f32.mrb[47].mxu0 }
 0x155   :  { %v2867_v61 = vadd.f32 %v1435_v31, %v1146_v60  ;;  %v1148_v62 = vpop.f32.mrb[33].mxu1 }
 0x156   :  { %v1149_v63 = vpop.f32.mrb[34].mxu1 }
 0x157   :  { %v2871_v1 = vadd.f32 %v1438_v34, %v1149_v63  ;;  %v1151_v3 = vpop.f32.mrb[35].mxu1 }
 0x159   :  { %v1467_v19 = vpop.f32.mrb[48].mxu0 }
 0x15a   :  { %v1469_v20 = vpop.f32.mrb[49].mxu0 }
 0x15b   :  { %v1470_v22 = vpop.f32.mrb[50].mxu0 }
 0x15c   :  { %v1154_v10 = vpop.f32.mrb[36].mxu1  ;;  %v1472_v23 = vpop.f32.mrb[51].mxu0 }
 0x15d   :  { %v2875_v11 = vadd.f32 %v1443_v43, %v1154_v10  ;;  %v1156_v12 = vpop.f32.mrb[37].mxu1 }
 0x15e   :  { %v1157_v13 = vpop.f32.mrb[38].mxu1 }
 0x15f   :  { %v2879_v16 = vadd.f32 %v1446_v45, %v1157_v13  ;;  %v1159_v17 = vpop.f32.mrb[39].mxu1 }
 0x161   :  { %v1475_v35 = vpop.f32.mrb[52].mxu0 }
 0x162   :  { %v1477_v36 = vpop.f32.mrb[53].mxu0 }
 0x163   :  { %v1478_v39 = vpop.f32.mrb[54].mxu0 }
 0x164   :  { %v1162_v24 = vpop.f32.mrb[40].mxu1  ;;  %v1480_v42 = vpop.f32.mrb[55].mxu0 }
 0x165   :  { %v2883_v26 = vadd.f32 %v1451_v55, %v1162_v24  ;;  %v1164_v28 = vpop.f32.mrb[41].mxu1 }
 0x166   :  { %v1165_v30 = vpop.f32.mrb[42].mxu1 }
 0x167   :  { %v2887_v33 = vadd.f32 %v1454_v57, %v1165_v30  ;;  %v1167_v34 = vpop.f32.mrb[43].mxu1 }
 0x169   :  { %v1483_v53 = vpop.f32.mrb[56].mxu0 }
 0x16a   :  { %v1485_v55 = vpop.f32.mrb[57].mxu0 }
 0x16b   :  { %v1486_v57 = vpop.f32.mrb[58].mxu0 }
 0x16c   :  { %v1170_v43 = vpop.f32.mrb[44].mxu1  ;;  %v1488_v58 = vpop.f32.mrb[59].mxu0 }
 0x16d   :  { %v2891_v44 = vadd.f32 %v1459_v4, %v1170_v43  ;;  %v1172_v45 = vpop.f32.mrb[45].mxu1 }
 0x16e   :  { %v1173_v47 = vpop.f32.mrb[46].mxu1 }
 0x16f   :  { %v2895_v50 = vadd.f32 %v1462_v8, %v1173_v47  ;;  %v1175_v51 = vpop.f32.mrb[47].mxu1 }
 0x171   :  { %v1491_v9 = vpop.f32.mrb[60].mxu0 }
 0x172   :  { %v1493_v10 = vpop.f32.mrb[61].mxu0 }
 0x173   :  { %v1494_v13 = vpop.f32.mrb[62].mxu0 }
 0x174   :  { %v1178_v60 = vpop.f32.mrb[48].mxu1  ;;  %v1496_v17 = vpop.f32.mrb[63].mxu0 }
 0x175   :  { %v2899_v62 = vadd.f32 %v1467_v19, %v1178_v60  ;;  %v1180_v63 = vpop.f32.mrb[49].mxu1 }
 0x176   :  { %v1181_v3 = vpop.f32.mrb[50].mxu1 }
 0x177   :  { %v2903_v5 = vadd.f32 %v1470_v22, %v1181_v3  ;;  %v1183_v8 = vpop.f32.mrb[51].mxu1 }
 0x179   :  { %v1499_v34 = vpop.f32.mrb[64].mxu0 }
 0x17a   :  { %v1501_v36 = vpop.f32.mrb[65].mxu0 }
 0x17b   :  { %v1502_v43 = vpop.f32.mrb[66].mxu0 }
 0x17c   :  { %v1186_v20 = vpop.f32.mrb[52].mxu1  ;;  %v1504_v45 = vpop.f32.mrb[67].mxu0 }
 0x17d   :  { %v2907_v23 = vadd.f32 %v1475_v35, %v1186_v20  ;;  %v1188_v19 = vpop.f32.mrb[53].mxu1 }
 0x17e   :  { %v1189_v24 = vpop.f32.mrb[54].mxu1 }
 0x17f   :  { %v2911_v30 = vadd.f32 %v1478_v39, %v1189_v24  ;;  %v1191_v22 = vpop.f32.mrb[55].mxu1 }
 0x181   :  { %v1507_v63 = vpop.f32.mrb[68].mxu0 }
 0x182   :  { %v1509_v3 = vpop.f32.mrb[69].mxu0 }
 0x183   :  { %v1510_v10 = vpop.f32.mrb[70].mxu0 }
 0x184   :  { %v1194_v47 = vpop.f32.mrb[56].mxu1  ;;  %v1512_v17 = vpop.f32.mrb[71].mxu0 }
 0x185   :  { %v2915_v51 = vadd.f32 %v1483_v53, %v1194_v47  ;;  %v1196_v35 = vpop.f32.mrb[57].mxu1 }
 0x186   :  { %v1197_v55 = vpop.f32.mrb[58].mxu1 }
 0x187   :  { %v2919_v60 = vadd.f32 %v1486_v57, %v1197_v55  ;;  %v1199_v39 = vpop.f32.mrb[59].mxu1 }
 0x189   :  { %3125 = vst [vmem:[#allocation5_spill] sm:$0xff] %v2919_v60  ;;  %v1515_v45 = vpop.f32.mrb[72].mxu0 }
 0x18a   :  { %v1517_v47 = vpop.f32.mrb[73].mxu0 }
 0x18b   :  { %v1518_v55 = vpop.f32.mrb[74].mxu0 }
 0x18c   :  { %v1202_v20 = vpop.f32.mrb[60].mxu1  ;;  %v1520_v39 = vpop.f32.mrb[75].mxu0 }
 0x18d   :  { %v2923_v19 = vadd.f32 %v1491_v9, %v1202_v20  ;;  %v1204_v53 = vpop.f32.mrb[61].mxu1 }
 0x18e   :  { %v1205_v24 = vpop.f32.mrb[62].mxu1 }
 0x18f   :  { %3126 = vst [vmem:[#allocation6_spill] sm:$0xff] %v2923_v19  ;;  %v2927_v36 = vadd.f32 %v1494_v13, %v1205_v24  ;;  %v1207_v57 = vpop.f32.mrb[63].mxu1 }
 0x191   :  { %3127 = vst [vmem:[#allocation7_spill] sm:$0xff] %v2927_v36  ;;  %v1523_v58 = vpop.f32.mrb[76].mxu0 }
 0x192   :  { %v1525_v22 = vpop.f32.mrb[77].mxu0 }
 0x193   :  { %v1526_v13 = vpop.f32.mrb[78].mxu0 }
 0x194   :  { %v1210_v3 = vpop.f32.mrb[64].mxu1  ;;  %v1528_v24 = vpop.f32.mrb[79].mxu0 }
 0x195   :  { %v2931_v17 = vadd.f32 %v1499_v34, %v1210_v3  ;;  %v1212_v9 = vpop.f32.mrb[65].mxu1 }
 0x196   :  { %v1213_v20 = vpop.f32.mrb[66].mxu1 }
 0x197   :  { %v2933_v53 = vadd.f32 %v1502_v43, %v1213_v20  ;;  %v1215_v8 = vpop.f32.mrb[67].mxu1 }
 0x199   :  { %v1531_v12 = vpop.f32.mrb[80].mxu0 }
 0x19a   :  { %v1533_v34 = vpop.f32.mrb[81].mxu0 }
 0x19b   :  { %v1534_v3 = vpop.f32.mrb[82].mxu0 }
 0x19c   :  { %v1218_v57 = vpop.f32.mrb[68].mxu1  ;;  %v1536_v9 = vpop.f32.mrb[83].mxu0 }
 0x19d   :  { %v2935_v42 = vadd.f32 %v1507_v63, %v1218_v57  ;;  %v1220_v47 = vpop.f32.mrb[69].mxu1 }
 0x19e   :  { %v1221_v28 = vpop.f32.mrb[70].mxu1 }
 0x19f   :  { %v2937_v35 = vadd.f32 %v1510_v10, %v1221_v28  ;;  %v1223_v39 = vpop.f32.mrb[71].mxu1 }
 0x1a1   :  { %v1539_v56 = vpop.f32.mrb[84].mxu0 }
 0x1a2   :  { %v1541_v63 = vpop.f32.mrb[85].mxu0 }
 0x1a3   :  { %v1542_v57 = vpop.f32.mrb[86].mxu0 }
 0x1a4   :  { %v1226_v4 = vpop.f32.mrb[72].mxu1  ;;  %v1544_v47 = vpop.f32.mrb[87].mxu0 }
 0x1a5   :  { %v2939_v43 = vadd.f32 %v1515_v45, %v1226_v4  ;;  %v1228_v8 = vpop.f32.mrb[73].mxu1 }
 0x1a6   :  { %v1229_v20 = vpop.f32.mrb[74].mxu1 }
 0x1a7   :  { %v2941_v22 = vadd.f32 %v1518_v55, %v1229_v20  ;;  %v1231_v24 = vpop.f32.mrb[75].mxu1 }
 0x1a9   :  { %v1547_v38 = vpop.f32.mrb[88].mxu0 }
 0x1aa   :  { %v1549_v4 = vpop.f32.mrb[89].mxu0 }
 0x1ab   :  { %v1550_v45 = vpop.f32.mrb[90].mxu0 }
 0x1ac   :  { %v1234_v48 = vpop.f32.mrb[76].mxu1  ;;  %v1552_v8 = vpop.f32.mrb[91].mxu0 }
 0x1ad   :  { %v2943_v28 = vadd.f32 %v1523_v58, %v1234_v48  ;;  %v1236_v10 = vpop.f32.mrb[77].mxu1 }
 0x1ae   :  { %v1237_v39 = vpop.f32.mrb[78].mxu1 }
 0x1af   :  { %v2945_v34 = vadd.f32 %v1526_v13, %v1237_v39  ;;  %v1239_v9 = vpop.f32.mrb[79].mxu1 }
 0x1b1   :  { %v1555_v21 = vpop.f32.mrb[92].mxu0 }
 0x1b2   :  { %v1557_v48 = vpop.f32.mrb[93].mxu0 }
 0x1b3   :  { %v1558_v58 = vpop.f32.mrb[94].mxu0 }
 0x1b4   :  { %v1242_v31 = vpop.f32.mrb[80].mxu1  ;;  %v1560_v10 = vpop.f32.mrb[95].mxu0 }
 0x1b5   :  { %v2947_v55 = vadd.f32 %v1531_v12, %v1242_v31  ;;  %v1244_v20 = vpop.f32.mrb[81].mxu1 }
 0x1b6   :  { %v1245_v24 = vpop.f32.mrb[82].mxu1 }
 0x1b7   :  { %v2949_v63 = vadd.f32 %v1534_v3, %v1245_v24  ;;  %v1247_v47 = vpop.f32.mrb[83].mxu1 }
 0x1b9   :  { %v1563_v6 = vpop.f32.mrb[96].mxu0 }
 0x1ba   :  { %v1565_v31 = vpop.f32.mrb[97].mxu0 }
 0x1bb   :  { %v1566_v12 = vpop.f32.mrb[98].mxu0 }
 0x1bc   :  { %v1250_v15 = vpop.f32.mrb[84].mxu1  ;;  %v1568_v20 = vpop.f32.mrb[99].mxu0 }
 0x1bd   :  { %v2951_v13 = vadd.f32 %v1539_v56, %v1250_v15  ;;  %v1252_v39 = vpop.f32.mrb[85].mxu1 }
 0x1be   :  { %v1253_v9 = vpop.f32.mrb[86].mxu1 }
 0x1bf   :  { %v2953_v4 = vadd.f32 %v1542_v57, %v1253_v9  ;;  %v1255_v8 = vpop.f32.mrb[87].mxu1 }
 0x1c1   :  { %v1571_v36 = vpop.f32.mrb[100].mxu0 }
 0x1c2   :  { %v1573_v15 = vpop.f32.mrb[101].mxu0 }
 0x1c3   :  { %v1574_v56 = vpop.f32.mrb[102].mxu0 }
 0x1c4   :  { %v1258_v0 = vpop.f32.mrb[88].mxu1  ;;  %v1576_v39 = vpop.f32.mrb[103].mxu0 }
 0x1c5   :  { %v2955_v3 = vadd.f32 %v1547_v38, %v1258_v0  ;;  %v1260_v24 = vpop.f32.mrb[89].mxu1 }
 0x1c6   :  { %v1261_v47 = vpop.f32.mrb[90].mxu1 }
 0x1c7   :  { %v2957_v48 = vadd.f32 %v1550_v45, %v1261_v47  ;;  %v1263_v10 = vpop.f32.mrb[91].mxu1 }
 0x1c9   :  { %v1579_v19 = vpop.f32.mrb[104].mxu0 }
 0x1ca   :  { %v1581_v0 = vpop.f32.mrb[105].mxu0 }
 0x1cb   :  { %v1582_v38 = vpop.f32.mrb[106].mxu0 }
 0x1cc   :  { %v1266_v52 = vpop.f32.mrb[92].mxu1  ;;  %v1584_v24 = vpop.f32.mrb[107].mxu0 }
 0x1cd   :  { %v2959_v57 = vadd.f32 %v1555_v21, %v1266_v52  ;;  %v1268_v9 = vpop.f32.mrb[93].mxu1  ;;  %v2967_v52 = vld [vmem:[%s3114_s2] ss:$0 sm:$0xff] }
 0x1ce   :  { %v1269_v8 = vpop.f32.mrb[94].mxu1 }
 0x1cf   :  { %v2961_v31 = vadd.f32 %v1558_v58, %v1269_v8  ;;  %v1271_v20 = vpop.f32.mrb[95].mxu1  ;;  %v3128_v58 = vmax.f32 %v2797_v27, %v2867_v61 }
 0x1d1   :  { %v1587_v40 = vpop.f32.mrb[108].mxu0 }
 0x1d2   :  { %v1589_v21 = vpop.f32.mrb[109].mxu0 }
 0x1d4   :  { %v1274_v49 = vpop.f32.mrb[96].mxu1 }
 0x1d5   :  { %v1564_v45 = vadd.f32 %v1563_v6, %v1274_v49  ;;  %v1276_v47 = vpop.f32.mrb[97].mxu1  ;;  %v1590_v49 = vpop.f32.mrb[110].mxu0 }
 0x1d6   :  { %v1277_v10 = vpop.f32.mrb[98].mxu1  ;;  %v1592_v6 = vpop.f32.mrb[111].mxu0 }
 0x1d7   :  { %v1642_v15 = vmax.f32 %v2931_v17, %v1564_v45  ;;  %v1567_v60 = vadd.f32 %v1566_v12, %v1277_v10  ;;  %v1279_v39 = vpop.f32.mrb[99].mxu1  ;;  %v3129_v17 = vmax.f32 %v2806_v32, %v2871_v1  ;;  %v3130_v1 = vmax.f32 %v2814_v41, %v2875_v11 }
 0x1d9   :  { %v1658_v9 = vmax.f32 %v3128_v58, %v1642_v15  ;;  %v1643_v8 = vmax.f32 %v2933_v53, %v1567_v60  ;;  %v1595_v21 = vpop.f32.mrb[112].mxu0 }
 0x1da   :  { %v1597_v58 = vpop.f32.mrb[113].mxu0 }
 0x1db   :  { %v1681_v20 = vadd.f32 %v2967_v52, %v1658_v9  ;;  %v1659_v12 = vmax.f32 %v3129_v17, %v1643_v8  ;;  %v1598_v8 = vpop.f32.mrb[114].mxu0 }
 0x1dc   :  { %v1282_v0 = vpop.f32.mrb[100].mxu1  ;;  %v1600_v6 = vpop.f32.mrb[115].mxu0 }
 0x1dd   :  { %v1697_v24 = vmax.f32 %v1681_v20, 0.0  ;;  %v1682_v45 = vadd.f32 %v2967_v52, %v1659_v12  ;;  %v1572_v47 = vadd.f32 %v1571_v36, %v1282_v0  ;;  %v1284_v10 = vpop.f32.mrb[101].mxu1 }
 0x1de   :  { %v1285_v39 = vpop.f32.mrb[102].mxu1 }
 0x1df   :  { %v2000_v27 = vpack.c.bf16 %v1697_v24, %v1697_v24  ;;  %v1698_v61 = vmax.f32 %v1682_v45, 0.0  ;;  %v1644_v60 = vmax.f32 %v2935_v42, %v1572_v47  ;;  %v1575_v53 = vadd.f32 %v1574_v56, %v1285_v39  ;;  %v1287_v15 = vpop.f32.mrb[103].mxu1 }
 0x1e0   :  { %v3131_v56 = vmax.f32 %v2823_v46, %v2879_v16  ;;  %v3132_v16 = vmax.f32 %v2828_v54, %v2883_v26 }
 0x1e1   :  { %1778 = vst.msk [vmem:[%s3115_s3] sm:$0xf] %vm1777_vm1, %v2000_v27  ;;  %v2001_v32 = vpack.c.bf16 %v1698_v61, %v1698_v61  ;;  %v1660_v36 = vmax.f32 %v3130_v1, %v1644_v60  ;;  %v1645_v9 = vmax.f32 %v2937_v35, %v1575_v53  ;;  %v1603_v27 = vpop.f32.mrb[116].mxu0 }
 0x1e2   :  { %v1605_v61 = vpop.f32.mrb[117].mxu0 }
 0x1e3   :  { %1779 = vst.msk [vmem:[%s3115_s3 + $0x4] sm:$0xf] %vm1777_vm1, %v2001_v32  ;;  %v1683_v42 = vadd.f32 %v2967_v52, %v1660_v36  ;;  %v1661_v20 = vmax.f32 %v3131_v56, %v1645_v9  ;;  %v1606_v53 = vpop.f32.mrb[118].mxu0 }
 0x1e4   :  { %v1290_v17 = vpop.f32.mrb[104].mxu1  ;;  %v1608_v15 = vpop.f32.mrb[119].mxu0 }
 0x1e5   :  { %v1699_v12 = vmax.f32 %v1683_v42, 0.0  ;;  %v1684_v41 = vadd.f32 %v2967_v52, %v1661_v20  ;;  %v1580_v11 = vadd.f32 %v1579_v19, %v1290_v17  ;;  %v1292_v0 = vpop.f32.mrb[105].mxu1 }
 0x1e6   :  { %v1293_v35 = vpop.f32.mrb[106].mxu1 }
 0x1e7   :  { %v2002_v24 = vpack.c.bf16 %v1699_v12, %v1699_v12  ;;  %v1700_v45 = vmax.f32 %v1684_v41, 0.0  ;;  %v1646_v47 = vmax.f32 %v2939_v43, %v1580_v11  ;;  %v1583_v10 = vadd.f32 %v1582_v38, %v1293_v35  ;;  %v1295_v39 = vpop.f32.mrb[107].mxu1 }
 0x1e8   :  { %v3133_v38 = vmax.f32 %v2836_v59, %v2887_v33  ;;  %v3134_v33 = vmax.f32 %v2838_v2, %v2891_v44 }
 0x1e9   :  { %1780 = vst.msk [vmem:[%s3115_s3 + $0x8] sm:$0xf] %vm1777_vm1, %v2002_v24  ;;  %v2003_v46 = vpack.c.bf16 %v1700_v45, %v1700_v45  ;;  %v1662_v19 = vmax.f32 %v3132_v16, %v1646_v47  ;;  %v1647_v60 = vmax.f32 %v2941_v22, %v1583_v10  ;;  %v1611_v17 = vpop.f32.mrb[120].mxu0 }
 0x1ea   :  { %v1613_v12 = vpop.f32.mrb[121].mxu0 }
 0x1eb   :  { %1781 = vst.msk [vmem:[%s3115_s3 + $0xc] sm:$0xf] %vm1777_vm1, %v2003_v46  ;;  %v1685_v43 = vadd.f32 %v2967_v52, %v1662_v19  ;;  %v1663_v58 = vmax.f32 %v3133_v38, %v1647_v60  ;;  %v1614_v11 = vpop.f32.mrb[122].mxu0 }
 0x1ec   :  { %v1298_v32 = vpop.f32.mrb[108].mxu1  ;;  %v1616_v0 = vpop.f32.mrb[123].mxu0 }
 0x1ed   :  { %v1701_v1 = vmax.f32 %v1685_v43, 0.0  ;;  %v1686_v54 = vadd.f32 %v2967_v52, %v1663_v58  ;;  %v1588_v26 = vadd.f32 %v1587_v40, %v1298_v32  ;;  %v1300_v36 = vpop.f32.mrb[109].mxu1 }
 0x1ee   :  { %v1301_v22 = vpop.f32.mrb[110].mxu1 }
 0x1ef   :  { %v2004_v9 = vpack.c.bf16 %v1701_v1, %v1701_v1  ;;  %v1702_v6 = vmax.f32 %v1686_v54, 0.0  ;;  %v1648_v42 = vmax.f32 %v2943_v28, %v1588_v26  ;;  %v1591_v56 = vadd.f32 %v1590_v49, %v1301_v22  ;;  %v1303_v20 = vpop.f32.mrb[111].mxu1 }
 0x1f0   :  { %v3135_v49 = vmax.f32 %v2846_v7, %v2895_v50  ;;  %v3136_v50 = vmax.f32 %v2848_v14, %v2899_v62 }
 0x1f1   :  { %1782 = vst.msk [vmem:[%s3115_s3 + $0x10] sm:$0xf] %vm1777_vm1, %v2004_v9  ;;  %v2005_v59 = vpack.c.bf16 %v1702_v6, %v1702_v6  ;;  %v1664_v40 = vmax.f32 %v3134_v33, %v1648_v42  ;;  %v1649_v41 = vmax.f32 %v2945_v34, %v1591_v56  ;;  %v1619_v19 = vpop.f32.mrb[124].mxu0 }
 0x1f2   :  { %v1621_v60 = vpop.f32.mrb[125].mxu0 }
 0x1f3   :  { %1783 = vst.msk [vmem:[%s3115_s3 + $0x14] sm:$0xf] %vm1777_vm1, %v2005_v59  ;;  %v1687_v28 = vadd.f32 %v2967_v52, %v1664_v40  ;;  %v1665_v35 = vmax.f32 %v3135_v49, %v1649_v41  ;;  %v1622_v43 = vpop.f32.mrb[126].mxu0  ;;  %v3144_v60 = vld [vmem:[#allocation3_spill] sm:$0xff] }
 0x1f4   :  { %v1306_v24 = vpop.f32.mrb[112].mxu1  ;;  %v1624_v38 = vpop.f32.mrb[127].mxu0 }
 0x1f5   :  { %v1703_v45 = vmax.f32 %v1687_v28, 0.0  ;;  %v1688_v2 = vadd.f32 %v2967_v52, %v1665_v35  ;;  %v1596_v44 = vadd.f32 %v1595_v21, %v1306_v24  ;;  %v1308_v47 = vpop.f32.mrb[113].mxu1  ;;  %v3142_v35 = vld [vmem:[#allocation5_spill] sm:$0xff] }
 0x1f6   :  { %v1309_v34 = vpop.f32.mrb[114].mxu1 }
 0x1f7   :  { %v2006_v10 = vpack.c.bf16 %v1703_v45, %v1703_v45  ;;  %v1704_v39 = vmax.f32 %v1688_v2, 0.0  ;;  %v1650_v61 = vmax.f32 %v2947_v55, %v1596_v44  ;;  %v1599_v46 = vadd.f32 %v1598_v8, %v1309_v34  ;;  %v1311_v16 = vpop.f32.mrb[115].mxu1 }
 0x1f8   :  { %v3137_v8 = vmax.f32 %v2853_v18, %v2903_v5  ;;  %v3138_v5 = vmax.f32 %v2855_v25, %v2907_v23 }
 0x1f9   :  { %1784 = vst.msk [vmem:[%s3115_s3 + $0x18] sm:$0xf] %vm1777_vm1, %v2006_v10  ;;  %v2007_v7 = vpack.c.bf16 %v1704_v39, %v1704_v39  ;;  %v1666_v21 = vmax.f32 %v3136_v50, %v1650_v61  ;;  %v1651_v15 = vmax.f32 %v2949_v63, %v1599_v46 }
 0x1fb   :  { %1785 = vst.msk [vmem:[%s3115_s3 + $0x1c] sm:$0xf] %vm1777_vm1, %v2007_v7  ;;  %v1689_v55 = vadd.f32 %v2967_v52, %v1666_v21  ;;  %v1667_v58 = vmax.f32 %v3137_v8, %v1651_v15  ;;  %v3145_v7 = vld [vmem:[#allocation6_spill] sm:$0xff]  ;;  %v3147_v15 = vld [vmem:[#allocation4_spill] sm:$0xff] }
 0x1fc   :  { %v1314_v32 = vpop.f32.mrb[116].mxu1  ;;  %v3146_v50 = vmax.f32 %v3144_v60, %v3145_v7 }
 0x1fd   :  { %v1705_v1 = vmax.f32 %v1689_v55, 0.0  ;;  %v1690_v14 = vadd.f32 %v2967_v52, %v1667_v58  ;;  %v1604_v62 = vadd.f32 %v1603_v27, %v1314_v32  ;;  %v1316_v54 = vpop.f32.mrb[117].mxu1 }
 0x1fe   :  { %v1317_v63 = vpop.f32.mrb[118].mxu1 }
 0x1ff   :  { %v2008_v26 = vpack.c.bf16 %v1705_v1, %v1705_v1  ;;  %v1706_v36 = vmax.f32 %v1690_v14, 0.0  ;;  %v1652_v22 = vmax.f32 %v2951_v13, %v1604_v62  ;;  %v1607_v9 = vadd.f32 %v1606_v53, %v1317_v63  ;;  %v1319_v6 = vpop.f32.mrb[119].mxu1 }
 0x200   :  { %v3139_v53 = vmax.f32 %v2857_v29, %v2911_v30  ;;  %v3140_v30 = vmax.f32 %v2859_v37, %v2915_v51 }
 0x201   :  { %1786 = vst.msk [vmem:[%s3115_s3 + $0x20] sm:$0xf] %vm1777_vm1, %v2008_v26  ;;  %v2009_v18 = vpack.c.bf16 %v1706_v36, %v1706_v36  ;;  %v1668_v42 = vmax.f32 %v3138_v5, %v1652_v22  ;;  %v1653_v27 = vmax.f32 %v2953_v4, %v1607_v9 }
 0x203   :  { %1787 = vst.msk [vmem:[%s3115_s3 + $0x24] sm:$0xf] %vm1777_vm1, %v2009_v18  ;;  %v1691_v13 = vadd.f32 %v2967_v52, %v1668_v42  ;;  %v1669_v56 = vmax.f32 %v3139_v53, %v1653_v27 }
 0x204   :  { %v1322_v20 = vpop.f32.mrb[120].mxu1 }
 0x205   :  { %v1707_v12 = vmax.f32 %v1691_v13, 0.0  ;;  %v1692_v59 = vadd.f32 %v2967_v52, %v1669_v56  ;;  %v1612_v33 = vadd.f32 %v1611_v17, %v1322_v20  ;;  %v1324_v25 = vpop.f32.mrb[121].mxu1 }
 0x206   :  { %v1325_v23 = vpop.f32.mrb[122].mxu1 }
 0x207   :  { %v2010_v40 = vpack.c.bf16 %v1707_v12, %v1707_v12  ;;  %v1708_v4 = vmax.f32 %v1692_v59, 0.0  ;;  %v1654_v41 = vmax.f32 %v2955_v3, %v1612_v33  ;;  %v1615_v0 = vadd.f32 %v1614_v11, %v1325_v23  ;;  %v1327_v28 = vpop.f32.mrb[123].mxu1  ;;  %v3141_v11 = vld [vmem:[#allocation2_spill] sm:$0xff] }
 0x208   :  { %v3143_v24 = vmax.f32 %v3141_v11, %v3142_v35 }
 0x209   :  { %1788 = vst.msk [vmem:[%s3115_s3 + $0x28] sm:$0xf] %vm1777_vm1, %v2010_v40  ;;  %v2011_v29 = vpack.c.bf16 %v1708_v4, %v1708_v4  ;;  %v1670_v49 = vmax.f32 %v3140_v30, %v1654_v41  ;;  %v1655_v17 = vmax.f32 %v2957_v48, %v1615_v0 }
 0x20b   :  { %1789 = vst.msk [vmem:[%s3115_s3 + $0x2c] sm:$0xf] %vm1777_vm1, %v2011_v29  ;;  %v1693_v3 = vadd.f32 %v2967_v52, %v1670_v49  ;;  %v1671_v45 = vmax.f32 %v3143_v24, %v1655_v17 }
 0x20c   :  { %v1330_v2 = vpop.f32.mrb[124].mxu1 }
 0x20d   :  { %v1709_v44 = vmax.f32 %v1693_v3, 0.0  ;;  %v1694_v47 = vadd.f32 %v2967_v52, %v1671_v45  ;;  %v1620_v34 = vadd.f32 %v1619_v19, %v1330_v2  ;;  %v1332_v37 = vpop.f32.mrb[125].mxu1 }
 0x20e   :  { %v1333_v51 = vpop.f32.mrb[126].mxu1 }
 0x20f   :  { %v2012_v10 = vpack.c.bf16 %v1709_v44, %v1709_v44  ;;  %v1710_v48 = vmax.f32 %v1694_v47, 0.0  ;;  %v1656_v39 = vmax.f32 %v2959_v57, %v1620_v34  ;;  %v1623_v61 = vadd.f32 %v1622_v43, %v1333_v51  ;;  %v1335_v46 = vpop.f32.mrb[127].mxu1  ;;  %v3148_v43 = vld [vmem:[#allocation7_spill] sm:$0xff] }
 0x210   :  { %v3149_v38 = vmax.f32 %v3147_v15, %v3148_v43 }
 0x211   :  { %1790 = vst.msk [vmem:[%s3115_s3 + $0x30] sm:$0xf] %vm1777_vm1, %v2012_v10  ;;  %v2013_v16 = vpack.c.bf16 %v1710_v48, %v1710_v48  ;;  %v1672_v21 = vmax.f32 %v3146_v50, %v1656_v39  ;;  %v1657_v19 = vmax.f32 %v2961_v31, %v1623_v61 }
 0x213   :  { %1791 = vst.msk [vmem:[%s3115_s3 + $0x34] sm:$0xf] %vm1777_vm1, %v2013_v16  ;;  %v1695_v57 = vadd.f32 %v2967_v52, %v1672_v21  ;;  %v1673_v55 = vmax.f32 %v3149_v38, %v1657_v19 }
 0x215   :  { %v1711_v8 = vmax.f32 %v1695_v57, 0.0  ;;  %v1696_v58 = vadd.f32 %v2967_v52, %v1673_v55 }
 0x217   :  { %v2014_v32 = vpack.c.bf16 %v1711_v8, %v1711_v8  ;;  %v1712_v1 = vmax.f32 %v1696_v58, 0.0 }
 0x219   :  { %1792 = vst.msk [vmem:[%s3115_s3 + $0x38] sm:$0xf] %vm1777_vm1, %v2014_v32  ;;  %v2015_v31 = vpack.c.bf16 %v1712_v1, %v1712_v1 }
 0x21b   :  { %1793 = vst.msk [vmem:[%s3115_s3 + $0x3c] sm:$0xf] %vm1777_vm1, %v2015_v31 }

// kernel: _cnn_forward_jit.7
= control target key start
LH: loop header
LB: loop body
LE: loop exit
PB: predicated region body
PF: predicated region fallthrough
CT: control target
= control target key end

     0   :  { %vm1431_vm0 = vcmask 261120   ;;  %vm2178_vm1 = vcmask 257024   ;;  %s3846_s1 = inlined_call_operand.vmem [shape: bf16[1568,32], index: 1, kind: input, shape index: {}]   ;;  %s3847_s0 = inlined_call_operand.vmem [shape: bf16[128,1568], index: 0, kind: input, shape index: {}]   ;;  %s3848_s2 = inlined_call_operand.vmem [shape: f32[1,32], index: 2, kind: input, shape index: {}]   ;;  %s3849_s3 = inlined_call_operand.vmem [shape: bf16[32,32], index: 3, kind: output, shape index: {}]  }
   0x1   :  { %v2824_v0 = vld [vmem:[%s3846_s1 + $0x40] sm:$0xff]   ;;  %v2828_v4 = vld [vmem:[%s3846_s1 + $0x48] sm:$0xff]   ;;  %v2832_v8 = vld [vmem:[%s3846_s1 + $0x50] sm:$0xff]  }
   0x2   :  { %v2825_v1 = vld [vmem:[%s3846_s1 + $0xc0] sm:$0xff]   ;;  %2406 = vmatprep.subr.bf16.mxu0 %v2824_v0  ;;  %v2829_v5 = vld [vmem:[%s3846_s1 + $0xc8] sm:$0xff]   ;;  %v2833_v9 = vld [vmem:[%s3846_s1 + $0xd0] sm:$0xff]  }
   0x3   :  { %v2826_v2 = vld [vmem:[%s3846_s1] sm:$0xff]   ;;  %2470 = vmatprep.subr.bf16.mxu1 %v2825_v1  ;;  %v2830_v6 = vld [vmem:[%s3846_s1 + $0x8] sm:$0xff]   ;;  %v2834_v10 = vld [vmem:[%s3846_s1 + $0x10] sm:$0xff]  }
   0x4   :  { %v2827_v3 = vld [vmem:[%s3846_s1 + $0x80] sm:$0xff]   ;;  %2407 = vmatpush3.bf16.msra.mxu0 %v2826_v2  ;;  %v2831_v7 = vld [vmem:[%s3846_s1 + $0x88] sm:$0xff]   ;;  %v2835_v11 = vld [vmem:[%s3846_s1 + $0x90] sm:$0xff]  }
   0x5   :  { %2471 = vmatpush3.bf16.msra.mxu1 %v2827_v3  ;;  %2408 = vmatprep.subr.bf16.mxu0 %v2828_v4  ;;  %v2836_v12 = vld [vmem:[%s3846_s1 + $0x58] sm:$0xff]   ;;  %v2840_v16 = vld [vmem:[%s3846_s1 + $0x60] sm:$0xff]   ;;  %v2844_v20 = vld [vmem:[%s3846_s1 + $0x68] sm:$0xff]  }
   0x6   :  { %2472 = vmatprep.subr.bf16.mxu1 %v2829_v5  ;;  %v2837_v13 = vld [vmem:[%s3846_s1 + $0xd8] sm:$0xff]   ;;  %v2841_v17 = vld [vmem:[%s3846_s1 + $0xe0] sm:$0xff]   ;;  %v2845_v21 = vld [vmem:[%s3846_s1 + $0xe8] sm:$0xff]  }
   0x7   :  { %v2838_v14 = vld [vmem:[%s3846_s1 + $0x18] sm:$0xff]   ;;  %v2842_v18 = vld [vmem:[%s3846_s1 + $0x20] sm:$0xff]   ;;  %v2846_v22 = vld [vmem:[%s3846_s1 + $0x28] sm:$0xff]  }
   0x8   :  { %2409 = vmatpush3.bf16.msra.mxu0 %v2830_v6  ;;  %v2839_v15 = vld [vmem:[%s3846_s1 + $0x98] sm:$0xff]   ;;  %v2843_v19 = vld [vmem:[%s3846_s1 + $0xa0] sm:$0xff]   ;;  %v2847_v23 = vld [vmem:[%s3846_s1 + $0xa8] sm:$0xff]  }
   0x9   :  { %2473 = vmatpush3.bf16.msra.mxu1 %v2831_v7  ;;  %2410 = vmatprep.subr.bf16.mxu0 %v2832_v8  ;;  %v2848_v24 = vld [vmem:[%s3846_s1 + $0x70] sm:$0xff]   ;;  %v2852_v28 = vld [vmem:[%s3846_s1 + $0x78] sm:$0xff]   ;;  %v2861_v35 = vld [vmem:[%s3847_s0 + $0xc] ss:$52 sps:$4 sm:$0xff]  }
   0xa   :  { %2474 = vmatprep.subr.bf16.mxu1 %v2833_v9  ;;  %v2849_v25 = vld [vmem:[%s3846_s1 + $0xf0] sm:$0xff]   ;;  %v2853_v29 = vld [vmem:[%s3846_s1 + $0xf8] sm:$0xff]   ;;  %v2862_v36 = vld [vmem:[%s3846_s1 + $0x140] sm:$0xff]   ;;  %1585 = vmatprep.mubr.bf16.mxu1 %v2861_v35 }
   0xb   :  { %v2850_v26 = vld [vmem:[%s3846_s1 + $0x30] sm:$0xff]   ;;  %v2854_v30 = vld [vmem:[%s3846_s1 + $0x38] sm:$0xff]   ;;  %v2863_v37 = vld [vmem:[%s3846_s1 + $0x1c0] sm:$0xff]  }
   0xc   :  { %2411 = vmatpush3.bf16.msra.mxu0 %v2834_v10  ;;  %v2851_v27 = vld [vmem:[%s3846_s1 + $0xb0] sm:$0xff]   ;;  %v2855_v31 = vld [vmem:[%s3846_s1 + $0xb8] sm:$0xff]   ;;  %v2864_v38 = vld [vmem:[%s3846_s1 + $0x100] sm:$0xff]  }
   0xd   :  { %2475 = vmatpush3.bf16.msra.mxu1 %v2835_v11  ;;  %2412 = vmatprep.subr.bf16.mxu0 %v2836_v12  ;;  %v2856_v32 = vld [vmem:[%s3847_s0] ss:$52 sps:$4 sm:$0xff]   ;;  %v2858_v33 = vld [vmem:[%s3847_s0 + $0x4] ss:$52 sps:$4 sm:$0xff]   ;;  %v2859_v34 = vld [vmem:[%s3847_s0 + $0x8] ss:$52 sps:$4 sm:$0xff]  }
   0xe   :  { %2476 = vmatprep.subr.bf16.mxu1 %v2837_v13  ;;  %1488 = vmatprep.mubr.bf16.mxu0 %v2858_v33  ;;  %v2865_v39 = vld [vmem:[%s3846_s1 + $0x180] sm:$0xff]   ;;  %v2868_v41 = vld [vmem:[%s3847_s0 + $0x74] ss:$52 sps:$4 sm:$0xff]   ;;  %v2878_v49 = vld [vmem:[%s3847_s0 + $0xdc] ss:$52 sps:$4 sm:$0xff]  }
   0xf   :  { %v2866_v40 = vld [vmem:[%s3847_s0 + $0x6c] ss:$52 sps:$4 sm:$0xff]   ;;  %v2870_v42 = vld [vmem:[%s3847_s0 + $0x68] ss:$52 sps:$4 sm:$0xff]   ;;  %v2871_v43 = vld [vmem:[%s3847_s0 + $0x70] ss:$52 sps:$4 sm:$0xff]  }
  0x10   :  { %2413 = vmatpush3.bf16.msra.mxu0 %v2838_v14  ;;  %v2872_v44 = vld [vmem:[%s3846_s1 + $0x148] sm:$0xff]   ;;  %v2880_v50 = vld [vmem:[%s3847_s0 + $0xd0] ss:$52 sps:$4 sm:$0xff]   ;;  %v2891_v59 = vld [vmem:[%s3847_s0 + $0x140] ss:$52 sps:$4 sm:$0xff]  }
  0x11   :  { %2477 = vmatpush3.bf16.msra.mxu1 %v2839_v15  ;;  %2414 = vmatprep.subr.bf16.mxu0 %v2840_v16  ;;  %v2873_v45 = vld [vmem:[%s3846_s1 + $0x1c8] sm:$0xff]   ;;  %v2882_v52 = vld [vmem:[%s3846_s1 + $0x150] sm:$0xff]   ;;  %v2888_v57 = vld [vmem:[%s3847_s0 + $0x144] ss:$52 sps:$4 sm:$0xff]  }
  0x12   :  { %2478 = vmatprep.subr.bf16.mxu1 %v2841_v17  ;;  %v2874_v46 = vld [vmem:[%s3846_s1 + $0x108] sm:$0xff]   ;;  %v2883_v53 = vld [vmem:[%s3846_s1 + $0x1d0] sm:$0xff]   ;;  %v2892_v60 = vld [vmem:[%s3846_s1 + $0x158] sm:$0xff]  }
  0x13   :  { %v2875_v47 = vld [vmem:[%s3846_s1 + $0x188] sm:$0xff]   ;;  %v2884_v54 = vld [vmem:[%s3846_s1 + $0x110] sm:$0xff]   ;;  %v2893_v61 = vld [vmem:[%s3846_s1 + $0x1d8] sm:$0xff]  }
  0x14   :  { %2415 = vmatpush3.bf16.msra.mxu0 %v2842_v18  ;;  %v2876_v48 = vld [vmem:[%s3847_s0 + $0xd4] ss:$52 sps:$4 sm:$0xff]   ;;  %v2881_v51 = vld [vmem:[%s3847_s0 + $0xd8] ss:$52 sps:$4 sm:$0xff]   ;;  %v2886_v56 = vld [vmem:[%s3847_s0 + $0x13c] ss:$52 sps:$4 sm:$0xff]  }
  0x15   :  { %2479 = vmatpush3.bf16.msra.mxu1 %v2843_v19  ;;  %2416 = vmatprep.subr.bf16.mxu0 %v2844_v20  ;;  %v2885_v55 = vld [vmem:[%s3846_s1 + $0x190] sm:$0xff]   ;;  %v2890_v58 = vld [vmem:[%s3847_s0 + $0x138] ss:$52 sps:$4 sm:$0xff]   ;;  %v2902_v3 = vld [vmem:[%s3846_s1 + $0x160] sm:$0xff]  }
  0x16   :  { %2480 = vmatprep.subr.bf16.mxu1 %v2845_v21  ;;  %v2894_v62 = vld [vmem:[%s3846_s1 + $0x118] sm:$0xff]   ;;  %v2898_v1 = vld [vmem:[%s3847_s0 + $0x1ac] ss:$52 sps:$4 sm:$0xff]   ;;  %v2908_v9 = vld [vmem:[%s3847_s0 + $0x214] ss:$52 sps:$4 sm:$0xff]  }
  0x17   :  { %v2895_v63 = vld [vmem:[%s3846_s1 + $0x198] sm:$0xff]   ;;  %v2900_v2 = vld [vmem:[%s3847_s0 + $0x1a0] ss:$52 sps:$4 sm:$0xff]   ;;  %v2912_v10 = vld [vmem:[%s3846_s1 + $0x168] sm:$0xff]  }
  0x18   :  { %2417 = vmatpush3.bf16.msra.mxu0 %v2846_v22  ;;  %v2896_v0 = vld [vmem:[%s3847_s0 + $0x1a4] ss:$52 sps:$4 sm:$0xff]   ;;  %v2901_v4 = vld [vmem:[%s3847_s0 + $0x1a8] ss:$52 sps:$4 sm:$0xff]   ;;  %v2906_v8 = vld [vmem:[%s3847_s0 + $0x20c] ss:$52 sps:$4 sm:$0xff]  }
  0x19   :  { %2481 = vmatpush3.bf16.msra.mxu1 %v2847_v23  ;;  %2418 = vmatprep.subr.bf16.mxu0 %v2848_v24  ;;  %v2903_v5 = vld [vmem:[%s3846_s1 + $0x1e0] sm:$0xff]   ;;  %v2913_v11 = vld [vmem:[%s3846_s1 + $0x1e8] sm:$0xff]   ;;  %v2918_v17 = vld [vmem:[%s3847_s0 + $0x27c] ss:$52 sps:$4 sm:$0xff]  }
  0x1a   :  { %2482 = vmatprep.subr.bf16.mxu1 %v2849_v25  ;;  %v2904_v6 = vld [vmem:[%s3846_s1 + $0x120] sm:$0xff]   ;;  %v2910_v12 = vld [vmem:[%s3847_s0 + $0x208] ss:$52 sps:$4 sm:$0xff]   ;;  %v2922_v18 = vld [vmem:[%s3846_s1 + $0x170] sm:$0xff]  }
  0x1b   :  { %v2905_v7 = vld [vmem:[%s3846_s1 + $0x1a0] sm:$0xff]   ;;  %v2914_v13 = vld [vmem:[%s3846_s1 + $0x128] sm:$0xff]   ;;  %v2923_v19 = vld [vmem:[%s3846_s1 + $0x1f0] sm:$0xff]  }
  0x1c   :  { %2419 = vmatpush3.bf16.msra.mxu0 %v2850_v26  ;;  %v2915_v14 = vld [vmem:[%s3846_s1 + $0x1a8] sm:$0xff]   ;;  %v2911_v15 = vld [vmem:[%s3847_s0 + $0x210] ss:$52 sps:$4 sm:$0xff]   ;;  %v2932_v26 = vld [vmem:[%s3846_s1 + $0x178] sm:$0xff]  }
  0x1d   :  { %2483 = vmatpush3.bf16.msra.mxu1 %v2851_v27  ;;  %2420 = vmatprep.subr.bf16.mxu0 %v2852_v28  ;;  %v2916_v16 = vld [vmem:[%s3847_s0 + $0x274] ss:$52 sps:$4 sm:$0xff]   ;;  %v2920_v22 = vld [vmem:[%s3847_s0 + $0x270] ss:$52 sps:$4 sm:$0xff]   ;;  %v2921_v23 = vld [vmem:[%s3847_s0 + $0x278] ss:$52 sps:$4 sm:$0xff]  }
  0x1e   :  { %2484 = vmatprep.subr.bf16.mxu1 %v2853_v29  ;;  %v2924_v20 = vld [vmem:[%s3846_s1 + $0x130] sm:$0xff]   ;;  %v2928_v25 = vld [vmem:[%s3847_s0 + $0x2e4] ss:$52 sps:$4 sm:$0xff]  }
  0x1f   :  { %v2925_v21 = vld [vmem:[%s3846_s1 + $0x1b0] sm:$0xff]   ;;  %v2933_v27 = vld [vmem:[%s3846_s1 + $0x1f8] sm:$0xff]   ;;  %v2942_v33 = vld [vmem:[%s3846_s1 + $0x240] sm:$0xff]  }
  0x20   :  { %2421 = vmatpush3.bf16.msra.mxu0 %v2854_v30  ;;  %v2926_v24 = vld [vmem:[%s3847_s0 + $0x2dc] ss:$52 sps:$4 sm:$0xff]   ;;  %v2930_v30 = vld [vmem:[%s3847_s0 + $0x2d8] ss:$52 sps:$4 sm:$0xff]  }
  0x21   :  { %2485 = vmatpush3.bf16.msra.mxu1 %v2855_v31  ;;  %2534 = vmatprep.subr.bf16.mxu0 %v2862_v36  ;;  %v2934_v28 = vld [vmem:[%s3846_s1 + $0x138] sm:$0xff]   ;;  %v2931_v31 = vld [vmem:[%s3847_s0 + $0x2e0] ss:$52 sps:$4 sm:$0xff]   ;;  %v2936_v36 = vld [vmem:[%s3847_s0 + $0x10] ss:$52 sps:$4 sm:$0xff]  }
  0x22   :  { %2598 = vmatprep.subr.bf16.mxu1 %v2863_v37  ;;  %v2935_v29 = vld [vmem:[%s3846_s1 + $0x1b8] sm:$0xff]  }
  0x23   :  { %1489 = vmatmul.mubr.bf16.vlgmr.msra.gmra.mrb[0].mxu0 %v2856_v32  ;;  %v2938_v32 = vld [vmem:[%s3847_s0 + $0x14] ss:$52 sps:$4 sm:$0xff]   ;;  %v2941_v35 = vld [vmem:[%s3847_s0 + $0x1c] ss:$52 sps:$4 sm:$0xff]   ;;  %v2939_v37 = vld [vmem:[%s3847_s0 + $0x18] ss:$52 sps:$4 sm:$0xff]  }
  0x24   :  { %1586 = vmatmul.mubr.bf16.vlgmr.msra.gmra.mrb[0].mxu1 %v2859_v34  ;;  %2535 = vmatpush3.bf16.msra.mxu0 %v2864_v38  ;;  %v2943_v34 = vld [vmem:[%s3846_s1 + $0x2c0] sm:$0xff]  }
  0x25   :  { %2599 = vmatpush3.bf16.msra.mxu1 %v2865_v39  ;;  %1496 = vmatprep.mubr.bf16.mxu0 %v2866_v40  ;;  %v2944_v38 = vld [vmem:[%s3846_s1 + $0x200] sm:$0xff]   ;;  %v2946_v40 = vld [vmem:[%s3847_s0 + $0x7c] ss:$52 sps:$4 sm:$0xff]  }
  0x26   :  { %1593 = vmatprep.mubr.bf16.mxu1 %v2868_v41  ;;  %2536 = vmatprep.subr.bf16.mxu0 %v2872_v44  ;;  %v2945_v39 = vld [vmem:[%s3846_s1 + $0x280] sm:$0xff]   ;;  %v2954_v44 = vld [vmem:[%s3846_s1 + $0x208] sm:$0xff]  }
  0x27   :  { %2600 = vmatprep.subr.bf16.mxu1 %v2873_v45  ;;  %v2948_v41 = vld [vmem:[%s3847_s0 + $0x84] ss:$52 sps:$4 sm:$0xff]   ;;  %v2955_v45 = vld [vmem:[%s3846_s1 + $0x288] sm:$0xff]  }
  0x28   :  { %2537 = vmatpush3.bf16.msra.mxu0 %v2874_v46  ;;  %v2950_v46 = vld [vmem:[%s3847_s0 + $0x78] ss:$52 sps:$4 sm:$0xff]  }
  0x29   :  { %2601 = vmatpush3.bf16.msra.mxu1 %v2875_v47  ;;  %2538 = vmatprep.subr.bf16.mxu0 %v2882_v52  ;;  %v2962_v47 = vld [vmem:[%s3846_s1 + $0x250] sm:$0xff]  }
  0x2a   :  { %2602 = vmatprep.subr.bf16.mxu1 %v2883_v53  ;;  %v2964_v52 = vld [vmem:[%s3846_s1 + $0x210] sm:$0xff]  }
  0x2b   :  { %1497 = vmatmul.mubr.bf16.gmra.mrb[4].mxu0 %v2870_v42  ;;  %v2952_v42 = vld [vmem:[%s3846_s1 + $0x248] sm:$0xff]   ;;  %v2965_v53 = vld [vmem:[%s3846_s1 + $0x290] sm:$0xff]  }
  0x2c   :  { %1594 = vmatmul.mubr.bf16.gmra.mrb[4].mxu1 %v2871_v43  ;;  %1504 = vmatprep.mubr.bf16.mxu0 %v2876_v48  ;;  %v2953_v43 = vld [vmem:[%s3846_s1 + $0x2c8] sm:$0xff]   ;;  %v2951_v48 = vld [vmem:[%s3847_s0 + $0x80] ss:$52 sps:$4 sm:$0xff]  }
  0x2d   :  { %1601 = vmatprep.mubr.bf16.mxu1 %v2878_v49  ;;  %2539 = vmatpush3.bf16.msra.mxu0 %v2884_v54  ;;  %v2963_v49 = vld [vmem:[%s3846_s1 + $0x2d0] sm:$0xff]   ;;  %v2972_v54 = vld [vmem:[%s3846_s1 + $0x258] sm:$0xff]  }
  0x2e   :  { %2603 = vmatpush3.bf16.msra.mxu1 %v2885_v55  ;;  %2540 = vmatprep.subr.bf16.mxu0 %v2892_v60  ;;  %v2973_v55 = vld [vmem:[%s3846_s1 + $0x2d8] sm:$0xff]   ;;  %v2966_v60 = vld [vmem:[%s3847_s0 + $0x14c] ss:$52 sps:$4 sm:$0xff]  }
  0x2f   :  { %2604 = vmatprep.subr.bf16.mxu1 %v2893_v61  ;;  %v2968_v61 = vld [vmem:[%s3847_s0 + $0x154] ss:$52 sps:$4 sm:$0xff]  }
  0x31   :  { %2541 = vmatpush3.bf16.msra.mxu0 %v2894_v62  ;;  %v2982_v62 = vld [vmem:[%s3846_s1 + $0x260] sm:$0xff]  }
  0x32   :  { %2605 = vmatpush3.bf16.msra.mxu1 %v2895_v63  ;;  %2542 = vmatprep.subr.bf16.mxu0 %v2902_v3  ;;  %v2983_v63 = vld [vmem:[%s3846_s1 + $0x2e0] sm:$0xff]  }
  0x33   :  { %1505 = vmatmul.mubr.bf16.gmra.mrb[8].mxu0 %v2880_v50  ;;  %2606 = vmatprep.subr.bf16.mxu1 %v2903_v5  ;;  %v2956_v50 = vld [vmem:[%s3847_s0 + $0xe4] ss:$52 sps:$4 sm:$0xff]   ;;  %v2978_v5 = vld [vmem:[%s3847_s0 + $0x1bc] ss:$52 sps:$4 sm:$0xff]  }
  0x34   :  { %1602 = vmatmul.mubr.bf16.gmra.mrb[8].mxu1 %v2881_v51  ;;  %1512 = vmatprep.mubr.bf16.mxu0 %v2886_v56  ;;  %v2958_v51 = vld [vmem:[%s3847_s0 + $0xec] ss:$52 sps:$4 sm:$0xff]   ;;  %v2971_v3 = vld [vmem:[%s3847_s0 + $0x150] ss:$52 sps:$4 sm:$0xff]  }
  0x35   :  { %1609 = vmatprep.mubr.bf16.mxu1 %v2888_v57  ;;  %2543 = vmatpush3.bf16.msra.mxu0 %v2904_v6  ;;  %v2960_v56 = vld [vmem:[%s3847_s0 + $0xe0] ss:$52 sps:$4 sm:$0xff]   ;;  %v2974_v57 = vld [vmem:[%s3846_s1 + $0x218] sm:$0xff]   ;;  %v2992_v6 = vld [vmem:[%s3846_s1 + $0x268] sm:$0xff]  }
  0x36   :  { %2607 = vmatpush3.bf16.msra.mxu1 %v2905_v7  ;;  %2544 = vmatprep.subr.bf16.mxu0 %v2912_v10  ;;  %v2993_v7 = vld [vmem:[%s3846_s1 + $0x2e8] sm:$0xff]   ;;  %v2980_v10 = vld [vmem:[%s3847_s0 + $0x1b0] ss:$52 sps:$4 sm:$0xff]  }
  0x37   :  { %2608 = vmatprep.subr.bf16.mxu1 %v2913_v11  ;;  %v2981_v11 = vld [vmem:[%s3847_s0 + $0x1b8] ss:$52 sps:$4 sm:$0xff]  }
  0x39   :  { %2545 = vmatpush3.bf16.msra.mxu0 %v2914_v13  ;;  %v2988_v13 = vld [vmem:[%s3847_s0 + $0x224] ss:$52 sps:$4 sm:$0xff]  }
  0x3a   :  { %2609 = vmatpush3.bf16.msra.mxu1 %v2915_v14  ;;  %2546 = vmatprep.subr.bf16.mxu0 %v2922_v18  ;;  %v3002_v14 = vld [vmem:[%s3846_s1 + $0x270] sm:$0xff]   ;;  %v2990_v18 = vld [vmem:[%s3847_s0 + $0x218] ss:$52 sps:$4 sm:$0xff]  }
  0x3b   :  { %1513 = vmatmul.mubr.bf16.gmra.mrb[12].mxu0 %v2890_v58  ;;  %2610 = vmatprep.subr.bf16.mxu1 %v2923_v19  ;;  %v2975_v58 = vld [vmem:[%s3846_s1 + $0x298] sm:$0xff]   ;;  %v2991_v19 = vld [vmem:[%s3847_s0 + $0x220] ss:$52 sps:$4 sm:$0xff]  }
  0x3c   :  { %1610 = vmatmul.mubr.bf16.gmra.mrb[12].mxu1 %v2891_v59  ;;  %1520 = vmatprep.mubr.bf16.mxu0 %v2896_v0  ;;  %v2961_v59 = vld [vmem:[%s3847_s0 + $0xe8] ss:$52 sps:$4 sm:$0xff]   ;;  %v2984_v0 = vld [vmem:[%s3846_s1 + $0x220] sm:$0xff]  }
  0x3d   :  { %1617 = vmatprep.mubr.bf16.mxu1 %v2898_v1  ;;  %2547 = vmatpush3.bf16.msra.mxu0 %v2924_v20  ;;  %v2985_v1 = vld [vmem:[%s3846_s1 + $0x2a0] sm:$0xff]  }
  0x3e   :  { %2611 = vmatpush3.bf16.msra.mxu1 %v2925_v21  ;;  %2548 = vmatprep.subr.bf16.mxu0 %v2932_v26  ;;  %v2996_v20 = vld [vmem:[%s3847_s0 + $0x284] ss:$52 sps:$4 sm:$0xff]  }
  0x3f   :  { %2612 = vmatprep.subr.bf16.mxu1 %v2933_v27  ;;  %v3012_v21 = vld [vmem:[%s3846_s1 + $0x278] sm:$0xff]   ;;  %v3022_v26 = vld [vmem:[%s3846_s1 + $0x300] sm:$0xff]  }
  0x40   :  { %v3000_v27 = vld [vmem:[%s3847_s0 + $0x280] ss:$52 sps:$4 sm:$0xff]  }
  0x41   :  { %2549 = vmatpush3.bf16.msra.mxu0 %v2934_v28  ;;  %v3001_v28 = vld [vmem:[%s3847_s0 + $0x288] ss:$52 sps:$4 sm:$0xff]  }
  0x42   :  { %2613 = vmatpush3.bf16.msra.mxu1 %v2935_v29  ;;  %2662 = vmatprep.subr.bf16.mxu0 %v2942_v33  ;;  %v3006_v29 = vld [vmem:[%s3847_s0 + $0x2ec] ss:$52 sps:$4 sm:$0xff]   ;;  %v3018_v33 = vld [vmem:[%s3847_s0 + $0x24] ss:$52 sps:$4 sm:$0xff]  }
  0x43   :  { %1521 = vmatmul.mubr.bf16.gmra.mrb[16].mxu0 %v2900_v2  ;;  %2726 = vmatprep.subr.bf16.mxu1 %v2943_v34  ;;  %v2970_v2 = vld [vmem:[%s3847_s0 + $0x148] ss:$52 sps:$4 sm:$0xff]   ;;  %v3021_v34 = vld [vmem:[%s3847_s0 + $0x2c] ss:$52 sps:$4 sm:$0xff]  }
  0x44   :  { %1618 = vmatmul.mubr.bf16.gmra.mrb[16].mxu1 %v2901_v4  ;;  %1528 = vmatprep.mubr.bf16.mxu0 %v2906_v8  ;;  %v2976_v4 = vld [vmem:[%s3847_s0 + $0x1b4] ss:$52 sps:$4 sm:$0xff]  }
  0x45   :  { %1625 = vmatprep.mubr.bf16.mxu1 %v2908_v9  ;;  %v2994_v8 = vld [vmem:[%s3846_s1 + $0x228] sm:$0xff]  }
  0x46   :  { %v2995_v9 = vld [vmem:[%s3846_s1 + $0x2a8] sm:$0xff]  }
  0x4b   :  { %1529 = vmatmul.mubr.bf16.gmra.mrb[20].mxu0 %v2910_v12  ;;  %v2986_v12 = vld [vmem:[%s3847_s0 + $0x21c] ss:$52 sps:$4 sm:$0xff]  }
  0x4c   :  { %1626 = vmatmul.mubr.bf16.gmra.mrb[20].mxu1 %v2911_v15  ;;  %1536 = vmatprep.mubr.bf16.mxu0 %v2916_v16  ;;  %v3003_v15 = vld [vmem:[%s3846_s1 + $0x2f0] sm:$0xff]  }
  0x4d   :  { %1633 = vmatprep.mubr.bf16.mxu1 %v2918_v17  ;;  %v3004_v16 = vld [vmem:[%s3846_s1 + $0x230] sm:$0xff]  }
  0x4e   :  { %v3005_v17 = vld [vmem:[%s3846_s1 + $0x2b0] sm:$0xff]  }
  0x53   :  { %1537 = vmatmul.mubr.bf16.gmra.mrb[24].mxu0 %v2920_v22  ;;  %v2998_v22 = vld [vmem:[%s3847_s0 + $0x28c] ss:$52 sps:$4 sm:$0xff]  }
  0x54   :  { %1634 = vmatmul.mubr.bf16.gmra.mrb[24].mxu1 %v2921_v23  ;;  %1544 = vmatprep.mubr.bf16.mxu0 %v2926_v24  ;;  %v3013_v23 = vld [vmem:[%s3846_s1 + $0x2f8] sm:$0xff]  }
  0x55   :  { %1641 = vmatprep.mubr.bf16.mxu1 %v2928_v25  ;;  %v3014_v24 = vld [vmem:[%s3846_s1 + $0x238] sm:$0xff]  }
  0x56   :  { %v3015_v25 = vld [vmem:[%s3846_s1 + $0x2b8] sm:$0xff]  }
  0x5b   :  { %1545 = vmatmul.mubr.bf16.gmra.mrb[28].mxu0 %v2930_v30  ;;  %v3008_v30 = vld [vmem:[%s3847_s0 + $0x2f4] ss:$52 sps:$4 sm:$0xff]  }
  0x5c   :  { %1642 = vmatmul.mubr.bf16.gmra.mrb[28].mxu1 %v2931_v31  ;;  %1682 = vmatprep.mubr.bf16.mxu0 %v2938_v32  ;;  %v3010_v31 = vld [vmem:[%s3847_s0 + $0x2e8] ss:$52 sps:$4 sm:$0xff]   ;;  %v3011_v32 = vld [vmem:[%s3847_s0 + $0x2f0] ss:$52 sps:$4 sm:$0xff]  }
  0x5d   :  { %1779 = vmatprep.mubr.bf16.mxu1 %v2941_v35  ;;  %v3016_v35 = vld [vmem:[%s3847_s0 + $0x20] ss:$52 sps:$4 sm:$0xff]  }
  0x63   :  { %1683 = vmatmul.mubr.bf16.vlgmr.msra.gmra.mrb[32].mxu0 %v2936_v36  ;;  %v3019_v36 = vld [vmem:[%s3847_s0 + $0x28] ss:$52 sps:$4 sm:$0xff]  }
  0x64   :  { %1780 = vmatmul.mubr.bf16.vlgmr.msra.gmra.mrb[32].mxu1 %v2939_v37  ;;  %2663 = vmatpush3.bf16.msra.mxu0 %v2944_v38  ;;  %v3023_v37 = vld [vmem:[%s3847_s0 + $0x8c] ss:$52 sps:$4 sm:$0xff]   ;;  %v3025_v38 = vld [vmem:[%s3847_s0 + $0x94] ss:$52 sps:$4 sm:$0xff]  }
  0x65   :  { %2727 = vmatpush3.bf16.msra.mxu1 %v2945_v39  ;;  %1690 = vmatprep.mubr.bf16.mxu0 %v2946_v40  ;;  %v3047_v39 = vld [vmem:[%s3846_s1 + $0x308] sm:$0xff]  }
  0x66   :  { %1787 = vmatprep.mubr.bf16.mxu1 %v2948_v41  ;;  %2664 = vmatprep.subr.bf16.mxu0 %v2952_v42  ;;  %v3027_v40 = vld [vmem:[%s3847_s0 + $0x88] ss:$52 sps:$4 sm:$0xff]   ;;  %v3028_v41 = vld [vmem:[%s3847_s0 + $0x90] ss:$52 sps:$4 sm:$0xff]  }
  0x67   :  { %2728 = vmatprep.subr.bf16.mxu1 %v2953_v43  ;;  %v3029_v42 = vld [vmem:[%s3847_s0 + $0xf4] ss:$52 sps:$4 sm:$0xff]   ;;  %v3031_v43 = vld [vmem:[%s3847_s0 + $0xfc] ss:$52 sps:$4 sm:$0xff]  }
  0x68   :  { %2665 = vmatpush3.bf16.msra.mxu0 %v2954_v44  ;;  %v3033_v44 = vld [vmem:[%s3847_s0 + $0xf0] ss:$52 sps:$4 sm:$0xff]  }
  0x69   :  { %2729 = vmatpush3.bf16.msra.mxu1 %v2955_v45  ;;  %2666 = vmatprep.subr.bf16.mxu0 %v2962_v47  ;;  %v3034_v45 = vld [vmem:[%s3847_s0 + $0xf8] ss:$52 sps:$4 sm:$0xff]  }
  0x6a   :  { %2730 = vmatprep.subr.bf16.mxu1 %v2963_v49  ;;  %v3037_v47 = vld [vmem:[%s3847_s0 + $0x164] ss:$52 sps:$4 sm:$0xff]   ;;  %v3040_v49 = vld [vmem:[%s3847_s0 + $0x160] ss:$52 sps:$4 sm:$0xff]  }
  0x6b   :  { %1691 = vmatmul.mubr.bf16.gmra.mrb[36].mxu0 %v2950_v46  ;;  %v3035_v46 = vld [vmem:[%s3847_s0 + $0x15c] ss:$52 sps:$4 sm:$0xff]  }
  0x6c   :  { %1788 = vmatmul.mubr.bf16.gmra.mrb[36].mxu1 %v2951_v48  ;;  %1698 = vmatprep.mubr.bf16.mxu0 %v2956_v50  ;;  %v3039_v48 = vld [vmem:[%s3847_s0 + $0x158] ss:$52 sps:$4 sm:$0xff]  }
  0x6d   :  { %1795 = vmatprep.mubr.bf16.mxu1 %v2958_v51  ;;  %2667 = vmatpush3.bf16.msra.mxu0 %v2964_v52  ;;  %v3041_v50 = vld [vmem:[%s3847_s0 + $0x1c4] ss:$52 sps:$4 sm:$0xff]   ;;  %v3043_v51 = vld [vmem:[%s3847_s0 + $0x1cc] ss:$52 sps:$4 sm:$0xff]  }
  0x6e   :  { %2731 = vmatpush3.bf16.msra.mxu1 %v2965_v53  ;;  %2668 = vmatprep.subr.bf16.mxu0 %v2972_v54  ;;  %v3045_v52 = vld [vmem:[%s3847_s0 + $0x1c0] ss:$52 sps:$4 sm:$0xff]   ;;  %v3046_v53 = vld [vmem:[%s3847_s0 + $0x1c8] ss:$52 sps:$4 sm:$0xff]  }
  0x6f   :  { %2732 = vmatprep.subr.bf16.mxu1 %v2973_v55  ;;  %v3048_v54 = vld [vmem:[%s3847_s0 + $0x22c] ss:$52 sps:$4 sm:$0xff]   ;;  %v3050_v55 = vld [vmem:[%s3847_s0 + $0x234] ss:$52 sps:$4 sm:$0xff]  }
  0x71   :  { %2669 = vmatpush3.bf16.msra.mxu0 %v2974_v57  ;;  %v3053_v57 = vld [vmem:[%s3847_s0 + $0x230] ss:$52 sps:$4 sm:$0xff]  }
  0x72   :  { %2733 = vmatpush3.bf16.msra.mxu1 %v2975_v58  ;;  %2670 = vmatprep.subr.bf16.mxu0 %v2982_v62  ;;  %v3054_v58 = vld [vmem:[%s3847_s0 + $0x294] ss:$52 sps:$4 sm:$0xff]   ;;  %v3060_v62 = vld [vmem:[%s3847_s0 + $0x2fc] ss:$52 sps:$4 sm:$0xff]  }
  0x73   :  { %1699 = vmatmul.mubr.bf16.gmra.mrb[40].mxu0 %v2960_v56  ;;  %2734 = vmatprep.subr.bf16.mxu1 %v2983_v63  ;;  %v3052_v56 = vld [vmem:[%s3847_s0 + $0x228] ss:$52 sps:$4 sm:$0xff]   ;;  %v3062_v63 = vld [vmem:[%s3847_s0 + $0x304] ss:$52 sps:$4 sm:$0xff]  }
  0x74   :  { %1796 = vmatmul.mubr.bf16.gmra.mrb[40].mxu1 %v2961_v59  ;;  %1706 = vmatprep.mubr.bf16.mxu0 %v2966_v60  ;;  %v3056_v59 = vld [vmem:[%s3847_s0 + $0x29c] ss:$52 sps:$4 sm:$0xff]  }
  0x75   :  { %1803 = vmatprep.mubr.bf16.mxu1 %v2968_v61  ;;  %2671 = vmatpush3.bf16.msra.mxu0 %v2984_v0  ;;  %v3058_v60 = vld [vmem:[%s3847_s0 + $0x290] ss:$52 sps:$4 sm:$0xff]   ;;  %v3059_v61 = vld [vmem:[%s3847_s0 + $0x298] ss:$52 sps:$4 sm:$0xff]  }
  0x76   :  { %2735 = vmatpush3.bf16.msra.mxu1 %v2985_v1  ;;  %2672 = vmatprep.subr.bf16.mxu0 %v2992_v6  ;;  %v3064_v0 = vld [vmem:[%s3847_s0 + $0x2f8] ss:$52 sps:$4 sm:$0xff]   ;;  %v3065_v1 = vld [vmem:[%s3847_s0 + $0x300] ss:$52 sps:$4 sm:$0xff]  }
  0x77   :  { %2736 = vmatprep.subr.bf16.mxu1 %v2993_v7  ;;  %v3070_v6 = vld [vmem:[%s3847_s0 + $0x100] ss:$52 sps:$4 sm:$0xff]  }
  0x78   :  { %v3071_v7 = vld [vmem:[%s3847_s0 + $0x2a0] ss:$52 sps:$4 sm:$0xff]  }
  0x79   :  { %2673 = vmatpush3.bf16.msra.mxu0 %v2994_v8  ;;  %v3072_v8 = vld [vmem:[%s3847_s0 + $0x168] ss:$52 sps:$4 sm:$0xff]  }
  0x7a   :  { %2737 = vmatpush3.bf16.msra.mxu1 %v2995_v9  ;;  %2674 = vmatprep.subr.bf16.mxu0 %v3002_v14  ;;  %v3073_v9 = vld [vmem:[%s3847_s0 + $0x308] ss:$52 sps:$4 sm:$0xff]  }
  0x7b   :  { %1707 = vmatmul.mubr.bf16.gmra.mrb[44].mxu0 %v2970_v2  ;;  %2738 = vmatprep.subr.bf16.mxu1 %v3003_v15  ;;  %v3066_v2 = vld [vmem:[%s3847_s0 + $0x30] ss:$52 sps:$4 sm:$0xff]  }
  0x7c   :  { %1804 = vmatmul.mubr.bf16.gmra.mrb[44].mxu1 %v2971_v3  ;;  %1714 = vmatprep.mubr.bf16.mxu0 %v2976_v4  ;;  %v3067_v3 = vld [vmem:[%s3847_s0 + $0x1d0] ss:$52 sps:$4 sm:$0xff]   ;;  %v3068_v4 = vld [vmem:[%s3847_s0 + $0x98] ss:$52 sps:$4 sm:$0xff]  }
  0x7d   :  { %1811 = vmatprep.mubr.bf16.mxu1 %v2978_v5  ;;  %2675 = vmatpush3.bf16.msra.mxu0 %v3004_v16  ;;  %v3069_v5 = vld [vmem:[%s3847_s0 + $0x238] ss:$52 sps:$4 sm:$0xff]  }
  0x7e   :  { %2739 = vmatpush3.bf16.msra.mxu1 %v3005_v17  ;;  %2676 = vmatprep.subr.bf16.mxu0 %v3012_v21 }
  0x7f   :  { %2740 = vmatprep.subr.bf16.mxu1 %v3013_v23 }
  0x81   :  { %2677 = vmatpush3.bf16.msra.mxu0 %v3014_v24 }
  0x82   :  { %2741 = vmatpush3.bf16.msra.mxu1 %v3015_v25  ;;  %2800 = vmatprep.subr.bf16.mxu0 %v3022_v26 }
  0x83   :  { %1715 = vmatmul.mubr.bf16.gmra.mrb[48].mxu0 %v2980_v10  ;;  %2820 = vmatprep.subr.bf16.mxu1 %v3022_v26 }
  0x84   :  { %1812 = vmatmul.mubr.bf16.gmra.mrb[48].mxu1 %v2981_v11  ;;  %1722 = vmatprep.mubr.bf16.mxu0 %v2986_v12 }
  0x85   :  { %1819 = vmatprep.mubr.bf16.mxu1 %v2988_v13 }
  0x8b   :  { %1723 = vmatmul.mubr.bf16.gmra.mrb[52].mxu0 %v2990_v18 }
  0x8c   :  { %1820 = vmatmul.mubr.bf16.gmra.mrb[52].mxu1 %v2991_v19  ;;  %1730 = vmatprep.mubr.bf16.mxu0 %v2996_v20 }
  0x8d   :  { %1827 = vmatprep.mubr.bf16.mxu1 %v2998_v22 }
  0x93   :  { %1731 = vmatmul.mubr.bf16.gmra.mrb[56].mxu0 %v3000_v27 }
  0x94   :  { %1828 = vmatmul.mubr.bf16.gmra.mrb[56].mxu1 %v3001_v28  ;;  %1738 = vmatprep.mubr.bf16.mxu0 %v3006_v29 }
  0x95   :  { %1835 = vmatprep.mubr.bf16.mxu1 %v3008_v30 }
  0x9b   :  { %1739 = vmatmul.mubr.bf16.gmra.mrb[60].mxu0 %v3010_v31 }
  0x9c   :  { %1836 = vmatmul.mubr.bf16.gmra.mrb[60].mxu1 %v3011_v32  ;;  %1876 = vmatprep.mubr.bf16.mxu0 %v3018_v33 }
  0x9d   :  { %1973 = vmatprep.mubr.bf16.mxu1 %v3021_v34 }
  0xa3   :  { %1877 = vmatmul.mubr.bf16.vlgmr.msra.gmra.mrb[64].mxu0 %v3016_v35 }
  0xa4   :  { %1974 = vmatmul.mubr.bf16.vlgmr.msra.gmra.mrb[64].mxu1 %v3019_v36  ;;  %2801 = vmatpush3.bf16.msra.mxu0 %v3022_v26 }
  0xa5   :  { %2822 = vmatpush3.bf16.msra.mxu1 %v3022_v26  ;;  %1884 = vmatprep.mubr.bf16.mxu0 %v3023_v37 }
  0xa6   :  { %1981 = vmatprep.mubr.bf16.mxu1 %v3025_v38  ;;  %2802 = vmatprep.subr.bf16.mxu0 %v3047_v39 }
  0xa7   :  { %2821 = vmatprep.subr.bf16.mxu1 %v3047_v39 }
  0xa8   :  { %2803 = vmatpush3.bf16.msra.mxu0 %v3047_v39 }
  0xa9   :  { %2823 = vmatpush3.bf16.msra.mxu1 %v3047_v39 }
  0xab   :  { %1885 = vmatmul.mubr.bf16.gmra.mrb[68].mxu0 %v3027_v40 }
  0xac   :  { %1982 = vmatmul.mubr.bf16.gmra.mrb[68].mxu1 %v3028_v41  ;;  %1892 = vmatprep.mubr.bf16.mxu0 %v3029_v42 }
  0xad   :  { %1989 = vmatprep.mubr.bf16.mxu1 %v3031_v43 }
  0xb3   :  { %1893 = vmatmul.mubr.bf16.gmra.mrb[72].mxu0 %v3033_v44 }
  0xb4   :  { %1990 = vmatmul.mubr.bf16.gmra.mrb[72].mxu1 %v3034_v45  ;;  %1900 = vmatprep.mubr.bf16.mxu0 %v3035_v46 }
  0xb5   :  { %1997 = vmatprep.mubr.bf16.mxu1 %v3037_v47 }
  0xbb   :  { %1901 = vmatmul.mubr.bf16.gmra.mrb[76].mxu0 %v3039_v48 }
  0xbc   :  { %1998 = vmatmul.mubr.bf16.gmra.mrb[76].mxu1 %v3040_v49  ;;  %1908 = vmatprep.mubr.bf16.mxu0 %v3041_v50 }
  0xbd   :  { %2005 = vmatprep.mubr.bf16.mxu1 %v3043_v51 }
  0xc3   :  { %1909 = vmatmul.mubr.bf16.gmra.mrb[80].mxu0 %v3045_v52 }
  0xc4   :  { %2006 = vmatmul.mubr.bf16.gmra.mrb[80].mxu1 %v3046_v53  ;;  %1916 = vmatprep.mubr.bf16.mxu0 %v3048_v54 }
  0xc5   :  { %2013 = vmatprep.mubr.bf16.mxu1 %v3050_v55 }
  0xcb   :  { %1917 = vmatmul.mubr.bf16.gmra.mrb[84].mxu0 %v3052_v56 }
  0xcc   :  { %2014 = vmatmul.mubr.bf16.gmra.mrb[84].mxu1 %v3053_v57  ;;  %1924 = vmatprep.mubr.bf16.mxu0 %v3054_v58 }
  0xcd   :  { %2021 = vmatprep.mubr.bf16.mxu1 %v3056_v59 }
  0xd3   :  { %1925 = vmatmul.mubr.bf16.gmra.mrb[88].mxu0 %v3058_v60 }
  0xd4   :  { %2022 = vmatmul.mubr.bf16.gmra.mrb[88].mxu1 %v3059_v61  ;;  %1932 = vmatprep.mubr.bf16.mxu0 %v3060_v62 }
  0xd5   :  { %2029 = vmatprep.mubr.bf16.mxu1 %v3062_v63 }
  0xdb   :  { %1933 = vmatmul.mubr.bf16.gmra.mrb[92].mxu0 %v3064_v0 }
  0xdc   :  { %2030 = vmatmul.mubr.bf16.gmra.mrb[92].mxu1 %v3065_v1  ;;  %2804 = vmatprep.mubr.msk.bf16.mxu0 %vm1431_vm0, %v3066_v2 }
  0xdd   :  { %2812 = vmatprep.mubr.msk.bf16.mxu1 %vm1431_vm0, %v3067_v3 }
  0xe3   :  { %2805 = vmatmul.mubr.msk.bf16.vlgmr.msra.gmra.mrb[96].mxu0 %vm1431_vm0, %v3068_v4 }
  0xe4   :  { %2813 = vmatmul.mubr.msk.bf16.vlgmr.msra.gmra.mrb[96].mxu1 %vm1431_vm0, %v3069_v5  ;;  %2808 = vmatprep.mubr.msk.bf16.mxu0 %vm1431_vm0, %v3070_v6 }
  0xe5   :  { %2816 = vmatprep.mubr.msk.bf16.mxu1 %vm1431_vm0, %v3071_v7 }
  0xeb   :  { %2809 = vmatmul.mubr.msk.bf16.gmra.mrb[100].mxu0 %vm1431_vm0, %v3072_v8 }
  0xec   :  { %2817 = vmatmul.mubr.msk.bf16.gmra.mrb[100].mxu1 %vm1431_vm0, %v3073_v9 }
  0xf6   :  { %v2422_v10 = vpop.f32.mrb[0].mxu0 }
  0xf7   :  { %v2486_v11 = vpop.f32.mrb[0].mxu1  ;;  %v2423_v12 = vpop.f32.mrb[1].mxu0 }
  0xf8   :  { %v2424_v13 = vadd.f32 %v2423_v12, %v2422_v10  ;;  %v2487_v14 = vpop.f32.mrb[1].mxu1  ;;  %v2425_v15 = vpop.f32.mrb[2].mxu0 }
  0xf9   :  { %v2488_v16 = vadd.f32 %v2487_v14, %v2486_v11  ;;  %v2489_v17 = vpop.f32.mrb[2].mxu1  ;;  %v2426_v18 = vpop.f32.mrb[3].mxu0 }
  0xfa   :  { %v2427_v19 = vadd.f32 %v2426_v18, %v2425_v15  ;;  %v2490_v20 = vpop.f32.mrb[3].mxu1 }
  0xfb   :  { %v3708_v21 = vadd.f32 %v2488_v16, %v2424_v13  ;;  %v2491_v22 = vadd.f32 %v2490_v20, %v2489_v17 }
  0xfd   :  { %v3710_v23 = vadd.f32 %v2491_v22, %v2427_v19 }
  0xfe   :  { %v2428_v24 = vpop.f32.mrb[4].mxu0 }
  0xff   :  { %v2492_v25 = vpop.f32.mrb[4].mxu1  ;;  %v2429_v26 = vpop.f32.mrb[5].mxu0 }
 0x100   :  { %v2430_v27 = vadd.f32 %v2429_v26, %v2428_v24  ;;  %v2493_v28 = vpop.f32.mrb[5].mxu1  ;;  %v2431_v29 = vpop.f32.mrb[6].mxu0 }
 0x101   :  { %v2494_v30 = vadd.f32 %v2493_v28, %v2492_v25  ;;  %v2495_v31 = vpop.f32.mrb[6].mxu1  ;;  %v2432_v32 = vpop.f32.mrb[7].mxu0 }
 0x102   :  { %v2433_v33 = vadd.f32 %v2432_v32, %v2431_v29  ;;  %v2496_v34 = vpop.f32.mrb[7].mxu1 }
 0x103   :  { %v3712_v35 = vadd.f32 %v2494_v30, %v2430_v27  ;;  %v2497_v36 = vadd.f32 %v2496_v34, %v2495_v31 }
 0x105   :  { %v3714_v37 = vadd.f32 %v2497_v36, %v2433_v33 }
 0x106   :  { %v2434_v38 = vpop.f32.mrb[8].mxu0 }
 0x107   :  { %v2498_v39 = vpop.f32.mrb[8].mxu1  ;;  %v2435_v40 = vpop.f32.mrb[9].mxu0 }
 0x108   :  { %v2436_v41 = vadd.f32 %v2435_v40, %v2434_v38  ;;  %v2499_v42 = vpop.f32.mrb[9].mxu1  ;;  %v2437_v43 = vpop.f32.mrb[10].mxu0 }
 0x109   :  { %v2500_v44 = vadd.f32 %v2499_v42, %v2498_v39  ;;  %v2501_v45 = vpop.f32.mrb[10].mxu1  ;;  %v2438_v46 = vpop.f32.mrb[11].mxu0 }
 0x10a   :  { %v2439_v47 = vadd.f32 %v2438_v46, %v2437_v43  ;;  %v2502_v48 = vpop.f32.mrb[11].mxu1 }
 0x10b   :  { %v3716_v49 = vadd.f32 %v2500_v44, %v2436_v41  ;;  %v2503_v50 = vadd.f32 %v2502_v48, %v2501_v45 }
 0x10d   :  { %v3718_v51 = vadd.f32 %v2503_v50, %v2439_v47 }
 0x10e   :  { %v2440_v52 = vpop.f32.mrb[12].mxu0 }
 0x10f   :  { %v2504_v53 = vpop.f32.mrb[12].mxu1  ;;  %v2441_v54 = vpop.f32.mrb[13].mxu0 }
 0x110   :  { %v2442_v55 = vadd.f32 %v2441_v54, %v2440_v52  ;;  %v2505_v56 = vpop.f32.mrb[13].mxu1  ;;  %v2443_v57 = vpop.f32.mrb[14].mxu0 }
 0x111   :  { %v2506_v58 = vadd.f32 %v2505_v56, %v2504_v53  ;;  %v2507_v59 = vpop.f32.mrb[14].mxu1  ;;  %v2444_v60 = vpop.f32.mrb[15].mxu0 }
 0x112   :  { %v2445_v61 = vadd.f32 %v2444_v60, %v2443_v57  ;;  %v2508_v62 = vpop.f32.mrb[15].mxu1 }
 0x113   :  { %v3720_v63 = vadd.f32 %v2506_v58, %v2442_v55  ;;  %v2509_v0 = vadd.f32 %v2508_v62, %v2507_v59 }
 0x115   :  { %v3722_v1 = vadd.f32 %v2509_v0, %v2445_v61 }
 0x116   :  { %v2446_v2 = vpop.f32.mrb[16].mxu0 }
 0x117   :  { %v2510_v3 = vpop.f32.mrb[16].mxu1  ;;  %v2447_v4 = vpop.f32.mrb[17].mxu0 }
 0x118   :  { %v2448_v5 = vadd.f32 %v2447_v4, %v2446_v2  ;;  %v2511_v6 = vpop.f32.mrb[17].mxu1  ;;  %v2449_v7 = vpop.f32.mrb[18].mxu0 }
 0x119   :  { %v2512_v8 = vadd.f32 %v2511_v6, %v2510_v3  ;;  %v2513_v9 = vpop.f32.mrb[18].mxu1  ;;  %v2450_v10 = vpop.f32.mrb[19].mxu0 }
 0x11a   :  { %v2451_v11 = vadd.f32 %v2450_v10, %v2449_v7  ;;  %v2514_v12 = vpop.f32.mrb[19].mxu1 }
 0x11b   :  { %v3724_v13 = vadd.f32 %v2512_v8, %v2448_v5  ;;  %v2515_v14 = vadd.f32 %v2514_v12, %v2513_v9 }
 0x11d   :  { %v3726_v15 = vadd.f32 %v2515_v14, %v2451_v11 }
 0x11e   :  { %v2452_v16 = vpop.f32.mrb[20].mxu0 }
 0x11f   :  { %v2516_v17 = vpop.f32.mrb[20].mxu1  ;;  %v2453_v18 = vpop.f32.mrb[21].mxu0 }
 0x120   :  { %v2454_v19 = vadd.f32 %v2453_v18, %v2452_v16  ;;  %v2517_v20 = vpop.f32.mrb[21].mxu1  ;;  %v2455_v22 = vpop.f32.mrb[22].mxu0 }
 0x121   :  { %v2518_v24 = vadd.f32 %v2517_v20, %v2516_v17  ;;  %v2519_v25 = vpop.f32.mrb[22].mxu1  ;;  %v2456_v26 = vpop.f32.mrb[23].mxu0 }
 0x122   :  { %v2457_v27 = vadd.f32 %v2456_v26, %v2455_v22  ;;  %v2520_v28 = vpop.f32.mrb[23].mxu1 }
 0x123   :  { %v3728_v29 = vadd.f32 %v2518_v24, %v2454_v19  ;;  %v2521_v30 = vadd.f32 %v2520_v28, %v2519_v25 }
 0x125   :  { %v3730_v31 = vadd.f32 %v2521_v30, %v2457_v27 }
 0x126   :  { %v2458_v32 = vpop.f32.mrb[24].mxu0 }
 0x127   :  { %v2522_v33 = vpop.f32.mrb[24].mxu1  ;;  %v2459_v34 = vpop.f32.mrb[25].mxu0 }
 0x128   :  { %v2460_v36 = vadd.f32 %v2459_v34, %v2458_v32  ;;  %v2523_v38 = vpop.f32.mrb[25].mxu1  ;;  %v2461_v39 = vpop.f32.mrb[26].mxu0 }
 0x129   :  { %v2524_v40 = vadd.f32 %v2523_v38, %v2522_v33  ;;  %v2525_v41 = vpop.f32.mrb[26].mxu1  ;;  %v2462_v42 = vpop.f32.mrb[27].mxu0 }
 0x12a   :  { %v2463_v43 = vadd.f32 %v2462_v42, %v2461_v39  ;;  %v2526_v44 = vpop.f32.mrb[27].mxu1 }
 0x12b   :  { %v3732_v45 = vadd.f32 %v2524_v40, %v2460_v36  ;;  %v2527_v46 = vadd.f32 %v2526_v44, %v2525_v41 }
 0x12d   :  { %v3734_v47 = vadd.f32 %v2527_v46, %v2463_v43 }
 0x12e   :  { %v2464_v48 = vpop.f32.mrb[28].mxu0 }
 0x12f   :  { %v2528_v50 = vpop.f32.mrb[28].mxu1  ;;  %v2465_v52 = vpop.f32.mrb[29].mxu0 }
 0x130   :  { %v2466_v53 = vadd.f32 %v2465_v52, %v2464_v48  ;;  %v2529_v54 = vpop.f32.mrb[29].mxu1  ;;  %v2467_v55 = vpop.f32.mrb[30].mxu0 }
 0x131   :  { %v2530_v56 = vadd.f32 %v2529_v54, %v2528_v50  ;;  %v2531_v57 = vpop.f32.mrb[30].mxu1  ;;  %v2468_v58 = vpop.f32.mrb[31].mxu0 }
 0x132   :  { %v2469_v59 = vadd.f32 %v2468_v58, %v2467_v55  ;;  %v2532_v60 = vpop.f32.mrb[31].mxu1 }
 0x133   :  { %v3736_v61 = vadd.f32 %v2530_v56, %v2466_v53  ;;  %v2533_v62 = vadd.f32 %v2532_v60, %v2531_v57 }
 0x135   :  { %v3738_v0 = vadd.f32 %v2533_v62, %v2469_v59 }
 0x136   :  { %v2550_v2 = vpop.f32.mrb[32].mxu0 }
 0x137   :  { %v2614_v3 = vpop.f32.mrb[32].mxu1  ;;  %v2551_v4 = vpop.f32.mrb[33].mxu0 }
 0x138   :  { %v2552_v5 = vadd.f32 %v2551_v4, %v2550_v2  ;;  %v2615_v6 = vpop.f32.mrb[33].mxu1  ;;  %v2553_v7 = vpop.f32.mrb[34].mxu0 }
 0x139   :  { %v2616_v8 = vadd.f32 %v2615_v6, %v2614_v3  ;;  %v2617_v9 = vpop.f32.mrb[34].mxu1  ;;  %v2554_v10 = vpop.f32.mrb[35].mxu0 }
 0x13a   :  { %v1685_v11 = vadd.f32 %v2552_v5, %v3708_v21  ;;  %v2555_v12 = vadd.f32 %v2554_v10, %v2553_v7  ;;  %v2618_v14 = vpop.f32.mrb[35].mxu1 }
 0x13b   :  { %v2619_v16 = vadd.f32 %v2618_v14, %v2617_v9 }
 0x13c   :  { %v3741_v17 = vadd.f32 %v2616_v8, %v1685_v11  ;;  %v1688_v18 = vadd.f32 %v2555_v12, %v3710_v23 }
 0x13e   :  { %v3744_v19 = vadd.f32 %v2619_v16, %v1688_v18  ;;  %v2556_v20 = vpop.f32.mrb[36].mxu0 }
 0x13f   :  { %v2620_v22 = vpop.f32.mrb[36].mxu1  ;;  %v2557_v24 = vpop.f32.mrb[37].mxu0 }
 0x140   :  { %v2558_v25 = vadd.f32 %v2557_v24, %v2556_v20  ;;  %v2621_v26 = vpop.f32.mrb[37].mxu1  ;;  %v2559_v27 = vpop.f32.mrb[38].mxu0 }
 0x141   :  { %v2622_v28 = vadd.f32 %v2621_v26, %v2620_v22  ;;  %v2623_v30 = vpop.f32.mrb[38].mxu1  ;;  %v2560_v32 = vpop.f32.mrb[39].mxu0 }
 0x142   :  { %v1693_v21 = vadd.f32 %v2558_v25, %v3712_v35  ;;  %v2561_v33 = vadd.f32 %v2560_v32, %v2559_v27  ;;  %v2624_v34 = vpop.f32.mrb[39].mxu1 }
 0x143   :  { %v2625_v36 = vadd.f32 %v2624_v34, %v2623_v30 }
 0x144   :  { %v3747_v38 = vadd.f32 %v2622_v28, %v1693_v21  ;;  %v1696_v23 = vadd.f32 %v2561_v33, %v3714_v37 }
 0x146   :  { %v3750_v39 = vadd.f32 %v2625_v36, %v1696_v23  ;;  %v2562_v40 = vpop.f32.mrb[40].mxu0 }
 0x147   :  { %v2626_v41 = vpop.f32.mrb[40].mxu1  ;;  %v2563_v42 = vpop.f32.mrb[41].mxu0 }
 0x148   :  { %v2564_v43 = vadd.f32 %v2563_v42, %v2562_v40  ;;  %v2627_v44 = vpop.f32.mrb[41].mxu1  ;;  %v2565_v46 = vpop.f32.mrb[42].mxu0 }
 0x149   :  { %v2628_v48 = vadd.f32 %v2627_v44, %v2626_v41  ;;  %v2629_v50 = vpop.f32.mrb[42].mxu1  ;;  %v2566_v52 = vpop.f32.mrb[43].mxu0 }
 0x14a   :  { %v1701_v35 = vadd.f32 %v2564_v43, %v3716_v49  ;;  %v2567_v53 = vadd.f32 %v2566_v52, %v2565_v46  ;;  %v2630_v54 = vpop.f32.mrb[43].mxu1 }
 0x14b   :  { %v2631_v55 = vadd.f32 %v2630_v54, %v2629_v50 }
 0x14c   :  { %v3753_v56 = vadd.f32 %v2628_v48, %v1701_v35  ;;  %v1704_v37 = vadd.f32 %v2567_v53, %v3718_v51 }
 0x14e   :  { %v3756_v57 = vadd.f32 %v2631_v55, %v1704_v37  ;;  %v2568_v58 = vpop.f32.mrb[44].mxu0 }
 0x14f   :  { %v2632_v59 = vpop.f32.mrb[44].mxu1  ;;  %v2569_v60 = vpop.f32.mrb[45].mxu0 }
 0x150   :  { %v2570_v62 = vadd.f32 %v2569_v60, %v2568_v58  ;;  %v2633_v2 = vpop.f32.mrb[45].mxu1  ;;  %v2571_v3 = vpop.f32.mrb[46].mxu0 }
 0x151   :  { %v2634_v4 = vadd.f32 %v2633_v2, %v2632_v59  ;;  %v2635_v5 = vpop.f32.mrb[46].mxu1  ;;  %v2572_v6 = vpop.f32.mrb[47].mxu0 }
 0x152   :  { %v1709_v49 = vadd.f32 %v2570_v62, %v3720_v63  ;;  %v2573_v7 = vadd.f32 %v2572_v6, %v2571_v3  ;;  %v2636_v8 = vpop.f32.mrb[47].mxu1 }
 0x153   :  { %v2637_v9 = vadd.f32 %v2636_v8, %v2635_v5 }
 0x154   :  { %v3759_v10 = vadd.f32 %v2634_v4, %v1709_v49  ;;  %v1712_v51 = vadd.f32 %v2573_v7, %v3722_v1 }
 0x156   :  { %v3762_v11 = vadd.f32 %v2637_v9, %v1712_v51  ;;  %v2574_v12 = vpop.f32.mrb[48].mxu0 }
 0x157   :  { %v2638_v14 = vpop.f32.mrb[48].mxu1  ;;  %v2575_v16 = vpop.f32.mrb[49].mxu0 }
 0x158   :  { %v2576_v18 = vadd.f32 %v2575_v16, %v2574_v12  ;;  %v2639_v20 = vpop.f32.mrb[49].mxu1  ;;  %v2577_v22 = vpop.f32.mrb[50].mxu0 }
 0x159   :  { %v2640_v24 = vadd.f32 %v2639_v20, %v2638_v14  ;;  %v2641_v25 = vpop.f32.mrb[50].mxu1  ;;  %v2578_v26 = vpop.f32.mrb[51].mxu0 }
 0x15a   :  { %v1717_v63 = vadd.f32 %v2576_v18, %v3724_v13  ;;  %v2579_v27 = vadd.f32 %v2578_v26, %v2577_v22  ;;  %v2642_v28 = vpop.f32.mrb[51].mxu1 }
 0x15b   :  { %v2643_v30 = vadd.f32 %v2642_v28, %v2641_v25 }
 0x15c   :  { %v3765_v32 = vadd.f32 %v2640_v24, %v1717_v63  ;;  %v1720_v1 = vadd.f32 %v2579_v27, %v3726_v15 }
 0x15e   :  { %v3768_v21 = vadd.f32 %v2643_v30, %v1720_v1  ;;  %v2580_v33 = vpop.f32.mrb[52].mxu0 }
 0x15f   :  { %v2644_v34 = vpop.f32.mrb[52].mxu1  ;;  %v2581_v36 = vpop.f32.mrb[53].mxu0 }
 0x160   :  { %v2582_v23 = vadd.f32 %v2581_v36, %v2580_v33  ;;  %v2645_v40 = vpop.f32.mrb[53].mxu1  ;;  %v2583_v41 = vpop.f32.mrb[54].mxu0 }
 0x161   :  { %v2646_v42 = vadd.f32 %v2645_v40, %v2644_v34  ;;  %v2647_v43 = vpop.f32.mrb[54].mxu1  ;;  %v2584_v44 = vpop.f32.mrb[55].mxu0 }
 0x162   :  { %v1725_v13 = vadd.f32 %v2582_v23, %v3728_v29  ;;  %v2585_v46 = vadd.f32 %v2584_v44, %v2583_v41  ;;  %v2648_v48 = vpop.f32.mrb[55].mxu1 }
 0x163   :  { %v2649_v50 = vadd.f32 %v2648_v48, %v2647_v43 }
 0x164   :  { %v3771_v52 = vadd.f32 %v2646_v42, %v1725_v13  ;;  %v1728_v15 = vadd.f32 %v2585_v46, %v3730_v31 }
 0x166   :  { %v3774_v35 = vadd.f32 %v2649_v50, %v1728_v15  ;;  %v2586_v53 = vpop.f32.mrb[56].mxu0 }
 0x167   :  { %v2650_v54 = vpop.f32.mrb[56].mxu1  ;;  %v2587_v55 = vpop.f32.mrb[57].mxu0 }
 0x168   :  { %v2588_v37 = vadd.f32 %v2587_v55, %v2586_v53  ;;  %v2651_v58 = vpop.f32.mrb[57].mxu1  ;;  %v2589_v59 = vpop.f32.mrb[58].mxu0 }
 0x169   :  { %v2652_v60 = vadd.f32 %v2651_v58, %v2650_v54  ;;  %v2653_v62 = vpop.f32.mrb[58].mxu1  ;;  %v2590_v2 = vpop.f32.mrb[59].mxu0 }
 0x16a   :  { %v1733_v29 = vadd.f32 %v2588_v37, %v3732_v45  ;;  %v2591_v3 = vadd.f32 %v2590_v2, %v2589_v59  ;;  %v2654_v4 = vpop.f32.mrb[59].mxu1 }
 0x16b   :  { %v2655_v5 = vadd.f32 %v2654_v4, %v2653_v62 }
 0x16c   :  { %v3777_v6 = vadd.f32 %v2652_v60, %v1733_v29  ;;  %v1736_v31 = vadd.f32 %v2591_v3, %v3734_v47 }
 0x16e   :  { %v3780_v49 = vadd.f32 %v2655_v5, %v1736_v31  ;;  %v2592_v7 = vpop.f32.mrb[60].mxu0 }
 0x16f   :  { %v2656_v8 = vpop.f32.mrb[60].mxu1  ;;  %v2593_v9 = vpop.f32.mrb[61].mxu0 }
 0x170   :  { %v2594_v51 = vadd.f32 %v2593_v9, %v2592_v7  ;;  %v2657_v12 = vpop.f32.mrb[61].mxu1  ;;  %v2595_v14 = vpop.f32.mrb[62].mxu0 }
 0x171   :  { %v2658_v16 = vadd.f32 %v2657_v12, %v2656_v8  ;;  %v2659_v18 = vpop.f32.mrb[62].mxu1  ;;  %v2596_v20 = vpop.f32.mrb[63].mxu0 }
 0x172   :  { %v1741_v45 = vadd.f32 %v2594_v51, %v3736_v61  ;;  %v2597_v22 = vadd.f32 %v2596_v20, %v2595_v14  ;;  %v2660_v24 = vpop.f32.mrb[63].mxu1 }
 0x173   :  { %v2661_v25 = vadd.f32 %v2660_v24, %v2659_v18 }
 0x174   :  { %v3783_v26 = vadd.f32 %v2658_v16, %v1741_v45  ;;  %v1744_v47 = vadd.f32 %v2597_v22, %v3738_v0 }
 0x176   :  { %v3786_v63 = vadd.f32 %v2661_v25, %v1744_v47  ;;  %v2678_v27 = vpop.f32.mrb[64].mxu0 }
 0x177   :  { %v2742_v28 = vpop.f32.mrb[64].mxu1  ;;  %v2679_v30 = vpop.f32.mrb[65].mxu0 }
 0x178   :  { %v2680_v1 = vadd.f32 %v2679_v30, %v2678_v27  ;;  %v2743_v33 = vpop.f32.mrb[65].mxu1  ;;  %v2681_v34 = vpop.f32.mrb[66].mxu0 }
 0x179   :  { %v2744_v36 = vadd.f32 %v2743_v33, %v2742_v28  ;;  %v2745_v23 = vpop.f32.mrb[66].mxu1  ;;  %v2682_v40 = vpop.f32.mrb[67].mxu0 }
 0x17a   :  { %v1879_v61 = vadd.f32 %v2680_v1, %v3741_v17  ;;  %v2683_v41 = vadd.f32 %v2682_v40, %v2681_v34  ;;  %v2746_v42 = vpop.f32.mrb[67].mxu1 }
 0x17b   :  { %v2747_v43 = vadd.f32 %v2746_v42, %v2745_v23 }
 0x17c   :  { %v1882_v44 = vadd.f32 %v2683_v41, %v3744_v19  ;;  %v3790_v13 = vadd.f32 %v2744_v36, %v1879_v61 }
 0x17e   :  { %v2684_v0 = vpop.f32.mrb[68].mxu0  ;;  %v3792_v46 = vadd.f32 %v2747_v43, %v1882_v44 }
 0x17f   :  { %v2748_v48 = vpop.f32.mrb[68].mxu1  ;;  %v2685_v50 = vpop.f32.mrb[69].mxu0 }
 0x180   :  { %v2686_v15 = vadd.f32 %v2685_v50, %v2684_v0  ;;  %v2749_v53 = vpop.f32.mrb[69].mxu1  ;;  %v2687_v54 = vpop.f32.mrb[70].mxu0 }
 0x181   :  { %v2750_v55 = vadd.f32 %v2749_v53, %v2748_v48  ;;  %v2751_v37 = vpop.f32.mrb[70].mxu1  ;;  %v2688_v58 = vpop.f32.mrb[71].mxu0 }
 0x182   :  { %v1887_v17 = vadd.f32 %v2686_v15, %v3747_v38  ;;  %v2689_v59 = vadd.f32 %v2688_v58, %v2687_v54  ;;  %v2752_v60 = vpop.f32.mrb[71].mxu1 }
 0x183   :  { %v2753_v62 = vadd.f32 %v2752_v60, %v2751_v37 }
 0x184   :  { %v1890_v19 = vadd.f32 %v2689_v59, %v3750_v39  ;;  %v3796_v2 = vadd.f32 %v2750_v55, %v1887_v17 }
 0x186   :  { %v2690_v29 = vpop.f32.mrb[72].mxu0  ;;  %v3798_v3 = vadd.f32 %v2753_v62, %v1890_v19 }
 0x187   :  { %v2754_v4 = vpop.f32.mrb[72].mxu1  ;;  %v2691_v5 = vpop.f32.mrb[73].mxu0 }
 0x188   :  { %v2692_v31 = vadd.f32 %v2691_v5, %v2690_v29  ;;  %v2755_v7 = vpop.f32.mrb[73].mxu1  ;;  %v2693_v8 = vpop.f32.mrb[74].mxu0 }
 0x189   :  { %v2756_v9 = vadd.f32 %v2755_v7, %v2754_v4  ;;  %v2757_v51 = vpop.f32.mrb[74].mxu1  ;;  %v2694_v12 = vpop.f32.mrb[75].mxu0 }
 0x18a   :  { %v1895_v38 = vadd.f32 %v2692_v31, %v3753_v56  ;;  %v2695_v14 = vadd.f32 %v2694_v12, %v2693_v8  ;;  %v2758_v16 = vpop.f32.mrb[75].mxu1 }
 0x18b   :  { %v2759_v18 = vadd.f32 %v2758_v16, %v2757_v51 }
 0x18c   :  { %v1898_v39 = vadd.f32 %v2695_v14, %v3756_v57  ;;  %v3802_v20 = vadd.f32 %v2756_v9, %v1895_v38 }
 0x18e   :  { %v2696_v45 = vpop.f32.mrb[76].mxu0  ;;  %v3804_v22 = vadd.f32 %v2759_v18, %v1898_v39 }
 0x18f   :  { %v2760_v24 = vpop.f32.mrb[76].mxu1  ;;  %v2697_v25 = vpop.f32.mrb[77].mxu0 }
 0x190   :  { %v2698_v47 = vadd.f32 %v2697_v25, %v2696_v45  ;;  %v2761_v27 = vpop.f32.mrb[77].mxu1  ;;  %v2699_v28 = vpop.f32.mrb[78].mxu0 }
 0x191   :  { %v2762_v30 = vadd.f32 %v2761_v27, %v2760_v24  ;;  %v2763_v1 = vpop.f32.mrb[78].mxu1  ;;  %v2700_v33 = vpop.f32.mrb[79].mxu0 }
 0x192   :  { %v1903_v56 = vadd.f32 %v2698_v47, %v3759_v10  ;;  %v2701_v34 = vadd.f32 %v2700_v33, %v2699_v28  ;;  %v2764_v36 = vpop.f32.mrb[79].mxu1 }
 0x193   :  { %v2765_v23 = vadd.f32 %v2764_v36, %v2763_v1 }
 0x194   :  { %v1906_v57 = vadd.f32 %v2701_v34, %v3762_v11  ;;  %v3808_v40 = vadd.f32 %v2762_v30, %v1903_v56 }
 0x196   :  { %v2702_v61 = vpop.f32.mrb[80].mxu0  ;;  %v3810_v41 = vadd.f32 %v2765_v23, %v1906_v57 }
 0x197   :  { %v2766_v42 = vpop.f32.mrb[80].mxu1  ;;  %v2703_v43 = vpop.f32.mrb[81].mxu0 }
 0x198   :  { %v2704_v44 = vadd.f32 %v2703_v43, %v2702_v61  ;;  %v2767_v0 = vpop.f32.mrb[81].mxu1  ;;  %v2705_v48 = vpop.f32.mrb[82].mxu0 }
 0x199   :  { %v2768_v50 = vadd.f32 %v2767_v0, %v2766_v42  ;;  %v2769_v15 = vpop.f32.mrb[82].mxu1  ;;  %v2706_v53 = vpop.f32.mrb[83].mxu0 }
 0x19a   :  { %v1911_v10 = vadd.f32 %v2704_v44, %v3765_v32  ;;  %v2707_v54 = vadd.f32 %v2706_v53, %v2705_v48  ;;  %v2770_v55 = vpop.f32.mrb[83].mxu1 }
 0x19b   :  { %v2771_v37 = vadd.f32 %v2770_v55, %v2769_v15 }
 0x19c   :  { %v1914_v11 = vadd.f32 %v2707_v54, %v3768_v21  ;;  %v2008_v58 = vadd.f32 %v2768_v50, %v1911_v10 }
 0x19e   :  { %v2708_v17 = vpop.f32.mrb[84].mxu0  ;;  %v3814_v59 = vadd.f32 %v2771_v37, %v1914_v11 }
 0x19f   :  { %v2772_v60 = vpop.f32.mrb[84].mxu1  ;;  %v2709_v62 = vpop.f32.mrb[85].mxu0 }
 0x1a0   :  { %v2710_v19 = vadd.f32 %v2709_v62, %v2708_v17  ;;  %v2773_v29 = vpop.f32.mrb[85].mxu1  ;;  %v2711_v4 = vpop.f32.mrb[86].mxu0 }
 0x1a1   :  { %v2774_v5 = vadd.f32 %v2773_v29, %v2772_v60  ;;  %v2775_v31 = vpop.f32.mrb[86].mxu1  ;;  %v2712_v7 = vpop.f32.mrb[87].mxu0 }
 0x1a2   :  { %v1919_v8 = vadd.f32 %v2710_v19, %v3771_v52  ;;  %v2713_v32 = vadd.f32 %v2712_v7, %v2711_v4  ;;  %v2776_v9 = vpop.f32.mrb[87].mxu1 }
 0x1a3   :  { %v2777_v51 = vadd.f32 %v2776_v9, %v2775_v31 }
 0x1a4   :  { %v1922_v12 = vadd.f32 %v2713_v32, %v3774_v35  ;;  %v2016_v21 = vadd.f32 %v2774_v5, %v1919_v8 }
 0x1a6   :  { %v2714_v38 = vpop.f32.mrb[88].mxu0  ;;  %v2019_v14 = vadd.f32 %v2777_v51, %v1922_v12 }
 0x1a7   :  { %v2778_v16 = vpop.f32.mrb[88].mxu1  ;;  %v2715_v18 = vpop.f32.mrb[89].mxu0 }
 0x1a8   :  { %v2716_v39 = vadd.f32 %v2715_v18, %v2714_v38  ;;  %v2779_v45 = vpop.f32.mrb[89].mxu1  ;;  %v2717_v24 = vpop.f32.mrb[90].mxu0 }
 0x1a9   :  { %v2780_v25 = vadd.f32 %v2779_v45, %v2778_v16  ;;  %v2781_v47 = vpop.f32.mrb[90].mxu1  ;;  %v2718_v27 = vpop.f32.mrb[91].mxu0 }
 0x1aa   :  { %v1927_v28 = vadd.f32 %v2716_v39, %v3777_v6  ;;  %v2719_v30 = vadd.f32 %v2718_v27, %v2717_v24  ;;  %v2782_v52 = vpop.f32.mrb[91].mxu1 }
 0x1ab   :  { %v2783_v1 = vadd.f32 %v2782_v52, %v2781_v47 }
 0x1ac   :  { %v1930_v33 = vadd.f32 %v2719_v30, %v3780_v49  ;;  %v2024_v56 = vadd.f32 %v2780_v25, %v1927_v28 }
 0x1ae   :  { %v2720_v35 = vpop.f32.mrb[92].mxu0  ;;  %v2027_v34 = vadd.f32 %v2783_v1, %v1930_v33 }
 0x1af   :  { %v2784_v36 = vpop.f32.mrb[92].mxu1  ;;  %v2721_v23 = vpop.f32.mrb[93].mxu0 }
 0x1b0   :  { %v2722_v57 = vadd.f32 %v2721_v23, %v2720_v35  ;;  %v2785_v61 = vpop.f32.mrb[93].mxu1  ;;  %v2723_v42 = vpop.f32.mrb[94].mxu0 }
 0x1b1   :  { %v2786_v43 = vadd.f32 %v2785_v61, %v2784_v36  ;;  %v2787_v44 = vpop.f32.mrb[94].mxu1  ;;  %v2724_v0 = vpop.f32.mrb[95].mxu0 }
 0x1b2   :  { %v1935_v48 = vadd.f32 %v2722_v57, %v3783_v26  ;;  %v2725_v50 = vadd.f32 %v2724_v0, %v2723_v42  ;;  %v2788_v6 = vpop.f32.mrb[95].mxu1 }
 0x1b3   :  { %v2789_v15 = vadd.f32 %v2788_v6, %v2787_v44 }
 0x1b4   :  { %v1938_v53 = vadd.f32 %v2725_v50, %v3786_v63  ;;  %v2032_v10 = vadd.f32 %v2786_v43, %v1935_v48 }
 0x1b6   :  { %v2806_v49 = vpop.f32.mrb[96].mxu0  ;;  %v2035_v54 = vadd.f32 %v2789_v15, %v1938_v53 }
 0x1b7   :  { %v2081_v55 = vadd.f32 %v2806_v49, %v3796_v2  ;;  %v2814_v37 = vpop.f32.mrb[96].mxu1  ;;  %v2072_v11 = vpop.f32.mrb[97].mxu0 }
 0x1b8   :  { %v2113_v17 = vadd.f32 %v2814_v37, %v2016_v21  ;;  %v2073_v60 = vadd.f32 %v2072_v11, %v3790_v13  ;;  %v2104_v62 = vpop.f32.mrb[97].mxu1  ;;  %v2807_v19 = vpop.f32.mrb[98].mxu0 }
 0x1b9   :  { %v2105_v29 = vadd.f32 %v2104_v62, %v2008_v58  ;;  %v2084_v26 = vadd.f32 %v2807_v19, %v3798_v3  ;;  %v2815_v4 = vpop.f32.mrb[98].mxu1  ;;  %v2075_v5 = vpop.f32.mrb[99].mxu0 }
 0x1ba   :  { %v2116_v31 = vadd.f32 %v2815_v4, %v2019_v14  ;;  %v2076_v63 = vadd.f32 %v2075_v5, %v3792_v46  ;;  %v2107_v7 = vpop.f32.mrb[99].mxu1 }
 0x1bb   :  { %v2108_v8 = vadd.f32 %v2107_v7, %v3814_v59 }
 0x1be   :  { %v2810_v32 = vpop.f32.mrb[100].mxu0 }
 0x1bf   :  { %v2097_v2 = vadd.f32 %v2810_v32, %v3808_v40  ;;  %v2818_v9 = vpop.f32.mrb[100].mxu1  ;;  %v2088_v51 = vpop.f32.mrb[101].mxu0  ;;  %v2397_v40 = vld [vmem:[%s3848_s2] ss:$0 sm:$0xff] }
 0x1c0   :  { %v2129_v12 = vadd.f32 %v2818_v9, %v2032_v10  ;;  %v2089_v13 = vadd.f32 %v2088_v51, %v3802_v20  ;;  %v2120_v21 = vpop.f32.mrb[101].mxu1  ;;  %v2811_v58 = vpop.f32.mrb[102].mxu0 }
 0x1c1   :  { %v2137_v38 = vmax.f32 %v2081_v55, %v2097_v2  ;;  %v2121_v3 = vadd.f32 %v2120_v21, %v2024_v56  ;;  %v2100_v16 = vadd.f32 %v2811_v58, %v3810_v41  ;;  %v2819_v14 = vpop.f32.mrb[102].mxu1  ;;  %v2091_v18 = vpop.f32.mrb[103].mxu0 }
 0x1c2   :  { %v2141_v46 = vmax.f32 %v2113_v17, %v2129_v12  ;;  %v2135_v39 = vmax.f32 %v2073_v60, %v2089_v13  ;;  %v2132_v45 = vadd.f32 %v2819_v14, %v2035_v54  ;;  %v2092_v59 = vadd.f32 %v2091_v18, %v3804_v22  ;;  %v2123_v24 = vpop.f32.mrb[103].mxu1 }
 0x1c3   :  { %v2139_v25 = vmax.f32 %v2105_v29, %v2121_v3  ;;  %v2138_v20 = vmax.f32 %v2084_v26, %v2100_v16  ;;  %v2124_v47 = vadd.f32 %v2123_v24, %v2027_v34 }
 0x1c4   :  { %v2145_v27 = vmax.f32 %v2137_v38, %v2141_v46  ;;  %v2142_v28 = vmax.f32 %v2116_v31, %v2132_v45  ;;  %v2136_v30 = vmax.f32 %v2076_v63, %v2092_v59 }
 0x1c5   :  { %v2143_v52 = vmax.f32 %v2135_v39, %v2139_v25  ;;  %v2140_v41 = vmax.f32 %v2108_v8, %v2124_v47 }
 0x1c6   :  { %v2156_v1 = vadd.f32 %v2397_v40, %v2145_v27  ;;  %v2146_v33 = vmax.f32 %v2138_v20, %v2142_v28 }
 0x1c7   :  { %v2154_v56 = vadd.f32 %v2397_v40, %v2143_v52  ;;  %v2144_v35 = vmax.f32 %v2136_v30, %v2140_v41 }
 0x1c8   :  { %v2160_v36 = vmax.f32 %v2156_v1, 0.0  ;;  %v2157_v23 = vadd.f32 %v2397_v40, %v2146_v33 }
 0x1c9   :  { %v2158_v22 = vmax.f32 %v2154_v56, 0.0  ;;  %v2155_v57 = vadd.f32 %v2397_v40, %v2144_v35 }
 0x1ca   :  { %v2404_v61 = vpack.c.bf16 %v2160_v36, %v2160_v36  ;;  %v2161_v42 = vmax.f32 %v2157_v23, 0.0 }
 0x1cb   :  { %v2402_v43 = vpack.c.bf16 %v2158_v22, %v2158_v22  ;;  %v2159_v44 = vmax.f32 %v2155_v57, 0.0 }
 0x1cc   :  { %2181 = vst.msk [vmem:[%s3849_s3 + $0x8] sm:$0xf] %vm2178_vm1, %v2404_v61  ;;  %v2405_v34 = vpack.c.bf16 %v2161_v42, %v2161_v42 }
 0x1cd   :  { %2179 = vst.msk [vmem:[%s3849_s3] sm:$0xf] %vm2178_vm1, %v2402_v43  ;;  %v2403_v0 = vpack.c.bf16 %v2159_v44, %v2159_v44 }
 0x1ce   :  { %2182 = vst.msk [vmem:[%s3849_s3 + $0xc] sm:$0xf] %vm2178_vm1, %v2405_v34 }
 0x1cf   :  { %2180 = vst.msk [vmem:[%s3849_s3 + $0x4] sm:$0xf] %vm2178_vm1, %v2403_v0 }

// kernel: _cnn_forward_jit.8
= control target key start
LH: loop header
LB: loop body
LE: loop exit
PB: predicated region body
PF: predicated region fallthrough
CT: control target
= control target key end

     0   :  { %vm197_vm0 = vcmask 261120   ;;  %vm315_vm1 = vcmask 257024   ;;  %s512_s1 = inlined_call_operand.vmem [shape: bf16[288,32], index: 1, kind: input, shape index: {}]   ;;  %s513_s0 = inlined_call_operand.vmem [shape: bf16[32,288], index: 0, kind: input, shape index: {}]   ;;  %s514_s2 = inlined_call_operand.vmem [shape: f32[1,32], index: 2, kind: input, shape index: {}]   ;;  %s515_s3 = inlined_call_operand.vmem [shape: bf16[8,32], index: 3, kind: output, shape index: {}]  }
   0x1   :  { %v388_v0 = vld [vmem:[%s512_s1 + $0x40] sm:$0xff]   ;;  %v390_v2 = vld [vmem:[%s512_s1 + $0x48] sm:$0xff]   ;;  %v392_v4 = vld [vmem:[%s512_s1 + $0x50] sm:$0xff]  }
   0x2   :  { %v389_v1 = vld [vmem:[%s512_s1] sm:$0xff]   ;;  %348 = vmatprep.subr.bf16.mxu0 %v388_v0  ;;  %v391_v3 = vld [vmem:[%s512_s1 + $0x8] sm:$0xff]   ;;  %v393_v5 = vld [vmem:[%s512_s1 + $0x10] sm:$0xff]  }
   0x3   :  { %349 = vmatpush3.bf16.msra.mxu0 %v389_v1  ;;  %v394_v6 = vld [vmem:[%s512_s1 + $0x58] sm:$0xff]   ;;  %v396_v8 = vld [vmem:[%s512_s1 + $0x60] sm:$0xff]   ;;  %v398_v11 = vld [vmem:[%s512_s1 + $0x68] sm:$0xff]  }
   0x4   :  { %350 = vmatprep.subr.bf16.mxu0 %v390_v2  ;;  %v395_v7 = vld [vmem:[%s512_s1 + $0x18] sm:$0xff]   ;;  %v402_v9 = vld [vmem:[%s512_s1 + $0x80] sm:$0xff]   ;;  %v399_v12 = vld [vmem:[%s512_s1 + $0x28] sm:$0xff]  }
   0x5   :  { %v397_v10 = vld [vmem:[%s512_s1 + $0x20] sm:$0xff]   ;;  %380 = vmatprep.subr.bf16.mxu1 %v402_v9  ;;  %v405_v13 = vld [vmem:[%s512_s1 + $0x88] sm:$0xff]   ;;  %v400_v14 = vld [vmem:[%s512_s1 + $0x70] sm:$0xff]  }
   0x6   :  { %381 = vmatpush3.bf16.msra.mxu1 %v402_v9  ;;  %v408_v15 = vld [vmem:[%s513_s0 + $0x4] ss:$12 sps:$4 sm:$0xff]   ;;  %v409_v16 = vld [vmem:[%s513_s0 + $0x8] ss:$12 sps:$4 sm:$0xff]   ;;  %v410_v17 = vld [vmem:[%s513_s0 + $0x20] ss:$12 sps:$4 sm:$0xff]  }
   0x7   :  { %351 = vmatpush3.bf16.msra.mxu0 %v391_v3  ;;  %382 = vmatprep.subr.bf16.mxu1 %v405_v13  ;;  %v401_v18 = vld [vmem:[%s512_s1 + $0x30] sm:$0xff]   ;;  %v403_v19 = vld [vmem:[%s512_s1 + $0x78] sm:$0xff]   ;;  %v406_v21 = vld [vmem:[%s513_s0] ss:$12 sps:$4 sm:$0xff]  }
   0x8   :  { %352 = vmatprep.subr.bf16.mxu0 %v392_v4  ;;  %236 = vmatprep.mubr.bf16.mxu0 %v408_v15  ;;  %v404_v20 = vld [vmem:[%s512_s1 + $0x38] sm:$0xff]   ;;  %v347_v46 = vld [vmem:[%s514_s2] ss:$0 sm:$0xff] }
   0x9   :  { %384 = vmatprep.mubr.msk.bf16.mxu1 %vm197_vm0, %v409_v16  ;;  %v411_v22 = vld [vmem:[%s513_s0 + $0x1c] ss:$12 sps:$4 sm:$0xff]   ;;  %v413_v23 = vld [vmem:[%s513_s0 + $0x18] ss:$12 sps:$4 sm:$0xff]  }
   0xa   :  { %383 = vmatpush3.bf16.msra.mxu1 %v405_v13 }
   0xb   :  { %353 = vmatpush3.bf16.msra.mxu0 %v393_v5 }
   0xc   :  { %354 = vmatprep.subr.bf16.mxu0 %v394_v6 }
   0xd   :  { %385 = vmatmul.mubr.msk.bf16.vlgmr.msra.gmra.mrb[0].mxu1 %vm197_vm0, %v410_v17 }
   0xf   :  { %355 = vmatpush3.bf16.msra.mxu0 %v395_v7 }
  0x10   :  { %356 = vmatprep.subr.bf16.mxu0 %v396_v8 }
  0x13   :  { %357 = vmatpush3.bf16.msra.mxu0 %v397_v10 }
  0x14   :  { %358 = vmatprep.subr.bf16.mxu0 %v398_v11 }
  0x17   :  { %359 = vmatpush3.bf16.msra.mxu0 %v399_v12 }
  0x18   :  { %360 = vmatprep.subr.bf16.mxu0 %v400_v14 }
  0x1b   :  { %361 = vmatpush3.bf16.msra.mxu0 %v401_v18 }
  0x1c   :  { %362 = vmatprep.subr.bf16.mxu0 %v403_v19 }
  0x1f   :  { %363 = vmatpush3.bf16.msra.mxu0 %v404_v20 }
  0x22   :  { %237 = vmatmul.mubr.bf16.vlgmr.msra.gmra.mrb[0].mxu0 %v406_v21 }
  0x23   :  { %244 = vmatprep.mubr.bf16.mxu0 %v411_v22 }
  0x2a   :  { %245 = vmatmul.mubr.bf16.gmra.mrb[4].mxu0 %v413_v23 }
  0xe0   :  { %v386_v24 = vpop.f32.mrb[0].mxu1 }
  0xe1   :  { %v287_v25 = vpop.f32.mrb[1].mxu1 }
  0xe2   :  { %v387_v26 = vpop.f32.mrb[2].mxu1 }
  0xe3   :  { %v290_v27 = vpop.f32.mrb[3].mxu1 }
  0xf5   :  { %v364_v28 = vpop.f32.mrb[0].mxu0 }
  0xf6   :  { %v365_v29 = vpop.f32.mrb[1].mxu0 }
  0xf7   :  { %v366_v30 = vadd.f32 %v365_v29, %v364_v28  ;;  %v367_v31 = vpop.f32.mrb[2].mxu0 }
  0xf8   :  { %v368_v32 = vpop.f32.mrb[3].mxu0 }
  0xf9   :  { %v369_v33 = vadd.f32 %v368_v32, %v367_v31  ;;  %v288_v34 = vadd.f32 %v366_v30, %v287_v25 }
  0xfb   :  { %v291_v35 = vadd.f32 %v369_v33, %v290_v27 }
  0xfd   :  { %v302_v36 = vmax.f32 %v288_v34, %v291_v35  ;;  %v370_v37 = vpop.f32.mrb[4].mxu0 }
  0xfe   :  { %v371_v38 = vpop.f32.mrb[5].mxu0 }
  0xff   :  { %v372_v39 = vadd.f32 %v371_v38, %v370_v37  ;;  %v373_v40 = vpop.f32.mrb[6].mxu0 }
 0x100   :  { %v374_v41 = vpop.f32.mrb[7].mxu0 }
 0x101   :  { %v296_v42 = vadd.f32 %v386_v24, %v372_v39  ;;  %v375_v43 = vadd.f32 %v374_v41, %v373_v40 }
 0x103   :  { %v299_v44 = vadd.f32 %v387_v26, %v375_v43 }
 0x105   :  { %v303_v45 = vmax.f32 %v296_v42, %v299_v44 }
 0x107   :  { %v304_v47 = vmax.f32 %v302_v36, %v303_v45 }
 0x109   :  { %v312_v48 = vadd.f32 %v347_v46, %v304_v47 }
 0x10b   :  { %v313_v49 = vmax.f32 %v312_v48, 0.0 }
 0x10d   :  { %v314_v50 = vpack.c.bf16 %v313_v49, %v313_v49 }
 0x10f   :  { %316 = vst.msk [vmem:[%s515_s3] sm:$0xf] %vm315_vm1, %v314_v50 }

// kernel: _cnn_forward_jit.9
= control target key start
LH: loop header
LB: loop body
LE: loop exit
PB: predicated region body
PF: predicated region fallthrough
CT: control target
= control target key end

     0   :  { %v547_v1 = vmov 0.0   ;;  %vm548_vm0 = vmmov 0   ;;  %s716_s0 = inlined_call_operand.vmem [shape: bf16[2,128], index: 0, kind: input, shape index: {}]   ;;  %s717_s1 = inlined_call_operand.vmem [shape: bf16[128,128], index: 1, kind: input, shape index: {}]   ;;  %s718_s2 = inlined_call_operand.vmem [shape: f32[1,128], index: 2, kind: input, shape index: {}]   ;;  %s719_s3 = inlined_call_operand.vmem [shape: bf16[128,128], index: 3, kind: input, shape index: {}]   ;;  %s720_s4 = inlined_call_operand.vmem [shape: f32[1,128], index: 4, kind: input, shape index: {}]   ;;  %s721_s5 = inlined_call_operand.vmem [shape: bf16[128,128], index: 5, kind: input, shape index: {}]   ;;  %s722_s6 = inlined_call_operand.vmem [shape: f32[1,128], index: 6, kind: input, shape index: {}]   ;;  %s723_s7 = inlined_call_operand.hbm [shape: f32[2,128], index: 7, kind: output, shape index: {}]  }
   0x1   :  { %v499_v0 = vld [vmem:[%s717_s1] sm:$0xff]   ;;  %436 = vmatprep.subr.bf16.mxu0 %v547_v1  ;;  %456 = vmatprep.subr.bf16.mxu1 %v547_v1  ;;  %v500_v2 = vld [vmem:[%s717_s1 + $0x8] sm:$0xff]   ;;  %v501_v3 = vld [vmem:[%s717_s1 + $0x10] sm:$0xff]  }
   0x2   :  { %437 = vmatpush3.bf16.msra.mxu0 %v499_v0  ;;  %452 = vmatprep.mubr.msk.bf16.mxu0 %vm548_vm0, %v547_v1  ;;  %v507_v4 = vld [vmem:[%s719_s3] sm:$0xff]   ;;  %v502_v5 = vld [vmem:[%s717_s1 + $0x18] sm:$0xff]   ;;  %v508_v6 = vld [vmem:[%s719_s3 + $0x8] sm:$0xff]  }
   0x3   :  { %438 = vmatprep.subr.bf16.mxu0 %v547_v1  ;;  %472 = vmatprep.mubr.msk.bf16.mxu1 %vm548_vm0, %v547_v1  ;;  %v503_v7 = vld [vmem:[%s717_s1 + $0x20] sm:$0xff]   ;;  %v509_v8 = vld [vmem:[%s719_s3 + $0x10] sm:$0xff]   ;;  %v504_v9 = vld [vmem:[%s717_s1 + $0x28] sm:$0xff]  }
   0x4   :  { %457 = vmatpush3.bf16.msra.mxu1 %v507_v4  ;;  %v28_v10 = vld [vmem:[%s716_s0] sm:$0x1]  ;;  %v510_v11 = vld [vmem:[%s719_s3 + $0x18] sm:$0xff]  }
   0x5   :  { %458 = vmatprep.subr.bf16.mxu1 %v547_v1  ;;  %v29_v12 = vunpack.c.l.bf16 %v28_v10 }
   0x6   :  { %439 = vmatpush3.bf16.msra.mxu0 %v500_v2 }
   0x7   :  { %440 = vmatprep.subr.bf16.mxu0 %v547_v1 }
   0x8   :  { %459 = vmatpush3.bf16.msra.mxu1 %v508_v6 }
   0x9   :  { %460 = vmatprep.subr.bf16.mxu1 %v547_v1 }
   0xa   :  { %441 = vmatpush3.bf16.msra.mxu0 %v501_v3 }
   0xb   :  { %442 = vmatprep.subr.bf16.mxu0 %v547_v1 }
   0xc   :  { %461 = vmatpush3.bf16.msra.mxu1 %v509_v8 }
   0xd   :  { %462 = vmatprep.subr.bf16.mxu1 %v547_v1 }
   0xe   :  { %443 = vmatpush3.bf16.msra.mxu0 %v502_v5 }
   0xf   :  { %444 = vmatprep.subr.bf16.mxu0 %v547_v1 }
  0x12   :  { %445 = vmatpush3.bf16.msra.mxu0 %v503_v7 }
  0x13   :  { %446 = vmatprep.subr.bf16.mxu0 %v547_v1 }
  0x14   :  { %12 = vsyncpa [#allocation3], 0  ;;  %v505_v13 = vld [vmem:[%s717_s1 + $0x30] sm:$0xff]   ;;  %463 = vmatpush3.bf16.msra.mxu1 %v510_v11  ;;  %v511_v14 = vld [vmem:[%s719_s3 + $0x20] sm:$0xff]   ;;  %v30_v15 = vmax.f32 %v29_v12, 0.0  ;;  %s549_s29 = smov [#allocation2]  }
  0x15   :  { %464 = vmatprep.subr.bf16.mxu1 %v547_v1  ;;  %v506_v16 = vld [vmem:[%s717_s1 + $0x38] sm:$0xff]   ;;  %v512_v17 = vld [vmem:[%s719_s3 + $0x28] sm:$0xff]   ;;  %v513_v19 = vld [vmem:[%s719_s3 + $0x30] sm:$0xff]   ;;  %s374_s30 = sshll.u32 %s549_s29, 4  ;;  %s375_s30 = int_to_ptr.vmem [resolvable:$true] %s374_s30 }
  0x16   :  { %447 = vmatpush3.bf16.msra.mxu0 %v504_v9  ;;  %v31_v18 = vpack.c.bf16 %v30_v15, %v30_v15  ;;  %v514_v20 = vld [vmem:[%s719_s3 + $0x38] sm:$0xff]   ;;  %v515_v21 = vld [vmem:[%s721_s5] sm:$0xff]   ;;  %v516_v22 = vld [vmem:[%s721_s5 + $0x8] sm:$0xff]   ;;  %p528_p1 = scmp.lt.s32.totalorder %s375_s30, %s375_s30 }
  0x17   :  { %448 = vmatprep.subr.bf16.mxu0 %v547_v1  ;;  %v517_v23 = vld [vmem:[%s721_s5 + $0x10] sm:$0xff]   ;;  %v518_v24 = vld [vmem:[%s721_s5 + $0x18] sm:$0xff]   ;;  %v519_v25 = vld [vmem:[%s721_s5 + $0x20] sm:$0xff]  }
  0x18   :  { %465 = vmatpush3.bf16.msra.mxu1 %v511_v14  ;;  %v520_v26 = vld [vmem:[%s721_s5 + $0x28] sm:$0xff]   ;;  %v521_v27 = vld [vmem:[%s721_s5 + $0x30] sm:$0xff]   ;;  %v382_v28 = vld [vmem:[%s718_s2] ss:$0 sm:$0xff] }
  0x19   :  { %466 = vmatprep.subr.bf16.mxu1 %v547_v1  ;;  %v522_v35 = vld [vmem:[%s721_s5 + $0x38] sm:$0xff]   ;;  %v391_v36 = vld [vmem:[%s720_s4] ss:$0 sm:$0xff]  ;;  %s523_s4 = scalar_lea.vmem %s375_s30, 32 }
  0x1a   :  { %449 = vmatpush3.bf16.msra.mxu0 %v505_v13  ;;  %v400_v43 = vld [vmem:[%s722_s6] ss:$0 sm:$0xff]  ;;  %p524_p0 = scmp.ne.s32.totalorder %s375_s30, %s523_s4  ;;  %p529_p2 = scmp.lt.s32.totalorder %s523_s4, %s523_s4 }
  0x1b   :  { %450 = vmatprep.subr.bf16.mxu0 %v547_v1 }
  0x1c   :  { %467 = vmatpush3.bf16.msra.mxu1 %v512_v17  ;;  %p530_p3 = por %p529_p2, %p528_p1 }
  0x1d   :  { %468 = vmatprep.subr.bf16.mxu1 %v547_v1 }
  0x1e   :  { %451 = vmatpush3.bf16.msra.mxu0 %v506_v16  ;;  %p531_p4 = pnand %p530_p3, %p524_p0 }
  0x1f   :  { %476 = vmatprep.subr.bf16.mxu0 %v547_v1 }
  0x20   :  { %469 = vmatpush3.bf16.msra.mxu1 %v513_v19 }
  0x21   :  { %453 = vmatmul.mubr.bf16.vlgmr.msra.gmra.mrb[0].mxu0 %v31_v18  ;;  %470 = vmatprep.subr.bf16.mxu1 %v547_v1 }
  0x22   :  { %492 = vmatprep.mubr.msk.bf16.mxu0 %vm548_vm0, %v547_v1  ;;  %477 = vmatpush3.bf16.msra.mxu0 %v515_v21 }
  0x23   :  { %478 = vmatprep.subr.bf16.mxu0 %v547_v1 }
  0x24   :  { %471 = vmatpush3.bf16.msra.mxu1 %v514_v20 }
  0x26   :  { %479 = vmatpush3.bf16.msra.mxu0 %v516_v22 }
  0x27   :  { %480 = vmatprep.subr.bf16.mxu0 %v547_v1 }
  0x2a   :  { %481 = vmatpush3.bf16.msra.mxu0 %v517_v23 }
  0x2b   :  { %482 = vmatprep.subr.bf16.mxu0 %v547_v1 }
  0x2e   :  { %483 = vmatpush3.bf16.msra.mxu0 %v518_v24 }
  0x2f   :  { %484 = vmatprep.subr.bf16.mxu0 %v547_v1 }
  0x32   :  { %485 = vmatpush3.bf16.msra.mxu0 %v519_v25 }
  0x33   :  { %486 = vmatprep.subr.bf16.mxu0 %v547_v1 }
  0x36   :  { %487 = vmatpush3.bf16.msra.mxu0 %v520_v26 }
  0x37   :  { %488 = vmatprep.subr.bf16.mxu0 %v547_v1 }
  0x3a   :  { %489 = vmatpush3.bf16.msra.mxu0 %v521_v27 }
  0x3b   :  { %490 = vmatprep.subr.bf16.mxu0 %v547_v1 }
  0x3e   :  { %491 = vmatpush3.bf16.msra.mxu0 %v522_v35 }
  0xf4   :  { %v137_v29 = vpop.f32.mrb[0].mxu0 }
  0xf5   :  { %v138_v30 = vadd.f32 %v382_v28, %v137_v29  ;;  %v454_v31 = vpop.f32.mrb[1].mxu0 }
  0xf6   :  { %v140_v32 = vpop.f32.mrb[2].mxu0 }
  0xf7   :  { %v143_v33 = vpack.c.bf16 %v138_v30, %v138_v30  ;;  %v455_v34 = vpop.f32.mrb[3].mxu0 }
  0xf9   :  { %473 = vmatmul.mubr.bf16.vlgmr.msra.gmra.mrb[0].mxu1 %v143_v33 }
 0x1cc   :  { %v249_v37 = vpop.f32.mrb[0].mxu1 }
 0x1cd   :  { %v250_v38 = vadd.f32 %v391_v36, %v249_v37  ;;  %v474_v39 = vpop.f32.mrb[1].mxu1 }
 0x1ce   :  { %v252_v40 = vpop.f32.mrb[2].mxu1 }
 0x1cf   :  { %v255_v41 = vpack.c.bf16 %v250_v38, %v250_v38  ;;  %v475_v42 = vpop.f32.mrb[3].mxu1 }
 0x1d1   :  { %493 = vmatmul.mubr.bf16.vlgmr.msra.gmra.mrb[4].mxu0 %v255_v41 }
 0x2a4   :  { %v361_v44 = vpop.f32.mrb[4].mxu0 }
 0x2a5   :  { %v362_v45 = vadd.f32 %v400_v43, %v361_v44  ;;  %v494_v46 = vpop.f32.mrb[5].mxu0 }
 0x2a6   :  { %v364_v47 = vpop.f32.mrb[6].mxu0 }
 0x2a7   :  { %367 = vst [vmem:[#allocation2] sm:$0x3] %v362_v45  ;;  %v495_v48 = vpop.f32.mrb[7].mxu0 }
 0x2a8   :  { %534 = shalt.err (!%p531_p4)
}
 0x2a9   :  { %s535_s6 = scalar_lea.hbm %s723_s7, 32 }
 0x2aa   :  { %p536_p5 = scmp.ne.s32.totalorder %s723_s7, %s535_s6  ;;  %p539_p6 = scmp.lt.u32.totalorder %s535_s6, %s723_s7 }
 0x2ac   :  { %p541_p7 = pnand %p539_p6, %p536_p5 }
 0x2ae   :  { %544 = shalt.err (!%p541_p7)
}
 0x2af   :  { %377 = dma.vmem_to_hbm [thread:$0]  %s375_s30, 32, %s723_s7, [#allocation3]  }
 0x2b0   :  { %545 = dma.done.wait [#allocation3], 32  }
 0x2b1   :  { %546 = vsyncadd [#allocation3], 4294967264 }
 0x2b2   :  { %381 = vsyncpa [#allocation3], 1 }

</bundles_post_ra>
